<compile_context>
chip_gen: v5e
topology: v5e:2x2
jax: 0.10.0
libtpu: 0.0.40
codegen_flags: <defaults>
</compile_context>

<pallas_src>
import functools

import jax
import jax.numpy as jnp
import numpy as np
from jax.experimental import pallas as pl
from jax.experimental.pallas import tpu as pltpu


# ---------------------------------------------------------------------------
# Fused Pallas kernel: whole Inception_B_res block for one image per grid step
# ---------------------------------------------------------------------------
def _inception_b_res_kernel(x_ref, wx_ref, bx_ref,
                            w7w_ref, b7w_ref, wmask_ref,
                            w7h_ref, b7h_ref,
                            wl1_ref, wl2_ref,
                            out_ref,
                            wpad_ref, hpad_ref,
                            *, H, W, c1, c2a, c2b, c2c, nl):
    HW = H * W
    x = x_ref[...]                                              # (HW, C)

    # ---- Stage 1: branch1 1x1, branch2a 1x1 and shortcut 1x1 in ONE matmul.
    # BN scale already folded into weight columns; bias added here.
    z = jnp.dot(x, wx_ref[...], preferred_element_type=jnp.float32)
    z = z + bx_ref[...]
    out1 = jnp.maximum(z[:, :c1], 0.0)                          # branch1 (+ReLU)
    t = jnp.maximum(z[:, c1:c1 + c2a], 0.0)                     # branch2a (+ReLU)
    shortcut = z[:, c1 + c2a:]                                  # shortcut (no ReLU)

    # ---- Stage 2: (1,7) conv along W, pad 3, BN+ReLU.
    # Flat shift by (k-3) rows + per-position validity mask (kills wrap-around
    # across image rows).  Halo padding lives only in VMEM scratch.
    wpad_ref[:3, :] = jnp.zeros((3, c2a), jnp.float32)
    wpad_ref[3:3 + HW, :] = t
    wpad_ref[3 + HW:, :] = jnp.zeros((3, c2a), jnp.float32)
    acc = jnp.zeros((HW, c2b), jnp.float32)
    for k in range(7):                                          # static unroll
        v = wpad_ref[k:k + HW, :]
        if k != 3:                                              # k==3: shift 0, all valid
            v = v * wmask_ref[k]                                # (HW, c2a) * (HW, 1)
        acc = acc + jnp.dot(v, w7w_ref[k], preferred_element_type=jnp.float32)
    t = jnp.maximum(acc + b7w_ref[...], 0.0)

    # ---- Stage 3: (7,1) conv along H, pad 3, BN+ReLU.
    # Whole-row shifts of the flat layout are exact; only zero padding needed.
    pad = 3 * W
    hpad_ref[:pad, :] = jnp.zeros((pad, c2b), jnp.float32)
    hpad_ref[pad:pad + HW, :] = t
    hpad_ref[pad + HW:, :] = jnp.zeros((pad, c2b), jnp.float32)
    acc = jnp.zeros((HW, c2c), jnp.float32)
    for k in range(7):                                          # static unroll
        acc = acc + jnp.dot(hpad_ref[k * W:k * W + HW, :], w7h_ref[k],
                            preferred_element_type=jnp.float32)
    out2 = jnp.maximum(acc + b7h_ref[...], 0.0)

    # ---- Stage 4: conv_linear(cat(out1, out2)) + shortcut, final ReLU.
    y = jnp.dot(out1, wl1_ref[...], preferred_element_type=jnp.float32)
    y = y + jnp.dot(out2, wl2_ref[...], preferred_element_type=jnp.float32)
    out_ref[...] = jnp.maximum(y + shortcut, 0.0).astype(out_ref.dtype)


def _fused_call(x_flat, wx, bx, w7w, b7w, wmask, w7h, b7h, wl1, wl2, *, H, W):
    """x_flat: (N, H*W, C) channels-last.  Returns (N, H*W, n1_linear)."""
    N, HW, C = x_flat.shape
    c1, nl = wl1.shape
    c2a, c2b = w7w.shape[1], w7w.shape[2]
    c2c = w7h.shape[2]
    cx = wx.shape[1]                                            # c1 + c2a + nl

    kernel = functools.partial(_inception_b_res_kernel,
                               H=H, W=W, c1=c1, c2a=c2a, c2b=c2b, c2c=c2c, nl=nl)

    return pl.pallas_call(
        kernel,
        out_shape=jax.ShapeDtypeStruct((N, HW, nl), jnp.float32),
        grid_spec=pltpu.PrefetchScalarGridSpec(
            num_scalar_prefetch=0,
            grid=(N,),                                          # one image per step
            in_specs=[
                pl.BlockSpec((None, HW, C), lambda n: (n, 0, 0)),
                # Weights / biases / mask: constant index_map -> fetched once,
                # kept resident in VMEM across grid steps.
                pl.BlockSpec((C, cx), lambda n: (0, 0)),
                pl.BlockSpec((1, cx), lambda n: (0, 0)),
                pl.BlockSpec((7, c2a, c2b), lambda n: (0, 0, 0)),
                pl.BlockSpec((1, c2b), lambda n: (0, 0)),
                pl.BlockSpec((7, HW, 1), lambda n: (0, 0, 0)),
                pl.BlockSpec((7, c2b, c2c), lambda n: (0, 0, 0)),
                pl.BlockSpec((1, c2c), lambda n: (0, 0)),
                pl.BlockSpec((c1, nl), lambda n: (0, 0)),
                pl.BlockSpec((c2c, nl), lambda n: (0, 0)),
            ],
            out_specs=pl.BlockSpec((None, HW, nl), lambda n: (n, 0, 0)),
            scratch_shapes=[
                pltpu.VMEM((HW + 6, c2a), jnp.float32),         # W-conv halo buffer
                pltpu.VMEM((HW + 6 * W, c2b), jnp.float32),     # H-conv halo buffer
            ],
        ),
        compiler_params=pltpu.CompilerParams(
            dimension_semantics=("parallel",)),
    )(x_flat, wx, bx, w7w, b7w, wmask, w7h, b7h, wl1, wl2)


# ---------------------------------------------------------------------------
# Parameter prep (BN is eval-mode, folded into weight scale + bias)
# ---------------------------------------------------------------------------
def fold_bn(gamma, beta, mean, var, eps=1e-5):
    s = gamma / jnp.sqrt(var + eps)
    return s, beta - mean * s


# ---------------------------------------------------------------------------
# Forward (matches Inception_B_res.forward; NCHW in / NCHW out)
# ---------------------------------------------------------------------------
def inception_b_res_forward(x_nchw, raw, eps=1e-5):
    N, C, H, W = x_nchw.shape
    b1 = raw["w_b1"].shape[0]
    b2_n1 = raw["w_b2a"].shape[0]
    b2_n7x1 = raw["w_b2c"].shape[0]
    n1_linear = raw["w_lin"].shape[0]
    HW = H * W

    x_flat = jnp.transpose(x_nchw, (0, 2, 3, 1)).reshape(N, HW, C)

    s_b1, o_b1 = fold_bn(*raw["bn_b1"], eps)
    s_b2a, o_b2a = fold_bn(*raw["bn_b2a"], eps)
    s_b2b, o_b2b = fold_bn(*raw["bn_b2b"], eps)
    s_b2c, o_b2c = fold_bn(*raw["bn_b2c"], eps)
    s_sc, o_sc = fold_bn(*raw["bn_sc"], eps)

    # All 1x1 convs that read x, concatenated along Cout, BN scale folded in.
    w_b1 = raw["w_b1"][:, :, 0, 0].T * s_b1[None, :]             # (C, b1)
    w_b2a = raw["w_b2a"][:, :, 0, 0].T * s_b2a[None, :]          # (C, b2_n1)
    w_sc = raw["w_sc"][:, :, 0, 0].T * s_sc[None, :]             # (C, n1_linear)
    wx = jnp.concatenate([w_b1, w_b2a, w_sc], axis=1)            # (C, b1+b2_n1+nl)
    bx = jnp.concatenate([o_b1, o_b2a, o_sc])[None, :]

    # (1,7) conv taps: (7, b2_n1, b2_n1x7), BN scale folded.
    w7w = jnp.transpose(raw["w_b2b"][:, :, 0, :], (2, 1, 0)) * s_b2b[None, None, :]
    b7w = o_b2b[None, :]
    # (7,1) conv taps: (7, b2_n1x7, b2_n7x1), BN scale folded.
    w7h = jnp.transpose(raw["w_b2c"][:, :, :, 0], (2, 1, 0)) * s_b2c[None, None, :]
    b7h = o_b2c[None, :]

    # conv_linear (no BN, no bias), split to match cat(out1, out2).
    w_lin = raw["w_lin"][:, :, 0, 0].T                           # (b1+b2_n7x1, nl)
    wl1, wl2 = w_lin[:b1], w_lin[b1:]

    # Validity mask for the W-axis taps (zero where the flat row shift would
    # wrap across image rows / hit the +/-3 padding).
    w_idx = jnp.arange(HW, dtype=jnp.int32) % W                  # (HW,)
    wmask = jnp.stack(
        [((w_idx + (k - 3) >= 0) & (w_idx + (k - 3) < W)).astype(jnp.float32)
         for k in range(7)], axis=0)[:, :, None]                 # (7, HW, 1)

    out = _fused_call(x_flat, wx, bx, w7w, b7w, wmask, w7h, b7h, wl1, wl2,
                      H=H, W=W)
    return out.reshape(N, H, W, n1_linear).transpose(0, 3, 1, 2)  # back to NCHW


# ---------------------------------------------------------------------------
# Pure-JAX reference (NCHW, lax.conv) for verification
# ---------------------------------------------------------------------------
def ref_forward(x, raw, eps=1e-5):
    def conv(x, w, pad):
        return jax.lax.conv_general_dilated(
            x, w, window_strides=(1, 1), padding=pad,
            dimension_numbers=("NCHW", "OIHW", "NCHW"),
            precision=jax.lax.Precision.HIGHEST)

    def bn(x, g, b, m, v):
        s = g / jnp.sqrt(v + eps)
        return x * s[None, :, None, None] + (b - m * s)[None, :, None, None]

    def bcr(x, w, bn_p, pad):
        return jnp.maximum(bn(conv(x, w, pad), *bn_p), 0.0)

    out1 = bcr(x, raw["w_b1"], raw["bn_b1"], ((0, 0), (0, 0)))
    t = bcr(x, raw["w_b2a"], raw["bn_b2a"], ((0, 0), (0, 0)))
    t = bcr(t, raw["w_b2b"], raw["bn_b2b"], ((0, 0), (3, 3)))
    t = bcr(t, raw["w_b2c"], raw["bn_b2c"], ((3, 3), (0, 0)))
    cat = jnp.concatenate([out1, t], axis=1)
    out = conv(cat, raw["w_lin"], ((0, 0), (0, 0)))
    sc = bn(conv(x, raw["w_sc"], ((0, 0), (0, 0))), *raw["bn_sc"])
    return jnp.maximum(out + sc, 0.0)


# ---------------------------------------------------------------------------
# Main
# ---------------------------------------------------------------------------
def make_bn(k, c):
    k1, k2, k3, k4 = jax.random.split(k, 4)
    gamma = 1.0 + 0.1 * jax.random.normal(k1, (c,), jnp.float32)
    beta = 0.1 * jax.random.normal(k2, (c,), jnp.float32)
    mean = 0.1 * jax.random.normal(k3, (c,), jnp.float32)
    var = 1.0 + 0.2 * jax.random.uniform(k4, (c,), jnp.float32)
    return gamma, beta, mean, var


if __name__ == "__main__":
    N, C, H, W = 2, 4, 16, 16
    b1, b2_n1, b2_n1x7, b2_n7x1, n1_linear = 8, 6, 6, 8, 16

    key = jax.random.PRNGKey(0)
    kx, *kp = jax.random.split(key, 13)
    x = jax.random.normal(kx, (N, C, H, W), jnp.float32)

    raw = {
        "w_b1":  0.2 * jax.random.normal(kp[0], (b1, C, 1, 1), jnp.float32),
        "w_b2a": 0.2 * jax.random.normal(kp[1], (b2_n1, C, 1, 1), jnp.float32),
        "w_b2b": 0.2 * jax.random.normal(kp[2], (b2_n1x7, b2_n1, 1, 7), jnp.float32),
        "w_b2c": 0.2 * jax.random.normal(kp[3], (b2_n7x1, b2_n1x7, 7, 1), jnp.float32),
        "w_lin": 0.2 * jax.random.normal(kp[4], (n1_linear, b1 + b2_n7x1, 1, 1), jnp.float32),
        "w_sc":  0.2 * jax.random.normal(kp[5], (n1_linear, C, 1, 1), jnp.float32),
        "bn_b1":  make_bn(kp[6], b1),
        "bn_b2a": make_bn(kp[7], b2_n1),
        "bn_b2b": make_bn(kp[8], b2_n1x7),
        "bn_b2c": make_bn(kp[9], b2_n7x1),
        "bn_sc":  make_bn(kp[10], n1_linear),
    }
    # TODO(synk): BatchNorm is implemented in eval mode (running stats folded
    # into weight scale / bias); PyTorch training-mode batch statistics are
    # not modeled.

    fwd = jax.jit(inception_b_res_forward)
    out = jax.block_until_ready(fwd(x, raw))
    assert out.shape == (N, n1_linear, H, W)

    ref = jax.block_until_ready(ref_forward(x, raw))
    np.testing.assert_allclose(np.asarray(out), np.asarray(ref),
                               rtol=5e-3, atol=5e-3)
    print("KERNEL_OK")
</pallas_src>

<mosaic_0001>
module attributes {stable_mosaic.version = 11 : i64} {
  func.func @_inception_b_res_kernel(%arg0: i32, %arg1: memref<1x256x4xf32, #tpu.memory_space<vmem>>, %arg2: memref<4x30xf32, #tpu.memory_space<vmem>>, %arg3: memref<1x30xf32, #tpu.memory_space<vmem>>, %arg4: memref<7x6x6xf32, #tpu.memory_space<vmem>>, %arg5: memref<1x6xf32, #tpu.memory_space<vmem>>, %arg6: memref<7x256x1xf32, #tpu.memory_space<vmem>>, %arg7: memref<7x6x8xf32, #tpu.memory_space<vmem>>, %arg8: memref<1x8xf32, #tpu.memory_space<vmem>>, %arg9: memref<8x16xf32, #tpu.memory_space<vmem>>, %arg10: memref<8x16xf32, #tpu.memory_space<vmem>>, %arg11: memref<1x256x16xf32, #tpu.memory_space<vmem>>, %arg12: memref<262x6xf32, #tpu.memory_space<vmem>>, %arg13: memref<352x6xf32, #tpu.memory_space<vmem>>) attributes {dimension_semantics = [#tpu.dimension_semantics<parallel>], iteration_bounds = array<i64: 2>, scalar_prefetch = 0 : i64, scratch_operands = 2 : i64, tpu.core_type = #tpu.core_type<tc>, window_params = [{transform_indices = @transform_0, window_bounds = array<i64: 1, 256, 4>}, {pipeline_mode = #tpu.pipeline_mode<synchronous>, transform_indices = @transform_1, window_bounds = array<i64: 4, 30>}, {pipeline_mode = #tpu.pipeline_mode<synchronous>, transform_indices = @transform_2, window_bounds = array<i64: 1, 30>}, {pipeline_mode = #tpu.pipeline_mode<synchronous>, transform_indices = @transform_3, window_bounds = array<i64: 7, 6, 6>}, {pipeline_mode = #tpu.pipeline_mode<synchronous>, transform_indices = @transform_4, window_bounds = array<i64: 1, 6>}, {pipeline_mode = #tpu.pipeline_mode<synchronous>, transform_indices = @transform_5, window_bounds = array<i64: 7, 256, 1>}, {pipeline_mode = #tpu.pipeline_mode<synchronous>, transform_indices = @transform_6, window_bounds = array<i64: 7, 6, 8>}, {pipeline_mode = #tpu.pipeline_mode<synchronous>, transform_indices = @transform_7, window_bounds = array<i64: 1, 8>}, {pipeline_mode = #tpu.pipeline_mode<synchronous>, transform_indices = @transform_8, window_bounds = array<i64: 8, 16>}, {pipeline_mode = #tpu.pipeline_mode<synchronous>, transform_indices = @transform_9, window_bounds = array<i64: 8, 16>}, {transform_indices = @transform_10, window_bounds = array<i64: 1, 256, 16>}]} {
    %c0 = arith.constant 0 : index
    %c0_0 = arith.constant 0 : index
    %c0_1 = arith.constant 0 : index
    %0 = vector.load %arg1[%c0, %c0_0, %c0_1] : memref<1x256x4xf32, #tpu.memory_space<vmem>>, vector<1x256x4xf32>
    %1 = vector.shape_cast %0 : vector<1x256x4xf32> to vector<256x4xf32>
    %c0_2 = arith.constant 0 : index
    %c0_3 = arith.constant 0 : index
    %2 = vector.load %arg2[%c0_2, %c0_3] : memref<4x30xf32, #tpu.memory_space<vmem>>, vector<4x30xf32>
    %cst = arith.constant dense<0.000000e+00> : vector<256x30xf32>
    %3 = tpu.matmul %1, %2, %cst {dimension_numbers = #tpu.dot_dimension_numbers<[1], [0], [0], [1], [0, 0, 1, 1], [], []>} : vector<256x4xf32>, vector<4x30xf32>, vector<256x30xf32> -> vector<256x30xf32>
    %c0_4 = arith.constant 0 : index
    %c0_5 = arith.constant 0 : index
    %4 = vector.load %arg3[%c0_4, %c0_5] : memref<1x30xf32, #tpu.memory_space<vmem>>, vector<1x30xf32>
    %5 = vector.broadcast %4 : vector<1x30xf32> to vector<256x30xf32>
    %6 = arith.addf %3, %5 : vector<256x30xf32>
    %7 = vector.extract_strided_slice %6 {offsets = [0, 0], sizes = [256, 8], strides = [1, 1]} : vector<256x30xf32> to vector<256x8xf32>
    %cst_6 = arith.constant 0.000000e+00 : f32
    %8 = vector.broadcast %cst_6 : f32 to vector<256x8xf32>
    %9 = arith.maximumf %7, %8 : vector<256x8xf32>
    %10 = vector.extract_strided_slice %6 {offsets = [0, 8], sizes = [256, 6], strides = [1, 1]} : vector<256x30xf32> to vector<256x6xf32>
    %cst_7 = arith.constant 0.000000e+00 : f32
    %11 = vector.broadcast %cst_7 : f32 to vector<256x6xf32>
    %12 = arith.maximumf %10, %11 : vector<256x6xf32>
    %13 = vector.extract_strided_slice %6 {offsets = [0, 14], sizes = [256, 16], strides = [1, 1]} : vector<256x30xf32> to vector<256x16xf32>
    %cst_8 = arith.constant 0.000000e+00 : f32
    %14 = vector.broadcast %cst_8 : f32 to vector<3x6xf32>
    %c0_9 = arith.constant 0 : index
    %c0_10 = arith.constant 0 : index
    %15 = vector.load %arg12[%c0_9, %c0_10] : memref<262x6xf32, #tpu.memory_space<vmem>>, vector<3x6xf32>
    tpu.vector_store %arg12[%c0_9, %c0_10], %14 {strides = array<i32>} : memref<262x6xf32, #tpu.memory_space<vmem>>, vector<3x6xf32>,
    %c3 = arith.constant 3 : index
    %c0_11 = arith.constant 0 : index
    %16 = vector.load %arg12[%c3, %c0_11] : memref<262x6xf32, #tpu.memory_space<vmem>>, vector<256x6xf32>
    tpu.vector_store %arg12[%c3, %c0_11], %12 {strides = array<i32>} : memref<262x6xf32, #tpu.memory_space<vmem>>, vector<256x6xf32>,
    %cst_12 = arith.constant 0.000000e+00 : f32
    %17 = vector.broadcast %cst_12 : f32 to vector<3x6xf32>
    %c259 = arith.constant 259 : index
    %c0_13 = arith.constant 0 : index
    %18 = vector.load %arg12[%c259, %c0_13] : memref<262x6xf32, #tpu.memory_space<vmem>>, vector<3x6xf32>
    tpu.vector_store %arg12[%c259, %c0_13], %17 {strides = array<i32>} : memref<262x6xf32, #tpu.memory_space<vmem>>, vector<3x6xf32>,
    %cst_14 = arith.constant 0.000000e+00 : f32
    %19 = vector.broadcast %cst_14 : f32 to vector<256x6xf32>
    %c0_15 = arith.constant 0 : index
    %c0_16 = arith.constant 0 : index
    %20 = vector.load %arg12[%c0_15, %c0_16] : memref<262x6xf32, #tpu.memory_space<vmem>>, vector<256x6xf32>
    %c0_17 = arith.constant 0 : index
    %c0_18 = arith.constant 0 : index
    %c0_19 = arith.constant 0 : index
    %21 = vector.load %arg6[%c0_17, %c0_18, %c0_19] : memref<7x256x1xf32, #tpu.memory_space<vmem>>, vector<1x256x1xf32>
    %22 = vector.shape_cast %21 : vector<1x256x1xf32> to vector<256x1xf32>
    %23 = vector.broadcast %22 : vector<256x1xf32> to vector<256x6xf32>
    %24 = arith.mulf %20, %23 : vector<256x6xf32>
    %c0_20 = arith.constant 0 : index
    %c0_21 = arith.constant 0 : index
    %c0_22 = arith.constant 0 : index
    %25 = vector.load %arg4[%c0_20, %c0_21, %c0_22] : memref<7x6x6xf32, #tpu.memory_space<vmem>>, vector<1x6x6xf32>
    %26 = vector.shape_cast %25 : vector<1x6x6xf32> to vector<6x6xf32>
    %cst_23 = arith.constant dense<0.000000e+00> : vector<256x6xf32>
    %27 = tpu.matmul %24, %26, %cst_23 {dimension_numbers = #tpu.dot_dimension_numbers<[1], [0], [0], [1], [0, 0, 1, 1], [], []>} : vector<256x6xf32>, vector<6x6xf32>, vector<256x6xf32> -> vector<256x6xf32>
    %28 = arith.addf %19, %27 : vector<256x6xf32>
    %c1 = arith.constant 1 : index
    %c0_24 = arith.constant 0 : index
    %29 = vector.load %arg12[%c1, %c0_24] : memref<262x6xf32, #tpu.memory_space<vmem>>, vector<256x6xf32>
    %c1_25 = arith.constant 1 : index
    %c0_26 = arith.constant 0 : index
    %c0_27 = arith.constant 0 : index
    %30 = vector.load %arg6[%c1_25, %c0_26, %c0_27] : memref<7x256x1xf32, #tpu.memory_space<vmem>>, vector<1x256x1xf32>
    %31 = vector.shape_cast %30 : vector<1x256x1xf32> to vector<256x1xf32>
    %32 = vector.broadcast %31 : vector<256x1xf32> to vector<256x6xf32>
    %33 = arith.mulf %29, %32 : vector<256x6xf32>
    %c1_28 = arith.constant 1 : index
    %c0_29 = arith.constant 0 : index
    %c0_30 = arith.constant 0 : index
    %34 = vector.load %arg4[%c1_28, %c0_29, %c0_30] : memref<7x6x6xf32, #tpu.memory_space<vmem>>, vector<1x6x6xf32>
    %35 = vector.shape_cast %34 : vector<1x6x6xf32> to vector<6x6xf32>
    %cst_31 = arith.constant dense<0.000000e+00> : vector<256x6xf32>
    %36 = tpu.matmul %33, %35, %cst_31 {dimension_numbers = #tpu.dot_dimension_numbers<[1], [0], [0], [1], [0, 0, 1, 1], [], []>} : vector<256x6xf32>, vector<6x6xf32>, vector<256x6xf32> -> vector<256x6xf32>
    %37 = arith.addf %28, %36 : vector<256x6xf32>
    %c2 = arith.constant 2 : index
    %c0_32 = arith.constant 0 : index
    %38 = vector.load %arg12[%c2, %c0_32] : memref<262x6xf32, #tpu.memory_space<vmem>>, vector<256x6xf32>
    %c2_33 = arith.constant 2 : index
    %c0_34 = arith.constant 0 : index
    %c0_35 = arith.constant 0 : index
    %39 = vector.load %arg6[%c2_33, %c0_34, %c0_35] : memref<7x256x1xf32, #tpu.memory_space<vmem>>, vector<1x256x1xf32>
    %40 = vector.shape_cast %39 : vector<1x256x1xf32> to vector<256x1xf32>
    %41 = vector.broadcast %40 : vector<256x1xf32> to vector<256x6xf32>
    %42 = arith.mulf %38, %41 : vector<256x6xf32>
    %c2_36 = arith.constant 2 : index
    %c0_37 = arith.constant 0 : index
    %c0_38 = arith.constant 0 : index
    %43 = vector.load %arg4[%c2_36, %c0_37, %c0_38] : memref<7x6x6xf32, #tpu.memory_space<vmem>>, vector<1x6x6xf32>
    %44 = vector.shape_cast %43 : vector<1x6x6xf32> to vector<6x6xf32>
    %cst_39 = arith.constant dense<0.000000e+00> : vector<256x6xf32>
    %45 = tpu.matmul %42, %44, %cst_39 {dimension_numbers = #tpu.dot_dimension_numbers<[1], [0], [0], [1], [0, 0, 1, 1], [], []>} : vector<256x6xf32>, vector<6x6xf32>, vector<256x6xf32> -> vector<256x6xf32>
    %46 = arith.addf %37, %45 : vector<256x6xf32>
    %c3_40 = arith.constant 3 : index
    %c0_41 = arith.constant 0 : index
    %47 = vector.load %arg12[%c3_40, %c0_41] : memref<262x6xf32, #tpu.memory_space<vmem>>, vector<256x6xf32>
    %c3_42 = arith.constant 3 : index
    %c0_43 = arith.constant 0 : index
    %c0_44 = arith.constant 0 : index
    %48 = vector.load %arg4[%c3_42, %c0_43, %c0_44] : memref<7x6x6xf32, #tpu.memory_space<vmem>>, vector<1x6x6xf32>
    %49 = vector.shape_cast %48 : vector<1x6x6xf32> to vector<6x6xf32>
    %cst_45 = arith.constant dense<0.000000e+00> : vector<256x6xf32>
    %50 = tpu.matmul %47, %49, %cst_45 {dimension_numbers = #tpu.dot_dimension_numbers<[1], [0], [0], [1], [0, 0, 1, 1], [], []>} : vector<256x6xf32>, vector<6x6xf32>, vector<256x6xf32> -> vector<256x6xf32>
    %51 = arith.addf %46, %50 : vector<256x6xf32>
    %c4 = arith.constant 4 : index
    %c0_46 = arith.constant 0 : index
    %52 = vector.load %arg12[%c4, %c0_46] : memref<262x6xf32, #tpu.memory_space<vmem>>, vector<256x6xf32>
    %c4_47 = arith.constant 4 : index
    %c0_48 = arith.constant 0 : index
    %c0_49 = arith.constant 0 : index
    %53 = vector.load %arg6[%c4_47, %c0_48, %c0_49] : memref<7x256x1xf32, #tpu.memory_space<vmem>>, vector<1x256x1xf32>
    %54 = vector.shape_cast %53 : vector<1x256x1xf32> to vector<256x1xf32>
    %55 = vector.broadcast %54 : vector<256x1xf32> to vector<256x6xf32>
    %56 = arith.mulf %52, %55 : vector<256x6xf32>
    %c4_50 = arith.constant 4 : index
    %c0_51 = arith.constant 0 : index
    %c0_52 = arith.constant 0 : index
    %57 = vector.load %arg4[%c4_50, %c0_51, %c0_52] : memref<7x6x6xf32, #tpu.memory_space<vmem>>, vector<1x6x6xf32>
    %58 = vector.shape_cast %57 : vector<1x6x6xf32> to vector<6x6xf32>
    %cst_53 = arith.constant dense<0.000000e+00> : vector<256x6xf32>
    %59 = tpu.matmul %56, %58, %cst_53 {dimension_numbers = #tpu.dot_dimension_numbers<[1], [0], [0], [1], [0, 0, 1, 1], [], []>} : vector<256x6xf32>, vector<6x6xf32>, vector<256x6xf32> -> vector<256x6xf32>
    %60 = arith.addf %51, %59 : vector<256x6xf32>
    %c5 = arith.constant 5 : index
    %c0_54 = arith.constant 0 : index
    %61 = vector.load %arg12[%c5, %c0_54] : memref<262x6xf32, #tpu.memory_space<vmem>>, vector<256x6xf32>
    %c5_55 = arith.constant 5 : index
    %c0_56 = arith.constant 0 : index
    %c0_57 = arith.constant 0 : index
    %62 = vector.load %arg6[%c5_55, %c0_56, %c0_57] : memref<7x256x1xf32, #tpu.memory_space<vmem>>, vector<1x256x1xf32>
    %63 = vector.shape_cast %62 : vector<1x256x1xf32> to vector<256x1xf32>
    %64 = vector.broadcast %63 : vector<256x1xf32> to vector<256x6xf32>
    %65 = arith.mulf %61, %64 : vector<256x6xf32>
    %c5_58 = arith.constant 5 : index
    %c0_59 = arith.constant 0 : index
    %c0_60 = arith.constant 0 : index
    %66 = vector.load %arg4[%c5_58, %c0_59, %c0_60] : memref<7x6x6xf32, #tpu.memory_space<vmem>>, vector<1x6x6xf32>
    %67 = vector.shape_cast %66 : vector<1x6x6xf32> to vector<6x6xf32>
    %cst_61 = arith.constant dense<0.000000e+00> : vector<256x6xf32>
    %68 = tpu.matmul %65, %67, %cst_61 {dimension_numbers = #tpu.dot_dimension_numbers<[1], [0], [0], [1], [0, 0, 1, 1], [], []>} : vector<256x6xf32>, vector<6x6xf32>, vector<256x6xf32> -> vector<256x6xf32>
    %69 = arith.addf %60, %68 : vector<256x6xf32>
    %c6 = arith.constant 6 : index
    %c0_62 = arith.constant 0 : index
    %70 = vector.load %arg12[%c6, %c0_62] : memref<262x6xf32, #tpu.memory_space<vmem>>, vector<256x6xf32>
    %c6_63 = arith.constant 6 : index
    %c0_64 = arith.constant 0 : index
    %c0_65 = arith.constant 0 : index
    %71 = vector.load %arg6[%c6_63, %c0_64, %c0_65] : memref<7x256x1xf32, #tpu.memory_space<vmem>>, vector<1x256x1xf32>
    %72 = vector.shape_cast %71 : vector<1x256x1xf32> to vector<256x1xf32>
    %73 = vector.broadcast %72 : vector<256x1xf32> to vector<256x6xf32>
    %74 = arith.mulf %70, %73 : vector<256x6xf32>
    %c6_66 = arith.constant 6 : index
    %c0_67 = arith.constant 0 : index
    %c0_68 = arith.constant 0 : index
    %75 = vector.load %arg4[%c6_66, %c0_67, %c0_68] : memref<7x6x6xf32, #tpu.memory_space<vmem>>, vector<1x6x6xf32>
    %76 = vector.shape_cast %75 : vector<1x6x6xf32> to vector<6x6xf32>
    %cst_69 = arith.constant dense<0.000000e+00> : vector<256x6xf32>
    %77 = tpu.matmul %74, %76, %cst_69 {dimension_numbers = #tpu.dot_dimension_numbers<[1], [0], [0], [1], [0, 0, 1, 1], [], []>} : vector<256x6xf32>, vector<6x6xf32>, vector<256x6xf32> -> vector<256x6xf32>
    %78 = arith.addf %69, %77 : vector<256x6xf32>
    %c0_70 = arith.constant 0 : index
    %c0_71 = arith.constant 0 : index
    %79 = vector.load %arg5[%c0_70, %c0_71] : memref<1x6xf32, #tpu.memory_space<vmem>>, vector<1x6xf32>
    %80 = vector.broadcast %79 : vector<1x6xf32> to vector<256x6xf32>
    %81 = arith.addf %78, %80 : vector<256x6xf32>
    %cst_72 = arith.constant 0.000000e+00 : f32
    %82 = vector.broadcast %cst_72 : f32 to vector<256x6xf32>
    %83 = arith.maximumf %81, %82 : vector<256x6xf32>
    %cst_73 = arith.constant 0.000000e+00 : f32
    %84 = vector.broadcast %cst_73 : f32 to vector<48x6xf32>
    %c0_74 = arith.constant 0 : index
    %c0_75 = arith.constant 0 : index
    %85 = vector.load %arg13[%c0_74, %c0_75] : memref<352x6xf32, #tpu.memory_space<vmem>>, vector<48x6xf32>
    tpu.vector_store %arg13[%c0_74, %c0_75], %84 {strides = array<i32>} : memref<352x6xf32, #tpu.memory_space<vmem>>, vector<48x6xf32>,
    %c48 = arith.constant 48 : index
    %c0_76 = arith.constant 0 : index
    %86 = vector.load %arg13[%c48, %c0_76] : memref<352x6xf32, #tpu.memory_space<vmem>>, vector<256x6xf32>
    tpu.vector_store %arg13[%c48, %c0_76], %83 {strides = array<i32>} : memref<352x6xf32, #tpu.memory_space<vmem>>, vector<256x6xf32>,
    %cst_77 = arith.constant 0.000000e+00 : f32
    %87 = vector.broadcast %cst_77 : f32 to vector<48x6xf32>
    %c304 = arith.constant 304 : index
    %c0_78 = arith.constant 0 : index
    %88 = vector.load %arg13[%c304, %c0_78] : memref<352x6xf32, #tpu.memory_space<vmem>>, vector<48x6xf32>
    tpu.vector_store %arg13[%c304, %c0_78], %87 {strides = array<i32>} : memref<352x6xf32, #tpu.memory_space<vmem>>, vector<48x6xf32>,
    %cst_79 = arith.constant 0.000000e+00 : f32
    %89 = vector.broadcast %cst_79 : f32 to vector<256x8xf32>
    %c0_80 = arith.constant 0 : index
    %c0_81 = arith.constant 0 : index
    %90 = vector.load %arg13[%c0_80, %c0_81] : memref<352x6xf32, #tpu.memory_space<vmem>>, vector<256x6xf32>
    %c0_82 = arith.constant 0 : index
    %c0_83 = arith.constant 0 : index
    %c0_84 = arith.constant 0 : index
    %91 = vector.load %arg7[%c0_82, %c0_83, %c0_84] : memref<7x6x8xf32, #tpu.memory_space<vmem>>, vector<1x6x8xf32>
    %92 = vector.shape_cast %91 : vector<1x6x8xf32> to vector<6x8xf32>
    %cst_85 = arith.constant dense<0.000000e+00> : vector<256x8xf32>
    %93 = tpu.matmul %90, %92, %cst_85 {dimension_numbers = #tpu.dot_dimension_numbers<[1], [0], [0], [1], [0, 0, 1, 1], [], []>} : vector<256x6xf32>, vector<6x8xf32>, vector<256x8xf32> -> vector<256x8xf32>
    %94 = arith.addf %89, %93 : vector<256x8xf32>
    %c16 = arith.constant 16 : index
    %c0_86 = arith.constant 0 : index
    %95 = vector.load %arg13[%c16, %c0_86] : memref<352x6xf32, #tpu.memory_space<vmem>>, vector<256x6xf32>
    %c1_87 = arith.constant 1 : index
    %c0_88 = arith.constant 0 : index
    %c0_89 = arith.constant 0 : index
    %96 = vector.load %arg7[%c1_87, %c0_88, %c0_89] : memref<7x6x8xf32, #tpu.memory_space<vmem>>, vector<1x6x8xf32>
    %97 = vector.shape_cast %96 : vector<1x6x8xf32> to vector<6x8xf32>
    %cst_90 = arith.constant dense<0.000000e+00> : vector<256x8xf32>
    %98 = tpu.matmul %95, %97, %cst_90 {dimension_numbers = #tpu.dot_dimension_numbers<[1], [0], [0], [1], [0, 0, 1, 1], [], []>} : vector<256x6xf32>, vector<6x8xf32>, vector<256x8xf32> -> vector<256x8xf32>
    %99 = arith.addf %94, %98 : vector<256x8xf32>
    %c32 = arith.constant 32 : index
    %c0_91 = arith.constant 0 : index
    %100 = vector.load %arg13[%c32, %c0_91] : memref<352x6xf32, #tpu.memory_space<vmem>>, vector<256x6xf32>
    %c2_92 = arith.constant 2 : index
    %c0_93 = arith.constant 0 : index
    %c0_94 = arith.constant 0 : index
    %101 = vector.load %arg7[%c2_92, %c0_93, %c0_94] : memref<7x6x8xf32, #tpu.memory_space<vmem>>, vector<1x6x8xf32>
    %102 = vector.shape_cast %101 : vector<1x6x8xf32> to vector<6x8xf32>
    %cst_95 = arith.constant dense<0.000000e+00> : vector<256x8xf32>
    %103 = tpu.matmul %100, %102, %cst_95 {dimension_numbers = #tpu.dot_dimension_numbers<[1], [0], [0], [1], [0, 0, 1, 1], [], []>} : vector<256x6xf32>, vector<6x8xf32>, vector<256x8xf32> -> vector<256x8xf32>
    %104 = arith.addf %99, %103 : vector<256x8xf32>
    %c48_96 = arith.constant 48 : index
    %c0_97 = arith.constant 0 : index
    %105 = vector.load %arg13[%c48_96, %c0_97] : memref<352x6xf32, #tpu.memory_space<vmem>>, vector<256x6xf32>
    %c3_98 = arith.constant 3 : index
    %c0_99 = arith.constant 0 : index
    %c0_100 = arith.constant 0 : index
    %106 = vector.load %arg7[%c3_98, %c0_99, %c0_100] : memref<7x6x8xf32, #tpu.memory_space<vmem>>, vector<1x6x8xf32>
    %107 = vector.shape_cast %106 : vector<1x6x8xf32> to vector<6x8xf32>
    %cst_101 = arith.constant dense<0.000000e+00> : vector<256x8xf32>
    %108 = tpu.matmul %105, %107, %cst_101 {dimension_numbers = #tpu.dot_dimension_numbers<[1], [0], [0], [1], [0, 0, 1, 1], [], []>} : vector<256x6xf32>, vector<6x8xf32>, vector<256x8xf32> -> vector<256x8xf32>
    %109 = arith.addf %104, %108 : vector<256x8xf32>
    %c64 = arith.constant 64 : index
    %c0_102 = arith.constant 0 : index
    %110 = vector.load %arg13[%c64, %c0_102] : memref<352x6xf32, #tpu.memory_space<vmem>>, vector<256x6xf32>
    %c4_103 = arith.constant 4 : index
    %c0_104 = arith.constant 0 : index
    %c0_105 = arith.constant 0 : index
    %111 = vector.load %arg7[%c4_103, %c0_104, %c0_105] : memref<7x6x8xf32, #tpu.memory_space<vmem>>, vector<1x6x8xf32>
    %112 = vector.shape_cast %111 : vector<1x6x8xf32> to vector<6x8xf32>
    %cst_106 = arith.constant dense<0.000000e+00> : vector<256x8xf32>
    %113 = tpu.matmul %110, %112, %cst_106 {dimension_numbers = #tpu.dot_dimension_numbers<[1], [0], [0], [1], [0, 0, 1, 1], [], []>} : vector<256x6xf32>, vector<6x8xf32>, vector<256x8xf32> -> vector<256x8xf32>
    %114 = arith.addf %109, %113 : vector<256x8xf32>
    %c80 = arith.constant 80 : index
    %c0_107 = arith.constant 0 : index
    %115 = vector.load %arg13[%c80, %c0_107] : memref<352x6xf32, #tpu.memory_space<vmem>>, vector<256x6xf32>
    %c5_108 = arith.constant 5 : index
    %c0_109 = arith.constant 0 : index
    %c0_110 = arith.constant 0 : index
    %116 = vector.load %arg7[%c5_108, %c0_109, %c0_110] : memref<7x6x8xf32, #tpu.memory_space<vmem>>, vector<1x6x8xf32>
    %117 = vector.shape_cast %116 : vector<1x6x8xf32> to vector<6x8xf32>
    %cst_111 = arith.constant dense<0.000000e+00> : vector<256x8xf32>
    %118 = tpu.matmul %115, %117, %cst_111 {dimension_numbers = #tpu.dot_dimension_numbers<[1], [0], [0], [1], [0, 0, 1, 1], [], []>} : vector<256x6xf32>, vector<6x8xf32>, vector<256x8xf32> -> vector<256x8xf32>
    %119 = arith.addf %114, %118 : vector<256x8xf32>
    %c96 = arith.constant 96 : index
    %c0_112 = arith.constant 0 : index
    %120 = vector.load %arg13[%c96, %c0_112] : memref<352x6xf32, #tpu.memory_space<vmem>>, vector<256x6xf32>
    %c6_113 = arith.constant 6 : index
    %c0_114 = arith.constant 0 : index
    %c0_115 = arith.constant 0 : index
    %121 = vector.load %arg7[%c6_113, %c0_114, %c0_115] : memref<7x6x8xf32, #tpu.memory_space<vmem>>, vector<1x6x8xf32>
    %122 = vector.shape_cast %121 : vector<1x6x8xf32> to vector<6x8xf32>
    %cst_116 = arith.constant dense<0.000000e+00> : vector<256x8xf32>
    %123 = tpu.matmul %120, %122, %cst_116 {dimension_numbers = #tpu.dot_dimension_numbers<[1], [0], [0], [1], [0, 0, 1, 1], [], []>} : vector<256x6xf32>, vector<6x8xf32>, vector<256x8xf32> -> vector<256x8xf32>
    %124 = arith.addf %119, %123 : vector<256x8xf32>
    %c0_117 = arith.constant 0 : index
    %c0_118 = arith.constant 0 : index
    %125 = vector.load %arg8[%c0_117, %c0_118] : memref<1x8xf32, #tpu.memory_space<vmem>>, vector<1x8xf32>
    %126 = vector.broadcast %125 : vector<1x8xf32> to vector<256x8xf32>
    %127 = arith.addf %124, %126 : vector<256x8xf32>
    %cst_119 = arith.constant 0.000000e+00 : f32
    %128 = vector.broadcast %cst_119 : f32 to vector<256x8xf32>
    %129 = arith.maximumf %127, %128 : vector<256x8xf32>
    %c0_120 = arith.constant 0 : index
    %c0_121 = arith.constant 0 : index
    %130 = vector.load %arg9[%c0_120, %c0_121] : memref<8x16xf32, #tpu.memory_space<vmem>>, vector<8x16xf32>
    %cst_122 = arith.constant dense<0.000000e+00> : vector<256x16xf32>
    %131 = tpu.matmul %9, %130, %cst_122 {dimension_numbers = #tpu.dot_dimension_numbers<[1], [0], [0], [1], [0, 0, 1, 1], [], []>} : vector<256x8xf32>, vector<8x16xf32>, vector<256x16xf32> -> vector<256x16xf32>
    %c0_123 = arith.constant 0 : index
    %c0_124 = arith.constant 0 : index
    %132 = vector.load %arg10[%c0_123, %c0_124] : memref<8x16xf32, #tpu.memory_space<vmem>>, vector<8x16xf32>
    %cst_125 = arith.constant dense<0.000000e+00> : vector<256x16xf32>
    %133 = tpu.matmul %129, %132, %cst_125 {dimension_numbers = #tpu.dot_dimension_numbers<[1], [0], [0], [1], [0, 0, 1, 1], [], []>} : vector<256x8xf32>, vector<8x16xf32>, vector<256x16xf32> -> vector<256x16xf32>
    %134 = arith.addf %131, %133 : vector<256x16xf32>
    %135 = arith.addf %134, %13 : vector<256x16xf32>
    %cst_126 = arith.constant 0.000000e+00 : f32
    %136 = vector.broadcast %cst_126 : f32 to vector<256x16xf32>
    %137 = arith.maximumf %135, %136 : vector<256x16xf32>
    %c0_127 = arith.constant 0 : index
    %c0_128 = arith.constant 0 : index
    %c0_129 = arith.constant 0 : index
    %138 = vector.load %arg11[%c0_127, %c0_128, %c0_129] : memref<1x256x16xf32, #tpu.memory_space<vmem>>, vector<1x256x16xf32>
    %139 = vector.shape_cast %138 : vector<1x256x16xf32> to vector<256x16xf32>
    %140 = vector.shape_cast %137 : vector<256x16xf32> to vector<1x256x16xf32>
    tpu.vector_store %arg11[%c0_127, %c0_128, %c0_129], %140 {strides = array<i32>} : memref<1x256x16xf32, #tpu.memory_space<vmem>>, vector<1x256x16xf32>,
    return
  }
  func.func @transform_0(%arg0: i32) -> (i32, i32, i32) {
    %c0_i32 = arith.constant 0 : i32
    %c0_i32_0 = arith.constant 0 : i32
    %c0_i32_1 = arith.constant 0 : i32
    return %arg0, %c0_i32, %c0_i32_0 : i32, i32, i32
  }
  func.func @transform_1(%arg0: i32) -> (i32, i32) {
    %c0_i32 = arith.constant 0 : i32
    %c0_i32_0 = arith.constant 0 : i32
    %c0_i32_1 = arith.constant 0 : i32
    return %c0_i32, %c0_i32_0 : i32, i32
  }
  func.func @transform_2(%arg0: i32) -> (i32, i32) {
    %c0_i32 = arith.constant 0 : i32
    %c0_i32_0 = arith.constant 0 : i32
    %c0_i32_1 = arith.constant 0 : i32
    return %c0_i32, %c0_i32_0 : i32, i32
  }
  func.func @transform_3(%arg0: i32) -> (i32, i32, i32) {
    %c0_i32 = arith.constant 0 : i32
    %c0_i32_0 = arith.constant 0 : i32
    %c0_i32_1 = arith.constant 0 : i32
    %c0_i32_2 = arith.constant 0 : i32
    return %c0_i32, %c0_i32_0, %c0_i32_1 : i32, i32, i32
  }
  func.func @transform_4(%arg0: i32) -> (i32, i32) {
    %c0_i32 = arith.constant 0 : i32
    %c0_i32_0 = arith.constant 0 : i32
    %c0_i32_1 = arith.constant 0 : i32
    return %c0_i32, %c0_i32_0 : i32, i32
  }
  func.func @transform_5(%arg0: i32) -> (i32, i32, i32) {
    %c0_i32 = arith.constant 0 : i32
    %c0_i32_0 = arith.constant 0 : i32
    %c0_i32_1 = arith.constant 0 : i32
    %c0_i32_2 = arith.constant 0 : i32
    return %c0_i32, %c0_i32_0, %c0_i32_1 : i32, i32, i32
  }
  func.func @transform_6(%arg0: i32) -> (i32, i32, i32) {
    %c0_i32 = arith.constant 0 : i32
    %c0_i32_0 = arith.constant 0 : i32
    %c0_i32_1 = arith.constant 0 : i32
    %c0_i32_2 = arith.constant 0 : i32
    return %c0_i32, %c0_i32_0, %c0_i32_1 : i32, i32, i32
  }
  func.func @transform_7(%arg0: i32) -> (i32, i32) {
    %c0_i32 = arith.constant 0 : i32
    %c0_i32_0 = arith.constant 0 : i32
    %c0_i32_1 = arith.constant 0 : i32
    return %c0_i32, %c0_i32_0 : i32, i32
  }
  func.func @transform_8(%arg0: i32) -> (i32, i32) {
    %c0_i32 = arith.constant 0 : i32
    %c0_i32_0 = arith.constant 0 : i32
    %c0_i32_1 = arith.constant 0 : i32
    return %c0_i32, %c0_i32_0 : i32, i32
  }
  func.func @transform_9(%arg0: i32) -> (i32, i32) {
    %c0_i32 = arith.constant 0 : i32
    %c0_i32_0 = arith.constant 0 : i32
    %c0_i32_1 = arith.constant 0 : i32
    return %c0_i32, %c0_i32_0 : i32, i32
  }
  func.func @transform_10(%arg0: i32) -> (i32, i32, i32) {
    %c0_i32 = arith.constant 0 : i32
    %c0_i32_0 = arith.constant 0 : i32
    %c0_i32_1 = arith.constant 0 : i32
    return %arg0, %c0_i32, %c0_i32_0 : i32, i32, i32
  }
}

</mosaic_0001>

<bundles_post_ra>
// kernel: inception_b_res_forward.1
= control target key start
LH: loop header
LB: loop body
LE: loop exit
PB: predicated region body
PF: predicated region fallthrough
CT: control target
= control target key end

     0   :  { %s7485_s13 = smov 0   ;;  %s10624_s0 = inlined_call_operand.vmem [shape: f32[2,256,4], index: 0, kind: input, shape index: {}]   ;;  %s10625_s1 = inlined_call_operand.vmem [shape: f32[4,30], index: 1, kind: input, shape index: {}]   ;;  %s10626_s2 = inlined_call_operand.vmem [shape: f32[1,30], index: 2, kind: input, shape index: {}]   ;;  %s10627_s3 = inlined_call_operand.vmem [shape: f32[7,6,6], index: 3, kind: input, shape index: {}]   ;;  %s10628_s4 = inlined_call_operand.vmem [shape: f32[1,6], index: 4, kind: input, shape index: {}]   ;;  %s10629_s5 = inlined_call_operand.vmem [shape: f32[7,256,1], index: 5, kind: input, shape index: {}]   ;;  %s10630_s6 = inlined_call_operand.vmem [shape: f32[7,6,8], index: 6, kind: input, shape index: {}]   ;;  %s10631_s7 = inlined_call_operand.vmem [shape: f32[1,8], index: 7, kind: input, shape index: {}]   ;;  %s10632_s8 = inlined_call_operand.vmem [shape: f32[8,16], index: 8, kind: input, shape index: {}]   ;;  %s10633_s9 = inlined_call_operand.vmem [shape: f32[8,16], index: 9, kind: input, shape index: {}]   ;;  %s10634_s10 = inlined_call_operand.vmem [shape: f32[2,256,16], index: 10, kind: output, shape index: {}]  }
   0x1 LB: > { %s6648_s14 = sadd.s32 4294967295, %s7424_s13   ;;  %p6652_p0 = scmp.ge.s32.totalorder %s7424_s13, 1  ;;  %s7424_s13 = sphi %s7485_s13, %s20_s13  }
   0x2   : > { %p312_p1 = scmp.lt.s32.totalorder %s7424_s13, 3 }
   0x4   : > { %p313_p2 = pnand %p6652_p0, %p312_p1 }
   0x6   : > { %316 = sbr.rel (%p313_p2) target bundleno = 1576 (0x628), region = 60 }
   0xb   : > { %v392_v0 = vld [vmem:[%s10625_s1] sm:$0xf]  ;;  %vm494_vm0 = vcmask 1043456   ;;  %p350_p3 = scmp.lt.s32.totalorder %s6648_s14, 1  ;;  %v6691_v1 = vld [vmem:[%s10629_s5 + $0x108] sm:$0xff]  ;;  %v7426_v2 = vmov 0  }
   0xc   : > { %6657 = vmatpush.msk.msra.mxu0 %vm494_vm0, %v392_v0  ;;  %7392 = vmatpush.msk.msra.mxu1 %vm494_vm0, %v392_v0  ;;  %v839_v3 = vld [vmem:[%s10629_s5] sm:$0xff]  ;;  %v840_v4 = vld [vmem:[%s10629_s5 + $0x8] sm:$0xff]  ;;  %vm397_vm1 = vcmask 31744   ;;  %v6692_v7 = vld [vmem:[%s10629_s5 + $0x110] sm:$0xff]  ;;  %s7427_s27 = smov 120   ;;  %vm1419_vm2 = vcmask 1045504  }
   0xd   : > { %s11031_s14 = smov (!%p350_p3, %s6648_s14), 1  ;;  %7409 = vset.pattern.permute.xlu1 %v7426_v2  ;;  %7407 = vset.pattern.permute.xlu2 %v7426_v2  ;;  %v6690_v8 = vld [vmem:[%s10629_s5 + $0x100] sm:$0xff]  ;;  %v842_v9 = vld [vmem:[%s10629_s5 + $0x18] sm:$0xff]  ;;  %v841_v13 = vld [vmem:[%s10629_s5 + $0x10] sm:$0xff]  ;;  %vm643_vm3 = vcmask 43008   ;;  %vm773_vm4 = vcmask 48128  }
   0xe   : > { %1136 = vperm.xlu1 %7409, %v6691_v1   ;;  %873 = vperm.xlu2 %7407, %v839_v3   ;;  %s7390_s23 = sshll.u32 %s11031_s14, 8  ;;  %v6693_v12 = vld [vmem:[%s10629_s5 + $0x118] sm:$0xff]  ;;  %v6790_v14 = vld [vmem:[%s10629_s5 + $0x208] sm:$0xff]  ;;  %v843_v17 = vld [vmem:[%s10629_s5 + $0x20] sm:$0xff]  ;;  %s7429_s20 = smov 114   ;;  %vm5981_vm5 = vcmask 64512  }
   0xf   : > { %7408 = vset.pattern.permute.xlu0 %v7426_v2  ;;  %7393 = vmatpush.msk.msra.mxu2 %vm494_vm0, %v392_v0  ;;  %s7516_s26 = scalar_lea.vmem %s10624_s0, %s7390_s23  ;;  %v6789_v18 = vld [vmem:[%s10629_s5 + $0x200] sm:$0xff]  ;;  %v6695_v19 = vld [vmem:[%s10629_s5 + $0x128] sm:$0xff]  ;;  %v6791_v22 = vld [vmem:[%s10629_s5 + $0x210] sm:$0xff]  ;;  %vm6560_vm6 = vcmask 130048  }
  0x10   : > { %878 = vperm.xlu0 %7408, %v840_v4   ;;  %7394 = vmatpush.msk.msra.mxu3 %vm494_vm0, %v392_v0  ;;  %v360_v5 = vld [vmem:[%s7516_s26] sm:$0xff]  ;;  %v361_v10 = vld [vmem:[%s7516_s26 + $0x8] sm:$0xff]  ;;  %v362_v15 = vld [vmem:[%s7516_s26 + $0x10] sm:$0xff] }
  0x11   : > { %v368_v6 = vld [vmem:[%s7516_s26 + $0x40] sm:$0xff]  ;;  %6658 = vmatmul.msk.f32.vlgmr.msra.gmra.mxu0 %vm397_vm1, %v360_v5  ;;  %v369_v11 = vld [vmem:[%s7516_s26 + $0x48] sm:$0xff]  ;;  %v370_v16 = vld [vmem:[%s7516_s26 + $0x50] sm:$0xff] }
  0x12   : > { %6666 = vmatmul.msk.f32.vlgmr.msra.gmra.mxu1 %vm397_vm1, %v368_v6  ;;  %v363_v20 = vld [vmem:[%s7516_s26 + $0x18] sm:$0xff]  ;;  %v6694_v23 = vld [vmem:[%s10629_s5 + $0x120] sm:$0xff]  ;;  %v845_v24 = vld [vmem:[%s10629_s5 + $0x30] sm:$0xff] }
  0x13   : > { %v371_v21 = vld [vmem:[%s7516_s26 + $0x58] sm:$0xff]  ;;  %v364_v25 = vld [vmem:[%s7516_s26 + $0x20] sm:$0xff]  ;;  %v6696_v28 = vld [vmem:[%s10629_s5 + $0x130] sm:$0xff] }
  0x14   : > { %v372_v26 = vld [vmem:[%s7516_s26 + $0x60] sm:$0xff]  ;;  %v844_v29 = vld [vmem:[%s10629_s5 + $0x28] sm:$0xff]  ;;  %v846_v34 = vld [vmem:[%s10629_s5 + $0x38] sm:$0xff] }
  0x15   : > { %v376_v27 = vld [vmem:[%s7516_s26 + $0x80] sm:$0xff]  ;;  %v377_v31 = vld [vmem:[%s7516_s26 + $0x88] sm:$0xff]  ;;  %v6792_v35 = vld [vmem:[%s10629_s5 + $0x218] sm:$0xff] }
  0x16   : > { %1141 = vperm.xlu1 %7409, %v6692_v7   ;;  %1131 = vperm.xlu2 %7407, %v6690_v8   ;;  %v6793_v30 = vld [vmem:[%s10629_s5 + $0x220] sm:$0xff]  ;;  %v365_v32 = vld [vmem:[%s7516_s26 + $0x28] sm:$0xff]  ;;  %v378_v37 = vld [vmem:[%s7516_s26 + $0x90] sm:$0xff] }
  0x17   : > { %6674 = vmatmul.msk.f32.vlgmr.msra.gmra.mxu2 %vm397_vm1, %v376_v27  ;;  %v373_v33 = vld [vmem:[%s7516_s26 + $0x68] sm:$0xff]  ;;  %v6698_v36 = vld [vmem:[%s10629_s5 + $0x140] sm:$0xff]  ;;  %v366_v38 = vld [vmem:[%s7516_s26 + $0x30] sm:$0xff] }
  0x18   : > { %888 = vperm.xlu0 %7408, %v842_v9   ;;  %v374_v39 = vld [vmem:[%s7516_s26 + $0x70] sm:$0xff]  ;;  %v6794_v40 = vld [vmem:[%s10629_s5 + $0x228] sm:$0xff]  ;;  %v6697_v41 = vld [vmem:[%s10629_s5 + $0x138] sm:$0xff] }
  0x19   : > { %6659 = vmatmul.msk.f32.gmra.mxu0 %vm397_vm1, %v361_v10  ;;  %v367_v42 = vld [vmem:[%s7516_s26 + $0x38] sm:$0xff]  ;;  %v6699_v44 = vld [vmem:[%s10629_s5 + $0x148] sm:$0xff]  ;;  %v847_v45 = vld [vmem:[%s10629_s5 + $0x40] sm:$0xff] }
  0x1a   : > { %6667 = vmatmul.msk.f32.gmra.mxu1 %vm397_vm1, %v369_v11  ;;  %v379_v43 = vld [vmem:[%s7516_s26 + $0x98] sm:$0xff]  ;;  %v6795_v46 = vld [vmem:[%s10629_s5 + $0x230] sm:$0xff]  ;;  %v380_v48 = vld [vmem:[%s7516_s26 + $0xa0] sm:$0xff] }
  0x1b   : > { %v375_v47 = vld [vmem:[%s7516_s26 + $0x78] sm:$0xff]  ;;  %v381_v49 = vld [vmem:[%s7516_s26 + $0xa8] sm:$0xff]  ;;  %v382_v50 = vld [vmem:[%s7516_s26 + $0xb0] sm:$0xff] }
  0x1c   : > { %v7637_v51 = vld [vmem:[%s10626_s2] ss:$0 sm:$0xff]  ;;  %v383_v56 = vld [vmem:[%s7516_s26 + $0xb8] sm:$0xff]  ;;  %v385_v8 = vld [vmem:[%s7516_s26 + $0xc8] sm:$0xff] }
  0x1d   : > { %v384_v63 = vld [vmem:[%s7516_s26 + $0xc0] sm:$0xff] }
  0x1e   : > { %1146 = vperm.xlu1 %7409, %v6693_v12   ;;  %883 = vperm.xlu2 %7407, %v841_v13   ;;  %v1063_v27 = vld [vmem:[%s10627_s3] sm:$0x3f] }
  0x1f   : > { %6675 = vmatmul.msk.f32.gmra.mxu2 %vm397_vm1, %v377_v31  ;;  %6682 = vmatmul.msk.f32.vlgmr.msra.gmra.mxu3 %vm397_vm1, %v384_v63 }
  0x20   : > { %1820 = vperm.xlu0 %7408, %v6790_v14   ;;  %v6700_v14 = vld [vmem:[%s10629_s5 + $0x150] sm:$0xff]  ;;  %6756 = vmatpush.msk.msrb.mxu2 %vm1419_vm2, %v1063_v27  ;;  %v852_v27 = vld [vmem:[%s10629_s5 + $0x68] sm:$0xff] }
  0x21   : > { %6660 = vmatmul.msk.f32.gmra.mxu0 %vm397_vm1, %v362_v15 }
  0x22   : > { %6668 = vmatmul.msk.f32.gmra.mxu1 %vm397_vm1, %v370_v16  ;;  %v848_v16 = vld [vmem:[%s10629_s5 + $0x48] sm:$0xff] }
  0x26   : > { %893 = vperm.xlu1 %7409, %v843_v17   ;;  %1815 = vperm.xlu2 %7407, %v6789_v18   ;;  %v386_v17 = vld [vmem:[%s7516_s26 + $0xd0] sm:$0xff] }
  0x27   : > { %6676 = vmatmul.msk.f32.gmra.mxu2 %vm397_vm1, %v378_v37  ;;  %6683 = vmatmul.msk.f32.gmra.mxu3 %vm397_vm1, %v385_v8  ;;  %v6722_v37 = vld [vmem:[%s10627_s3 + $0x8] sm:$0x3f]  ;;  %v851_v8 = vld [vmem:[%s10629_s5 + $0x60] sm:$0xff] }
  0x28   : > { %1156 = vperm.xlu0 %7408, %v6695_v19   ;;  %6723 = vmatpush.msk.msrb.mxu1 %vm1419_vm2, %v6722_v37  ;;  %v853_v37 = vld [vmem:[%s10629_s5 + $0x70] sm:$0xff] }
  0x29   : > { %6661 = vmatmul.msk.f32.gmra.mxu0 %vm397_vm1, %v363_v20 }
  0x2a   : > { %6669 = vmatmul.msk.f32.gmra.mxu1 %vm397_vm1, %v371_v21 }
  0x2e   : > { %1825 = vperm.xlu1 %7409, %v6791_v22   ;;  %1151 = vperm.xlu2 %7407, %v6694_v23   ;;  %v849_v22 = vld [vmem:[%s10629_s5 + $0x50] sm:$0xff] }
  0x2f   : > { %6677 = vmatmul.msk.f32.gmra.mxu2 %vm397_vm1, %v379_v43  ;;  %6684 = vmatmul.msk.f32.gmra.mxu3 %vm397_vm1, %v386_v17  ;;  %v390_v17 = vld [vmem:[%s7516_s26 + $0xf0] sm:$0xff] }
  0x30   : > { %903 = vperm.xlu0 %7408, %v845_v24   ;;  %v6796_v24 = vld [vmem:[%s10629_s5 + $0x238] sm:$0xff] }
  0x31   : > { %6662 = vmatmul.msk.f32.gmra.mxu0 %vm397_vm1, %v364_v25 }
  0x32   : > { %6670 = vmatmul.msk.f32.gmra.mxu1 %vm397_vm1, %v372_v26 }
  0x36   : > { %1161 = vperm.xlu1 %7409, %v6696_v28   ;;  %898 = vperm.xlu2 %7407, %v844_v29   ;;  %v387_v28 = vld [vmem:[%s7516_s26 + $0xd8] sm:$0xff] }
  0x37   : > { %6678 = vmatmul.msk.f32.gmra.mxu2 %vm397_vm1, %v380_v48  ;;  %6685 = vmatmul.msk.f32.gmra.mxu3 %vm397_vm1, %v387_v28 }
  0x38   : > { %1835 = vperm.xlu0 %7408, %v6793_v30  }
  0x39   : > { %6663 = vmatmul.msk.f32.gmra.mxu0 %vm397_vm1, %v365_v32  ;;  %v850_v32 = vld [vmem:[%s10629_s5 + $0x58] sm:$0xff] }
  0x3a   : > { %6671 = vmatmul.msk.f32.gmra.mxu1 %vm397_vm1, %v373_v33 }
  0x3e   : > { %908 = vperm.xlu1 %7409, %v846_v34   ;;  %1830 = vperm.xlu2 %7407, %v6792_v35  }
  0x3f   : > { %6679 = vmatmul.msk.f32.gmra.mxu2 %vm397_vm1, %v381_v49 }
  0x40   : > { %1171 = vperm.xlu0 %7408, %v6698_v36  }
  0x41   : > { %6664 = vmatmul.msk.f32.gmra.mxu0 %vm397_vm1, %v366_v38  ;;  %v388_v38 = vld [vmem:[%s7516_s26 + $0xe0] sm:$0xff] }
  0x42   : > { %6672 = vmatmul.msk.f32.gmra.mxu1 %vm397_vm1, %v374_v39  ;;  %6686 = vmatmul.msk.f32.gmra.mxu3 %vm397_vm1, %v388_v38  ;;  %v6800_v38 = vld [vmem:[%s10629_s5 + $0x258] sm:$0xff] }
  0x46   : > { %1840 = vperm.xlu1 %7409, %v6794_v40   ;;  %1166 = vperm.xlu2 %7407, %v6697_v41  }
  0x47   : > { %6680 = vmatmul.msk.f32.gmra.mxu2 %vm397_vm1, %v382_v50 }
  0x49   : > { %6665 = vmatmul.msk.f32.gmra.mxu0 %vm397_vm1, %v367_v42 }
  0x4a   : > { %6673 = vmatmul.msk.f32.gmra.mxu1 %vm397_vm1, %v375_v47 }
  0x4e   : > { %1176 = vperm.xlu1 %7409, %v6699_v44   ;;  %913 = vperm.xlu2 %7407, %v847_v45  }
  0x4f   : > { %6681 = vmatmul.msk.f32.gmra.mxu2 %vm397_vm1, %v383_v56  ;;  %v6701_v56 = vld [vmem:[%s10629_s5 + $0x158] sm:$0xff] }
  0x56   : > { %1845 = vperm.xlu2 %7407, %v6795_v46  }
  0x68   : > { %v7658_v0 = vpop.permute.xlu2 %873 }
  0x70   : > { %v7689_v10 = vpop.permute.xlu2 %1131 }
  0x78   : > { %v7706_v20 = vpop.permute.xlu2 %883 }
  0x80   : > { %v7724_v26 = vpop.permute.xlu1 %1136  ;;  %v7739_v34 = vpop.permute.xlu2 %1815 }
  0x82   : > { %v7766_v44 = vpop.permute.xlu0 %878 }
  0x88   : > { %v7757_v39 = vpop.permute.xlu1 %1141  ;;  %v7770_v47 = vpop.permute.xlu2 %1151 }
  0x8e   : > { %v515_v52 = vpop.f32.mrf.mxu0 }
  0x8f   : > { %v539_v53 = vpop.f32.mrf.mxu1  ;;  %v7640_v54 = vadd.f32 %v7637_v51, %v515_v52  ;;  %v6797_v52 = vld [vmem:[%s10629_s5 + $0x240] sm:$0xff] }
  0x90   : > { %v7649_v57 = vadd.f32 %v7637_v51, %v539_v53  ;;  %v7784_v50 = vpop.permute.xlu1 %1146  ;;  %v7799_v63 = vpop.permute.xlu2 %898 }
  0x91   : > { %v10666_v55 = vmax.f32 %v7640_v54, 0.0 }
  0x92   : > { %10701 = vst [vmem:[#allocation4_spill] sm:$0xff] %v7649_v57  ;;  %v10644_v61 = vmax.f32 %v7649_v57, 0.0 }
  0x93   : > { %677 = vrot.lane.b32.xlu0 %v10666_v55, %s7427_s27 }
  0x96   : > { %v518_v58 = vpop.f32.mrf.mxu0 }
  0x97   : > { %v542_v59 = vpop.f32.mrf.mxu1  ;;  %v7667_v1 = vadd.f32 %v7637_v51, %v518_v58  ;;  %v7793_v58 = vpop.permute.xlu0 %888 }
  0x98   : > { %v7652_v60 = vadd.f32 %v7637_v51, %v542_v59  ;;  %v389_v59 = vld [vmem:[%s7516_s26 + $0xe8] sm:$0xff] }
  0x99   : > { %v10665_v9 = vmax.f32 %v7667_v1, 0.0  ;;  %6687 = vmatmul.msk.f32.gmra.mxu3 %vm397_vm1, %v389_v59 }
  0x9a   : > { %v10643_v62 = vmax.f32 %v7652_v60, 0.0 }
  0x9b   : > { %693 = vrot.lane.b32.xlu0 %v10644_v61, %s7427_s27 }
  0x9c   : > { %695 = vrot.lane.b32.xlu1 %v10643_v62, %s7427_s27 }
  0x9e   : > { %v521_v2 = vpop.f32.mrf.mxu0 }
  0x9f   : > { %v545_v3 = vpop.f32.mrf.mxu1  ;;  %v7670_v4 = vadd.f32 %v7637_v51, %v521_v2  ;;  %v6798_v2 = vld [vmem:[%s10629_s5 + $0x248] sm:$0xff] }
  0xa0   : > { %v7673_v5 = vadd.f32 %v7637_v51, %v545_v3  ;;  %v6702_v3 = vld [vmem:[%s10629_s5 + $0x160] sm:$0xff] }
  0xa1   : > { %10702 = vst [vmem:[#allocation5_spill] sm:$0xff] %v7670_v4  ;;  %v10664_v6 = vmax.f32 %v7670_v4, 0.0  ;;  %6688 = vmatmul.msk.f32.gmra.mxu3 %vm397_vm1, %v390_v17 }
  0xa2   : > { %10703 = vst [vmem:[#allocation6_spill] sm:$0xff] %v7673_v5  ;;  %v10642_v7 = vmax.f32 %v7673_v5, 0.0 }
  0xa3   : > { %679 = vrot.lane.b32.xlu0 %v10665_v9, %s7427_s27 }
  0xa4   : > { %697 = vrot.lane.b32.xlu2 %v10642_v7, %s7427_s27  ;;  %681 = vrot.lane.b32.xlu1 %v10664_v6, %s7427_s27 }
  0xa6   : > { %v524_v11 = vpop.f32.mrf.mxu0 }
  0xa7   : > { %v548_v12 = vpop.f32.mrf.mxu1  ;;  %v7692_v13 = vadd.f32 %v7637_v51, %v524_v11 }
  0xa8   : > { %v7733_v29 = vadd.f32 %v7637_v51, %v548_v12  ;;  %v7811_v12 = vpop.permute.xlu1 %893 }
  0xa9   : > { %v10663_v15 = vmax.f32 %v7692_v13, 0.0 }
  0xaa   : > { %10705 = vst [vmem:[#allocation8_spill] sm:$0xff] %v7733_v29  ;;  %v10641_v35 = vmax.f32 %v7733_v29, 0.0 }
  0xab   : > { %918 = vperm.xlu0 %7408, %v848_v16   ;;  %v6821_v16 = vld [vmem:[%s10627_s3 + $0x10] sm:$0x3f] }
  0xac   : > { %1181 = vperm.xlu2 %7407, %v6700_v14   ;;  %683 = vrot.lane.b32.xlu1 %v10663_v15, %s7427_s27 }
  0xad   : > { %6822 = vmatpush.msk.msrb.mxu3 %vm1419_vm2, %v6821_v16  ;;  %v6704_v16 = vld [vmem:[%s10629_s5 + $0x170] sm:$0xff] }
  0xae   : > { %v527_v18 = vpop.f32.mrf.mxu0 }
  0xaf   : > { %v551_v19 = vpop.f32.mrf.mxu1  ;;  %v7709_v21 = vadd.f32 %v7637_v51, %v527_v18  ;;  %v7820_v18 = vpop.permute.xlu0 %1820 }
  0xb0   : > { %v7722_v25 = vadd.f32 %v7637_v51, %v551_v19  ;;  %v7824_v19 = vpop.permute.xlu2 %1830  ;;  %v7833_v28 = vpop.permute.xlu1 %1825 }
  0xb1   : > { %v10649_v23 = vmax.f32 %v7709_v21, 0.0 }
  0xb2   : > { %10704 = vst [vmem:[#allocation7_spill] sm:$0xff] %v7722_v25  ;;  %v10640_v31 = vmax.f32 %v7722_v25, 0.0 }
  0xb3   : > { %1850 = vperm.xlu0 %7408, %v6796_v24   ;;  %v6703_v24 = vld [vmem:[%s10629_s5 + $0x168] sm:$0xff] }
  0xb4   : > { %685 = vrot.lane.b32.xlu2 %v10649_v23, %s7427_s27  ;;  %923 = vperm.xlu1 %7409, %v849_v22  }
  0xb6   : > { %v530_v30 = vpop.f32.mrf.mxu0 }
  0xb7   : > { %v554_v33 = vpop.f32.mrf.mxu1  ;;  %v7760_v40 = vadd.f32 %v7637_v51, %v530_v30  ;;  %v563_v30 = vpop.f32.mrf.mxu2 }
  0xb8   : > { %v7746_v36 = vadd.f32 %v7637_v51, %v554_v33  ;;  %v7839_v33 = vpop.permute.xlu0 %1156 }
  0xb9   : > { %v10647_v46 = vmax.f32 %v7760_v40, 0.0 }
  0xba   : > { %10706 = vst [vmem:[#allocation9_spill] sm:$0xff] %v7746_v36  ;;  %v10639_v43 = vmax.f32 %v7746_v36, 0.0 }
  0xbb   : > { %699 = vrot.lane.b32.xlu0 %v10641_v35, %s7427_s27 }
  0xbc   : > { %928 = vperm.xlu2 %7407, %v850_v32   ;;  %701 = vrot.lane.b32.xlu1 %v10640_v31, %s7427_s27  ;;  %v391_v32 = vld [vmem:[%s7516_s26 + $0xf8] sm:$0xff] }
  0xbd   : > { %6689 = vmatmul.msk.f32.gmra.mxu3 %vm397_vm1, %v391_v32  ;;  %v855_v32 = vld [vmem:[%s10629_s5 + $0x80] sm:$0xff] }
  0xbe   : > { %v533_v41 = vpop.f32.mrf.mxu0 }
  0xbf   : > { %v7763_v42 = vadd.f32 %v7637_v51, %v533_v41  ;;  %v557_v11 = vpop.f32.mrf.mxu1  ;;  %v7848_v41 = vpop.permute.xlu2 %1166 }
  0xc0   : > { %v7814_v14 = vadd.f32 %v7637_v51, %v557_v11  ;;  %v566_v59 = vpop.f32.mrf.mxu2  ;;  %v7862_v11 = vpop.permute.xlu0 %903 }
  0xc1   : > { %v10646_v45 = vmax.f32 %v7763_v42, 0.0 }
  0xc2   : > { %10708 = vst [vmem:[#allocation11_spill] sm:$0xff] %v7814_v14  ;;  %v10638_v22 = vmax.f32 %v7814_v14, 0.0 }
  0xc3   : > { %687 = vrot.lane.b32.xlu0 %v10647_v46, %s7427_s27 }
  0xc4   : > { %703 = vrot.lane.b32.xlu2 %v10639_v43, %s7427_s27  ;;  %689 = vrot.lane.b32.xlu1 %v10646_v45, %s7427_s27  ;;  %v6802_v43 = vld [vmem:[%s10629_s5 + $0x268] sm:$0xff] }
  0xc6   : > { %v536_v48 = vpop.f32.mrf.mxu0 }
  0xc7   : > { %v7782_v49 = vadd.f32 %v7637_v51, %v536_v48  ;;  %v6799_v48 = vld [vmem:[%s10629_s5 + $0x250] sm:$0xff]  ;;  %v7868_v17 = vpop.permute.xlu2 %913 }
  0xc9   : > { %10707 = vst [vmem:[#allocation10_spill] sm:$0xff] %v7782_v49  ;;  %v10645_v53 = vmax.f32 %v7782_v49, 0.0 }
  0xcb   : > { %1186 = vperm.xlu0 %7408, %v6701_v56   ;;  %v7856_v56 = vpop.permute.xlu1 %1161 }
  0xcc   : > { %691 = vrot.lane.b32.xlu2 %v10645_v53, %s7427_s27  ;;  %1855 = vperm.xlu1 %7409, %v6797_v52   ;;  %v7854_v52 = vadd.f32 %v7637_v51, %v563_v30  ;;  %v6801_v30 = vld [vmem:[%s10629_s5 + $0x260] sm:$0xff] }
  0xce   : > { %10709 = vst [vmem:[#allocation12_spill] sm:$0xff] %v7854_v52 }
  0xd3   : > { %933 = vperm.xlu0 %7408, %v851_v8   ;;  %v7428_v8 = vmov 0.0  }
  0xd4   : > { %1860 = vperm.xlu2 %7407, %v6798_v2   ;;  %1191 = vperm.xlu1 %7409, %v6702_v3   ;;  %v10635_v2 = vmax.f32 %v7854_v52, 0.0  ;;  %v6705_v3 = vld [vmem:[%s10629_s5 + $0x178] sm:$0xff]  ;;  %644 = vst.msk [vmem:[#allocation2] sm:$0x7] %vm643_vm3, %v7428_v8 }
  0xd5   : > { %806 = vst.msk [vmem:[#allocation2 + $0x103] sm:$0x7] %vm643_vm3, %v7428_v8 }
  0xd6   : > { %4106 = vst.msk [vmem:[#allocation3] sm:$0xff] %vm773_vm4, %v7428_v8 }
  0xd7   : > { %4107 = vst.msk [vmem:[#allocation3 + $0x8] sm:$0xff] %vm773_vm4, %v7428_v8 }
  0xd8   : > { %4108 = vst.msk [vmem:[#allocation3 + $0x10] sm:$0xff] %vm773_vm4, %v7428_v8 }
  0xd9   : > { %4109 = vst.msk [vmem:[#allocation3 + $0x18] sm:$0xff] %vm773_vm4, %v7428_v8 }
  0xda   : > { %4110 = vst.msk [vmem:[#allocation3 + $0x20] sm:$0xff] %vm773_vm4, %v7428_v8 }
  0xdb   : > { %705 = vrot.lane.b32.xlu0 %v10638_v22, %s7427_s27  ;;  %4111 = vst.msk [vmem:[#allocation3 + $0x28] sm:$0xff] %vm773_vm4, %v7428_v8 }
  0xdc   : > { %1196 = vperm.xlu2 %7407, %v6703_v24   ;;  %938 = vperm.xlu1 %7409, %v852_v27   ;;  %v6855_v24 = vld [vmem:[%s10627_s3 + $0x18] sm:$0x3f]  ;;  %v7882_v27 = vpop.permute.xlu1 %908  ;;  %4144 = vst.msk [vmem:[#allocation3 + $0x130] sm:$0xff] %vm773_vm4, %v7428_v8 }
  0xdd   : > { %6856 = vmatpush.msk.msrb.mxu0 %vm1419_vm2, %v6855_v24  ;;  %4145 = vst.msk [vmem:[#allocation3 + $0x138] sm:$0xff] %vm773_vm4, %v7428_v8  ;;  %v7907_v24 = vadd.f32 %v7637_v51, %v566_v59  ;;  %v6921_v59 = vld [vmem:[%s10627_s3 + $0x20] sm:$0x3f] }
  0xde   : > { %4146 = vst.msk [vmem:[#allocation3 + $0x140] sm:$0xff] %vm773_vm4, %v7428_v8  ;;  %6922 = vmatpush.msk.msra.mxu1 %vm1419_vm2, %v6921_v59 }
  0xdf   : > { %4147 = vst.msk [vmem:[#allocation3 + $0x148] sm:$0xff] %vm773_vm4, %v7428_v8 }
  0xe0   : > { %4148 = vst.msk [vmem:[#allocation3 + $0x150] sm:$0xff] %vm773_vm4, %v7428_v8 }
  0xe1   : > { %4149 = vst.msk [vmem:[#allocation3 + $0x158] sm:$0xff] %vm773_vm4, %v7428_v8 }
  0xe2   : > { %10711 = vst [vmem:[#allocation14_spill] sm:$0xff] %v7907_v24 }
  0xe3   : > { %1865 = vperm.xlu0 %7408, %v6799_v48   ;;  %v7896_v48 = vpop.permute.xlu0 %1835 }
  0xe4   : > { %943 = vperm.xlu2 %7407, %v853_v37   ;;  %1870 = vperm.xlu1 %7409, %v6800_v38   ;;  %v569_v37 = vpop.f32.mrf.mxu2  ;;  %v854_v38 = vld [vmem:[%s10629_s5 + $0x78] sm:$0xff] }
  0xeb   : > { %1201 = vperm.xlu0 %7408, %v6704_v16   ;;  %v7903_v16 = vpop.permute.xlu2 %1845  ;;  %v7929_v8 = vpop.permute.xlu0 %1171 }
  0xec   : > { %709 = vrot.lane.b32.xlu2 %v10635_v2, %s7427_s27  ;;  %1206 = vperm.xlu1 %7409, %v6705_v3   ;;  %v7899_v3 = vadd.f32 %v7637_v51, %v569_v37  ;;  %v7917_v37 = vpop.permute.xlu1 %1840  ;;  %v572_v22 = vpop.f32.mrf.mxu2 }
  0xee   : > { %10710 = vst [vmem:[#allocation13_spill] sm:$0xff] %v7899_v3  ;;  %v10636_v2 = vmax.f32 %v7899_v3, 0.0 }
  0xf3   : > { %948 = vperm.xlu0 %7408, %v854_v38   ;;  %v10637_v38 = vmax.f32 %v7907_v24, 0.0 }
  0xf4   : > { %1875 = vperm.xlu2 %7407, %v6801_v30   ;;  %953 = vperm.xlu1 %7409, %v855_v32   ;;  %v6987_v30 = vld [vmem:[%s10627_s3 + $0x28] sm:$0x3f]  ;;  %v6706_v32 = vld [vmem:[%s10629_s5 + $0x180] sm:$0xff]  ;;  %v7948_v31 = vpop.permute.xlu1 %1176 }
  0xf5   : > { %6988 = vmatpush.msk.msra.mxu2 %vm1419_vm2, %v6987_v30 }
  0xfb   : > { %711 = vrot.lane.b32.xlu0 %v10637_v38, %s7427_s27  ;;  %v560_v38 = vpop.f32.mrf.mxu1 }
  0xfc   : > { %1211 = vperm.xlu2 %7407, %v6706_v32   ;;  %713 = vrot.lane.b32.xlu1 %v10636_v2, %s7427_s27  ;;  %v856_v32 = vld [vmem:[%s10629_s5 + $0x88] sm:$0xff]  ;;  %v6803_v2 = vld [vmem:[%s10629_s5 + $0x270] sm:$0xff]  ;;  %v7943_v59 = vadd.f32 %v7637_v51, %v560_v38 }
  0xfe   : > { %v698_v30 = vpop.permute.xlu2 %697  ;;  %10712 = vst [vmem:[#allocation15_spill] sm:$0xff] %v7943_v59  ;;  %v10651_v62 = vmax.f32 %v7943_v59, 0.0 }
  0xff   : > { %784 = vst.msk [vmem:[#allocation2 + $0x53] sm:$0xff] %vm773_vm4, %v698_v30  ;;  %v7946_v30 = vadd.f32 %v7637_v51, %v572_v22 }
 0x101   : > { %10713 = vst [vmem:[#allocation16_spill] sm:$0xff] %v7946_v30  ;;  %v10648_v61 = vmax.f32 %v7946_v30, 0.0 }
 0x103   : > { %1880 = vperm.xlu0 %7408, %v6802_v43   ;;  %v575_v43 = vpop.f32.mrf.mxu2 }
 0x104   : > { %958 = vperm.xlu2 %7407, %v856_v32   ;;  %1885 = vperm.xlu1 %7409, %v6803_v2   ;;  %v6707_v2 = vld [vmem:[%s10629_s5 + $0x188] sm:$0xff] }
 0x105   : > { %v678_v7 = vpop.permute.xlu0 %677 }
 0x106   : > { %v7950_v35 = vpop.permute.xlu2 %1181  ;;  %774 = vst.msk [vmem:[#allocation2 + $0x3] sm:$0xff] %vm773_vm4, %v678_v7 }
 0x10b   : > { %1216 = vperm.xlu0 %7408, %v6707_v2  }
 0x10c   : > { %715 = vrot.lane.b32.xlu2 %v10648_v61, %s7427_s27  ;;  %707 = vrot.lane.b32.xlu1 %v10651_v62, %s7427_s27 }
 0x10d   : > { %v2251_v38 = vld [vmem:[#allocation2 + $0x3] sm:$0xff]  ;;  %v694_v45 = vpop.permute.xlu0 %693 }
 0x10e   : > { %v696_v22 = vpop.permute.xlu1 %695  ;;  %v686_v7 = vpop.permute.xlu2 %685  ;;  %v1064_v32 = vld [vmem:[#allocation2 + $0x1] sm:$0xff]  ;;  %6857 = vmatmul.msk.f32.vlgmr.msrb.gmra.mxu0 %vm773_vm4, %v2251_v38  ;;  %782 = vst.msk [vmem:[#allocation2 + $0x43] sm:$0xff] %vm773_vm4, %v694_v45  ;;  %v858_v38 = vld [vmem:[%s10629_s5 + $0x98] sm:$0xff] }
 0x10f   : > { %v807_v53 = vld [vmem:[#allocation2] sm:$0xff]  ;;  %783 = vst.msk [vmem:[#allocation2 + $0x4b] sm:$0xff] %vm773_vm4, %v696_v22  ;;  %v1289_v46 = vmul.f32 %v7689_v10, %v1064_v32  ;;  %v6804_v22 = vld [vmem:[%s10629_s5 + $0x278] sm:$0xff]  ;;  %v6708_v10 = vld [vmem:[%s10629_s5 + $0x190] sm:$0xff] }
 0x110   : > { %v1031_v61 = vmul.f32 %v7658_v0, %v807_v53  ;;  %v1748_v23 = vld [vmem:[#allocation2 + $0x2] sm:$0xff]  ;;  %778 = vst.msk [vmem:[#allocation2 + $0x23] sm:$0xff] %vm773_vm4, %v686_v7  ;;  %v857_v0 = vld [vmem:[%s10629_s5 + $0x90] sm:$0xff] }
 0x111   : > { %v1973_v2 = vmul.f32 %v7739_v34, %v1748_v23  ;;  %6724 = vmatmul.msk.f32.vlgmr.msrb.gmra.mxu1 %vm773_vm4, %v1289_v46  ;;  %v7984_v23 = vadd.f32 %v7637_v51, %v575_v43  ;;  %v578_v46 = vpop.f32.mrf.mxu2  ;;  %v7053_v53 = vld [vmem:[%s10627_s3 + $0x30] sm:$0x3f]  ;;  %v6709_v43 = vld [vmem:[%s10629_s5 + $0x198] sm:$0xff] }
 0x112   : > { %6757 = vmatmul.msk.f32.vlgmr.msrb.gmra.mxu2 %vm773_vm4, %v1031_v61  ;;  %7054 = vmatpush.msk.msra.mxu3 %vm1419_vm2, %v7053_v53  ;;  %v8002_v32 = vadd.f32 %v7637_v51, %v578_v46 }
 0x113   : > { %6823 = vmatmul.msk.f32.vlgmr.msrb.gmra.mxu3 %vm773_vm4, %v1973_v2  ;;  %963 = vperm.xlu0 %7408, %v857_v0   ;;  %10714 = vst [vmem:[#allocation17_spill] sm:$0xff] %v7984_v23  ;;  %v10650_v7 = vmax.f32 %v7984_v23, 0.0 }
 0x114   : > { %1890 = vperm.xlu2 %7407, %v6804_v22   ;;  %1221 = vperm.xlu1 %7409, %v6708_v10   ;;  %10715 = vst [vmem:[#allocation18_spill] sm:$0xff] %v8002_v32  ;;  %v10662_v53 = vmax.f32 %v8002_v32, 0.0 }
 0x115   : > { %v680_v45 = vpop.permute.xlu0 %679 }
 0x116   : > { %v7986_v61 = vpop.permute.xlu2 %928  ;;  %v682_v34 = vpop.permute.xlu1 %681  ;;  %775 = vst.msk [vmem:[#allocation2 + $0xb] sm:$0xff] %vm773_vm4, %v680_v45 }
 0x117   : > { %776 = vst.msk [vmem:[#allocation2 + $0x13] sm:$0xff] %vm773_vm4, %v682_v34 }
 0x119   : > { %v581_v62 = vpop.f32.mrf.mxu2 }
 0x11b   : > { %717 = vrot.lane.b32.xlu0 %v10650_v7, %s7427_s27 }
 0x11c   : > { %1226 = vperm.xlu2 %7407, %v6709_v43   ;;  %968 = vperm.xlu1 %7409, %v858_v38  }
 0x11d   : > { %v8008_v10 = vpop.permute.xlu0 %918  ;;  %v2252_v0 = vld [vmem:[#allocation2 + $0xb] sm:$0xff] }
 0x11e   : > { %v704_v2 = vpop.permute.xlu2 %703  ;;  %v684_v22 = vpop.permute.xlu1 %683  ;;  %v1065_v34 = vld [vmem:[#allocation2 + $0x9] sm:$0xff]  ;;  %6858 = vmatmul.msk.f32.gmra.mxu0 %vm773_vm4, %v2252_v0 }
 0x11f   : > { %787 = vst.msk [vmem:[#allocation2 + $0x6b] sm:$0xff] %vm773_vm4, %v704_v2  ;;  %v808_v45 = vld [vmem:[#allocation2 + $0x8] sm:$0xff]  ;;  %v1290_v46 = vmul.f32 %v7724_v26, %v1065_v34  ;;  %v859_v2 = vld [vmem:[%s10629_s5 + $0xa0] sm:$0xff]  ;;  %v8029_v26 = vadd.f32 %v7637_v51, %v581_v62 }
 0x120   : > { %777 = vst.msk [vmem:[#allocation2 + $0x1b] sm:$0xff] %vm773_vm4, %v684_v22  ;;  %v1032_v43 = vmul.f32 %v7766_v44, %v808_v45  ;;  %v1749_v38 = vld [vmem:[#allocation2 + $0xa] sm:$0xff]  ;;  %v6805_v22 = vld [vmem:[%s10629_s5 + $0x280] sm:$0xff]  ;;  %v1750_v45 = vld [vmem:[#allocation2 + $0x12] sm:$0xff] }
 0x121   : > { %v1974_v7 = vmul.f32 %v7820_v18, %v1749_v38  ;;  %6725 = vmatmul.msk.f32.gmra.mxu1 %vm773_vm4, %v1290_v46  ;;  %10716 = vst [vmem:[#allocation19_spill] sm:$0xff] %v8029_v26  ;;  %v1066_v44 = vld [vmem:[#allocation2 + $0x11] sm:$0xff] }
 0x122   : > { %6758 = vmatmul.msk.f32.gmra.mxu2 %vm773_vm4, %v1032_v43  ;;  %v809_v18 = vld [vmem:[#allocation2 + $0x10] sm:$0xff]  ;;  %v10658_v43 = vmax.f32 %v8029_v26, 0.0  ;;  %v1291_v38 = vmul.f32 %v7757_v39, %v1066_v44 }
 0x123   : > { %6824 = vmatmul.msk.f32.gmra.mxu3 %vm773_vm4, %v1974_v7  ;;  %1895 = vperm.xlu0 %7408, %v6805_v22   ;;  %v2253_v7 = vld [vmem:[#allocation2 + $0x13] sm:$0xff]  ;;  %v1033_v62 = vmul.f32 %v7706_v20, %v809_v18  ;;  %v6806_v22 = vld [vmem:[%s10629_s5 + $0x288] sm:$0xff] }
 0x124   : > { %973 = vperm.xlu2 %7407, %v859_v2   ;;  %719 = vrot.lane.b32.xlu1 %v10662_v53, %s7427_s27  ;;  %v1975_v2 = vmul.f32 %v7833_v28, %v1750_v45 }
 0x125   : > { %v8034_v46 = vpop.permute.xlu0 %1850 }
 0x126   : > { %v692_v0 = vpop.permute.xlu2 %691  ;;  %v8031_v34 = vpop.permute.xlu1 %923  ;;  %6859 = vmatmul.msk.f32.gmra.mxu0 %vm773_vm4, %v2253_v7 }
 0x127   : > { %781 = vst.msk [vmem:[#allocation2 + $0x3b] sm:$0xff] %vm773_vm4, %v692_v0  ;;  %v6710_v0 = vld [vmem:[%s10629_s5 + $0x1a0] sm:$0xff]  ;;  %v810_v39 = vld [vmem:[#allocation2 + $0x18] sm:$0xff] }
 0x128   : > { %v1067_v20 = vld [vmem:[#allocation2 + $0x19] sm:$0xff] }
 0x129   : > { %6726 = vmatmul.msk.f32.gmra.mxu1 %vm773_vm4, %v1291_v38  ;;  %v1751_v18 = vld [vmem:[#allocation2 + $0x1a] sm:$0xff]  ;;  %v1292_v38 = vmul.f32 %v7784_v50, %v1067_v20  ;;  %v860_v50 = vld [vmem:[%s10629_s5 + $0xa8] sm:$0xff]  ;;  %v584_v20 = vpop.f32.mrf.mxu2 }
 0x12a   : > { %6759 = vmatmul.msk.f32.gmra.mxu2 %vm773_vm4, %v1033_v62  ;;  %v2254_v7 = vld [vmem:[#allocation2 + $0x1b] sm:$0xff]  ;;  %v1034_v62 = vmul.f32 %v7793_v58, %v810_v39  ;;  %v8074_v58 = vadd.f32 %v7637_v51, %v584_v20  ;;  %v6712_v20 = vld [vmem:[%s10629_s5 + $0x1b0] sm:$0xff] }
 0x12b   : > { %6825 = vmatmul.msk.f32.gmra.mxu3 %vm773_vm4, %v1975_v2  ;;  %1231 = vperm.xlu0 %7408, %v6710_v0   ;;  %v1976_v2 = vmul.f32 %v7824_v19, %v1751_v18  ;;  %v6711_v0 = vld [vmem:[%s10629_s5 + $0x1a8] sm:$0xff]  ;;  %v811_v39 = vld [vmem:[#allocation2 + $0x20] sm:$0xff] }
 0x12c   : > { %721 = vrot.lane.b32.xlu2 %v10658_v43, %s7427_s27  ;;  %1900 = vperm.xlu1 %7409, %v6806_v22   ;;  %v6807_v22 = vld [vmem:[%s10629_s5 + $0x290] sm:$0xff]  ;;  %10717 = vst [vmem:[#allocation20_spill] sm:$0xff] %v8074_v58  ;;  %v1068_v19 = vld [vmem:[#allocation2 + $0x21] sm:$0xff] }
 0x12d   : > { %v700_v45 = vpop.permute.xlu0 %699 }
 0x12e   : > { %v8053_v28 = vpop.permute.xlu2 %1860  ;;  %v702_v44 = vpop.permute.xlu1 %701  ;;  %785 = vst.msk [vmem:[#allocation2 + $0x5b] sm:$0xff] %vm773_vm4, %v700_v45  ;;  %6860 = vmatmul.msk.f32.gmra.mxu0 %vm773_vm4, %v2254_v7  ;;  %v1752_v45 = vld [vmem:[#allocation2 + $0x22] sm:$0xff] }
 0x12f   : > { %786 = vst.msk [vmem:[#allocation2 + $0x63] sm:$0xff] %vm773_vm4, %v702_v44 }
 0x131   : > { %6727 = vmatmul.msk.f32.gmra.mxu1 %vm773_vm4, %v1292_v38  ;;  %v2255_v38 = vld [vmem:[#allocation2 + $0x23] sm:$0xff] }
 0x132   : > { %6760 = vmatmul.msk.f32.gmra.mxu2 %vm773_vm4, %v1034_v62  ;;  %v587_v62 = vpop.f32.mrf.mxu3 }
 0x133   : > { %6826 = vmatmul.msk.f32.gmra.mxu3 %vm773_vm4, %v1976_v2  ;;  %978 = vperm.xlu0 %7408, %v860_v50   ;;  %v1293_v2 = vmul.f32 %v7770_v47, %v1068_v19  ;;  %v1977_v50 = vmul.f32 %v7896_v48, %v1752_v45  ;;  %v8095_v47 = vadd.f32 %v7637_v51, %v587_v62 }
 0x134   : > { %1905 = vperm.xlu2 %7407, %v6807_v22   ;;  %1236 = vperm.xlu1 %7409, %v6711_v0   ;;  %v1035_v22 = vmul.f32 %v7811_v12, %v811_v39  ;;  %v10654_v0 = vmax.f32 %v8074_v58, 0.0 }
 0x135   : > { %v688_v7 = vpop.permute.xlu0 %687  ;;  %10718 = vst [vmem:[#allocation21_spill] sm:$0xff] %v8095_v47 }
 0x136   : > { %v8076_v44 = vpop.permute.xlu2 %1196  ;;  %v690_v18 = vpop.permute.xlu1 %689  ;;  %779 = vst.msk [vmem:[#allocation2 + $0x2b] sm:$0xff] %vm773_vm4, %v688_v7  ;;  %6861 = vmatmul.msk.f32.gmra.mxu0 %vm773_vm4, %v2255_v38  ;;  %v10652_v38 = vmax.f32 %v8095_v47, 0.0  ;;  %v1760_v43 = vld [vmem:[#allocation2 + $0x62] sm:$0xff] }
 0x137   : > { %780 = vst.msk [vmem:[#allocation2 + $0x33] sm:$0xff] %vm773_vm4, %v690_v18  ;;  %v861_v18 = vld [vmem:[%s10629_s5 + $0xb0] sm:$0xff] }
 0x139   : > { %6728 = vmatmul.msk.f32.gmra.mxu1 %vm773_vm4, %v1293_v2 }
 0x13a   : > { %6761 = vmatmul.msk.f32.gmra.mxu2 %vm773_vm4, %v1035_v22 }
 0x13b   : > { %6827 = vmatmul.msk.f32.gmra.mxu3 %vm773_vm4, %v1977_v50  ;;  %723 = vrot.lane.b32.xlu0 %v10654_v0, %s7427_s27  ;;  %v864_v0 = vld [vmem:[%s10629_s5 + $0xc8] sm:$0xff] }
 0x13c   : > { %1241 = vperm.xlu2 %7407, %v6712_v20   ;;  %983 = vperm.xlu1 %7409, %v861_v18   ;;  %v862_v20 = vld [vmem:[%s10629_s5 + $0xb8] sm:$0xff]  ;;  %v590_v18 = vpop.f32.mrf.mxu3 }
 0x13d   : > { %v8104_v19 = vpop.permute.xlu0 %1186  ;;  %v2256_v39 = vld [vmem:[#allocation2 + $0x2b] sm:$0xff] }
 0x13e   : > { %v8100_v12 = vpop.permute.xlu2 %943  ;;  %v8102_v48 = vpop.permute.xlu1 %1855  ;;  %v1069_v45 = vld [vmem:[#allocation2 + $0x29] sm:$0xff]  ;;  %6862 = vmatmul.msk.f32.gmra.mxu0 %vm773_vm4, %v2256_v39  ;;  %v6808_v39 = vld [vmem:[%s10629_s5 + $0x298] sm:$0xff] }
 0x13f   : > { %v812_v7 = vld [vmem:[#allocation2 + $0x28] sm:$0xff]  ;;  %v1294_v62 = vmul.f32 %v7839_v33, %v1069_v45  ;;  %v1070_v33 = vld [vmem:[#allocation2 + $0x31] sm:$0xff] }
 0x140   : > { %v1036_v2 = vmul.f32 %v7799_v63, %v812_v7  ;;  %v1753_v22 = vld [vmem:[#allocation2 + $0x2a] sm:$0xff]  ;;  %v8124_v63 = vadd.f32 %v7637_v51, %v590_v18 }
 0x141   : > { %v1978_v50 = vmul.f32 %v7917_v37, %v1753_v22  ;;  %6729 = vmatmul.msk.f32.gmra.mxu1 %vm773_vm4, %v1294_v62  ;;  %v813_v37 = vld [vmem:[#allocation2 + $0x30] sm:$0xff] }
 0x142   : > { %6762 = vmatmul.msk.f32.gmra.mxu2 %vm773_vm4, %v1036_v2  ;;  %10719 = vst [vmem:[#allocation22_spill] sm:$0xff] %v8124_v63  ;;  %v1754_v62 = vld [vmem:[#allocation2 + $0x32] sm:$0xff]  ;;  %v1037_v18 = vmul.f32 %v7862_v11, %v813_v37 }
 0x143   : > { %6828 = vmatmul.msk.f32.gmra.mxu3 %vm773_vm4, %v1978_v50  ;;  %1910 = vperm.xlu0 %7408, %v6808_v39   ;;  %v2257_v22 = vld [vmem:[#allocation2 + $0x33] sm:$0xff]  ;;  %v10653_v50 = vmax.f32 %v8124_v63, 0.0  ;;  %v1979_v39 = vmul.f32 %v7903_v16, %v1754_v62 }
 0x144   : > { %988 = vperm.xlu2 %7407, %v862_v20   ;;  %725 = vrot.lane.b32.xlu1 %v10652_v38, %s7427_s27  ;;  %v1295_v20 = vmul.f32 %v7856_v56, %v1070_v33  ;;  %v6809_v38 = vld [vmem:[%s10629_s5 + $0x2a0] sm:$0xff]  ;;  %v814_v11 = vld [vmem:[#allocation2 + $0x38] sm:$0xff]  ;;  %v593_v16 = vpop.f32.mrf.mxu3 }
 0x145   : > { %v8129_v2 = vpop.permute.xlu0 %933  ;;  %v1071_v56 = vld [vmem:[#allocation2 + $0x39] sm:$0xff] }
 0x146   : > { %v710_v45 = vpop.permute.xlu2 %709  ;;  %v8126_v7 = vpop.permute.xlu1 %1191  ;;  %6863 = vmatmul.msk.f32.gmra.mxu0 %vm773_vm4, %v2257_v22  ;;  %v1755_v62 = vld [vmem:[#allocation2 + $0x3a] sm:$0xff] }
 0x147   : > { %790 = vst.msk [vmem:[#allocation2 + $0x83] sm:$0xff] %vm773_vm4, %v710_v45  ;;  %v6713_v45 = vld [vmem:[%s10629_s5 + $0x1b8] sm:$0xff] }
 0x149   : > { %6730 = vmatmul.msk.f32.gmra.mxu1 %vm773_vm4, %v1295_v20  ;;  %v2258_v20 = vld [vmem:[#allocation2 + $0x3b] sm:$0xff] }
 0x14a   : > { %6763 = vmatmul.msk.f32.gmra.mxu2 %vm773_vm4, %v1037_v18  ;;  %v1296_v18 = vmul.f32 %v7848_v41, %v1071_v56  ;;  %v863_v41 = vld [vmem:[%s10629_s5 + $0xc0] sm:$0xff] }
 0x14b   : > { %6829 = vmatmul.msk.f32.gmra.mxu3 %vm773_vm4, %v1979_v39  ;;  %1246 = vperm.xlu0 %7408, %v6713_v45   ;;  %v1038_v39 = vmul.f32 %v7882_v27, %v814_v11  ;;  %v6810_v45 = vld [vmem:[%s10629_s5 + $0x2a8] sm:$0xff]  ;;  %v8170_v27 = vadd.f32 %v7637_v51, %v593_v16  ;;  %v815_v56 = vld [vmem:[#allocation2 + $0x40] sm:$0xff] }
 0x14c   : > { %727 = vrot.lane.b32.xlu2 %v10653_v50, %s7427_s27  ;;  %1915 = vperm.xlu1 %7409, %v6809_v38   ;;  %v1980_v38 = vmul.f32 %v8034_v46, %v1755_v62  ;;  %v6714_v50 = vld [vmem:[%s10629_s5 + $0x1c0] sm:$0xff] }
 0x14d   : > { %v706_v22 = vpop.permute.xlu0 %705  ;;  %10720 = vst [vmem:[#allocation23_spill] sm:$0xff] %v8170_v27  ;;  %v1072_v46 = vld [vmem:[#allocation2 + $0x41] sm:$0xff]  ;;  %v10655_v16 = vmax.f32 %v8170_v27, 0.0 }
 0x14e   : > { %v8148_v33 = vpop.permute.xlu2 %1875  ;;  %v8150_v37 = vpop.permute.xlu1 %938  ;;  %788 = vst.msk [vmem:[#allocation2 + $0x73] sm:$0xff] %vm773_vm4, %v706_v22  ;;  %6864 = vmatmul.msk.f32.gmra.mxu0 %vm773_vm4, %v2258_v20  ;;  %v2259_v20 = vld [vmem:[#allocation2 + $0x43] sm:$0xff] }
 0x151   : > { %6731 = vmatmul.msk.f32.gmra.mxu1 %vm773_vm4, %v1296_v18  ;;  %v596_v18 = vpop.f32.mrf.mxu3 }
 0x152   : > { %6764 = vmatmul.msk.f32.gmra.mxu2 %vm773_vm4, %v1038_v39  ;;  %v1756_v39 = vld [vmem:[#allocation2 + $0x42] sm:$0xff] }
 0x153   : > { %6830 = vmatmul.msk.f32.gmra.mxu3 %vm773_vm4, %v1980_v38  ;;  %993 = vperm.xlu0 %7408, %v863_v41   ;;  %v1297_v38 = vmul.f32 %v7929_v8, %v1072_v46  ;;  %v6715_v41 = vld [vmem:[%s10629_s5 + $0x1c8] sm:$0xff] }
 0x154   : > { %1920 = vperm.xlu2 %7407, %v6810_v45   ;;  %1251 = vperm.xlu1 %7409, %v6714_v50   ;;  %v1039_v50 = vmul.f32 %v7868_v17, %v815_v56  ;;  %v1981_v45 = vmul.f32 %v8102_v48, %v1756_v39  ;;  %v8191_v17 = vadd.f32 %v7637_v51, %v596_v18  ;;  %v1073_v8 = vld [vmem:[#allocation2 + $0x49] sm:$0xff] }
 0x155   : > { %v1866_v22 = vpop.permute.xlu0 %1865  ;;  %v816_v56 = vld [vmem:[#allocation2 + $0x48] sm:$0xff]  ;;  %v1298_v18 = vmul.f32 %v7948_v31, %v1073_v8 }
 0x156   : > { %v8172_v11 = vpop.permute.xlu2 %1211  ;;  %v8174_v62 = vpop.permute.xlu1 %1870  ;;  %6865 = vmatmul.msk.f32.gmra.mxu0 %vm773_vm4, %v2259_v20  ;;  %10721 = vst [vmem:[#allocation24_spill] sm:$0xff] %v8191_v17  ;;  %v2260_v39 = vld [vmem:[#allocation2 + $0x4b] sm:$0xff] }
 0x159   : > { %6732 = vmatmul.msk.f32.gmra.mxu1 %vm773_vm4, %v1297_v38  ;;  %v1040_v38 = vmul.f32 %v8008_v10, %v816_v56  ;;  %v6811_v10 = vld [vmem:[%s10629_s5 + $0x2b0] sm:$0xff] }
 0x15a   : > { %6765 = vmatmul.msk.f32.gmra.mxu2 %vm773_vm4, %v1039_v50  ;;  %v1757_v50 = vld [vmem:[#allocation2 + $0x4a] sm:$0xff] }
 0x15b   : > { %6831 = vmatmul.msk.f32.gmra.mxu3 %vm773_vm4, %v1981_v45  ;;  %729 = vrot.lane.b32.xlu0 %v10655_v16, %s7427_s27  ;;  %v1982_v45 = vmul.f32 %v8053_v28, %v1757_v50  ;;  %v599_v16 = vpop.f32.mrf.mxu3  ;;  %v1074_v28 = vld [vmem:[#allocation2 + $0x51] sm:$0xff] }
 0x15c   : > { %1256 = vperm.xlu2 %7407, %v6715_v41   ;;  %998 = vperm.xlu1 %7409, %v864_v0   ;;  %v10656_v0 = vmax.f32 %v8191_v17, 0.0  ;;  %v865_v41 = vld [vmem:[%s10629_s5 + $0xd0] sm:$0xff]  ;;  %v8220_v31 = vadd.f32 %v7637_v51, %v599_v16  ;;  %v1299_v16 = vmul.f32 %v7950_v35, %v1074_v28  ;;  %v818_v35 = vld [vmem:[#allocation2 + $0x58] sm:$0xff] }
 0x15d   : > { %v8200_v20 = vpop.permute.xlu0 %1201  ;;  %v2261_v50 = vld [vmem:[#allocation2 + $0x53] sm:$0xff] }
 0x15e   : > { %v8196_v48 = vpop.permute.xlu2 %958  ;;  %v8198_v46 = vpop.permute.xlu1 %1206  ;;  %6866 = vmatmul.msk.f32.gmra.mxu0 %vm773_vm4, %v2260_v39  ;;  %10722 = vst [vmem:[#allocation25_spill] sm:$0xff] %v8220_v31  ;;  %v817_v39 = vld [vmem:[#allocation2 + $0x50] sm:$0xff] }
 0x161   : > { %6733 = vmatmul.msk.f32.gmra.mxu1 %vm773_vm4, %v1298_v18  ;;  %v1041_v18 = vmul.f32 %v8031_v34, %v817_v39  ;;  %v6716_v34 = vld [vmem:[%s10629_s5 + $0x1d0] sm:$0xff]  ;;  %v1075_v39 = vld [vmem:[#allocation2 + $0x59] sm:$0xff] }
 0x162   : > { %6766 = vmatmul.msk.f32.gmra.mxu2 %vm773_vm4, %v1040_v38 }
 0x163   : > { %6832 = vmatmul.msk.f32.gmra.mxu3 %vm773_vm4, %v1982_v45  ;;  %1925 = vperm.xlu0 %7408, %v6811_v10   ;;  %v1758_v45 = vld [vmem:[#allocation2 + $0x52] sm:$0xff] }
 0x164   : > { %1003 = vperm.xlu2 %7407, %v865_v41   ;;  %731 = vrot.lane.b32.xlu1 %v10656_v0, %s7427_s27  ;;  %v10657_v41 = vmax.f32 %v8220_v31, 0.0  ;;  %v1983_v10 = vmul.f32 %v1866_v22, %v1758_v45  ;;  %v6812_v0 = vld [vmem:[%s10629_s5 + $0x2b8] sm:$0xff]  ;;  %v602_v22 = vpop.f32.mrf.mxu3  ;;  %v1300_v45 = vmul.f32 %v8104_v19, %v1075_v39  ;;  %v1076_v39 = vld [vmem:[#allocation2 + $0x61] sm:$0xff]  ;;  %v3544_v31 = vld [vmem:[#allocation2 + $0x4e] sm:$0xff] }
 0x165   : > { %v8225_v38 = vpop.permute.xlu0 %948  ;;  %v866_v19 = vld [vmem:[%s10629_s5 + $0xd8] sm:$0xff] }
 0x166   : > { %v716_v8 = vpop.permute.xlu2 %715  ;;  %v8222_v56 = vpop.permute.xlu1 %953  ;;  %6867 = vmatmul.msk.f32.gmra.mxu0 %vm773_vm4, %v2261_v50 }
 0x167   : > { %793 = vst.msk [vmem:[#allocation2 + $0x9b] sm:$0xff] %vm773_vm4, %v716_v8 }
 0x169   : > { %6734 = vmatmul.msk.f32.gmra.mxu1 %vm773_vm4, %v1299_v16  ;;  %v1759_v16 = vld [vmem:[#allocation2 + $0x5a] sm:$0xff] }
 0x16a   : > { %6767 = vmatmul.msk.f32.gmra.mxu2 %vm773_vm4, %v1041_v18  ;;  %v2262_v18 = vld [vmem:[#allocation2 + $0x5b] sm:$0xff] }
 0x16b   : > { %6833 = vmatmul.msk.f32.gmra.mxu3 %vm773_vm4, %v1983_v10  ;;  %1261 = vperm.xlu0 %7408, %v6716_v34   ;;  %v1984_v10 = vmul.f32 %v8174_v62, %v1759_v16  ;;  %v6813_v34 = vld [vmem:[%s10629_s5 + $0x2c0] sm:$0xff] }
 0x16c   : > { %733 = vrot.lane.b32.xlu2 %v10657_v41, %s7427_s27  ;;  %1930 = vperm.xlu1 %7409, %v6812_v0   ;;  %v1042_v0 = vmul.f32 %v7986_v61, %v818_v35  ;;  %v8264_v61 = vadd.f32 %v7637_v51, %v602_v22  ;;  %v605_v16 = vpop.f32.mrf.mxu3  ;;  %v6718_v22 = vld [vmem:[%s10629_s5 + $0x1e0] sm:$0xff] }
 0x16d   : > { %v712_v50 = vpop.permute.xlu0 %711 }
 0x16e   : > { %v8243_v28 = vpop.permute.xlu2 %1890  ;;  %v714_v8 = vpop.permute.xlu1 %713  ;;  %791 = vst.msk [vmem:[#allocation2 + $0x8b] sm:$0xff] %vm773_vm4, %v712_v50  ;;  %6868 = vmatmul.msk.f32.gmra.mxu0 %vm773_vm4, %v2262_v18  ;;  %v819_v50 = vld [vmem:[#allocation2 + $0x60] sm:$0xff]  ;;  %v10661_v51 = vmax.f32 %v8264_v61, 0.0 }
 0x16f   : > { %792 = vst.msk [vmem:[#allocation2 + $0x93] sm:$0xff] %vm773_vm4, %v714_v8  ;;  %v6717_v8 = vld [vmem:[%s10629_s5 + $0x1d8] sm:$0xff]  ;;  %v1043_v41 = vmul.f32 %v8129_v2, %v819_v50  ;;  %v1077_v2 = vld [vmem:[#allocation2 + $0x69] sm:$0xff] }
 0x170   : > { %10723 = vst [vmem:[#allocation26_spill] sm:$0xff] %v8264_v61  ;;  %v1302_v50 = vmul.f32 %v8076_v44, %v1077_v2  ;;  %v6814_v44 = vld [vmem:[%s10629_s5 + $0x2c8] sm:$0xff]  ;;  %v2270_v9 = vld [vmem:[#allocation2 + $0x9b] sm:$0xff] }
 0x171   : > { %6735 = vmatmul.msk.f32.gmra.mxu1 %vm773_vm4, %v1300_v45  ;;  %v2263_v45 = vld [vmem:[#allocation2 + $0x63] sm:$0xff] }
 0x172   : > { %6768 = vmatmul.msk.f32.gmra.mxu2 %vm773_vm4, %v1042_v0  ;;  %v1301_v0 = vmul.f32 %v8126_v7, %v1076_v39  ;;  %v2264_v39 = vld [vmem:[#allocation2 + $0x6b] sm:$0xff] }
 0x173   : > { %6834 = vmatmul.msk.f32.gmra.mxu3 %vm773_vm4, %v1984_v10  ;;  %1008 = vperm.xlu0 %7408, %v866_v19   ;;  %v1985_v10 = vmul.f32 %v8148_v33, %v1760_v43  ;;  %v7413_v43 = vld [vmem:[%s10626_s2] ss:$0 sm:$0xff]  ;;  %v820_v19 = vld [vmem:[#allocation2 + $0x68] sm:$0xff] }
 0x174   : > { %1935 = vperm.xlu2 %7407, %v6813_v34   ;;  %1266 = vperm.xlu1 %7409, %v6717_v8   ;;  %v867_v34 = vld [vmem:[%s10629_s5 + $0xe0] sm:$0xff]  ;;  %v8285_v7 = vadd.f32 %v7413_v43, %v605_v16  ;;  %v1761_v16 = vld [vmem:[#allocation2 + $0x6a] sm:$0xff] }
 0x175   : > { %v1881_v18 = vpop.permute.xlu0 %1880 }
 0x176   : > { %v8266_v62 = vpop.permute.xlu2 %1226  ;;  %v1886_v35 = vpop.permute.xlu1 %1885  ;;  %6869 = vmatmul.msk.f32.gmra.mxu0 %vm773_vm4, %v2263_v45  ;;  %10724 = vst [vmem:[#allocation27_spill] sm:$0xff] %v8285_v7  ;;  %v1044_v45 = vmul.f32 %v8150_v37, %v820_v19  ;;  %v1078_v19 = vld [vmem:[#allocation2 + $0x71] sm:$0xff] }
 0x177   : > { %v825_v53 = vld [vmem:[#allocation2 + $0x90] sm:$0xff] }
 0x178   : > { %v2269_v15 = vld [vmem:[#allocation2 + $0x93] sm:$0xff] }
 0x179   : > { %6736 = vmatmul.msk.f32.gmra.mxu1 %vm773_vm4, %v1301_v0  ;;  %v10660_v0 = vmax.f32 %v8285_v7, 0.0 }
 0x17a   : > { %6769 = vmatmul.msk.f32.gmra.mxu2 %vm773_vm4, %v1043_v41 }
 0x17b   : > { %6835 = vmatmul.msk.f32.gmra.mxu3 %vm773_vm4, %v1985_v10  ;;  %735 = vrot.lane.b32.xlu0 %v10661_v51, %s7427_s27  ;;  %v1986_v10 = vmul.f32 %v1881_v18, %v1761_v16  ;;  %v821_v18 = vld [vmem:[#allocation2 + $0x70] sm:$0xff] }
 0x17c   : > { %1271 = vperm.xlu2 %7407, %v6718_v22   ;;  %1013 = vperm.xlu1 %7409, %v867_v34   ;;  %v868_v22 = vld [vmem:[%s10629_s5 + $0xe8] sm:$0xff]  ;;  %v608_v34 = vpop.f32.mrf.mxu3  ;;  %v1762_v16 = vld [vmem:[#allocation2 + $0x72] sm:$0xff] }
 0x17d   : > { %v8293_v41 = vpop.permute.xlu0 %1216  ;;  %v8311_v37 = vadd.f32 %v7413_v43, %v608_v34  ;;  %v1045_v43 = vmul.f32 %v8100_v12, %v821_v18  ;;  %v6815_v34 = vld [vmem:[%s10629_s5 + $0x2d0] sm:$0xff] }
 0x17e   : > { %v8290_v33 = vpop.permute.xlu2 %973  ;;  %v708_v8 = vpop.permute.xlu1 %707  ;;  %6870 = vmatmul.msk.f32.gmra.mxu0 %vm773_vm4, %v2264_v39  ;;  %v2268_v51 = vld [vmem:[#allocation2 + $0x8b] sm:$0xff] }
 0x17f   : > { %789 = vst.msk [vmem:[#allocation2 + $0x7b] sm:$0xff] %vm773_vm4, %v708_v8 }
 0x180   : > { %10725 = vst [vmem:[#allocation28_spill] sm:$0xff] %v8311_v37 }
 0x181   : > { %6737 = vmatmul.msk.f32.gmra.mxu1 %vm773_vm4, %v1302_v50  ;;  %v2265_v50 = vld [vmem:[#allocation2 + $0x73] sm:$0xff] }
 0x182   : > { %6770 = vmatmul.msk.f32.gmra.mxu2 %vm773_vm4, %v1044_v45  ;;  %v1303_v45 = vmul.f32 %v8200_v20, %v1078_v19  ;;  %v6719_v20 = vld [vmem:[%s10629_s5 + $0x1e8] sm:$0xff] }
 0x183   : > { %6836 = vmatmul.msk.f32.gmra.mxu3 %vm773_vm4, %v1986_v10  ;;  %1940 = vperm.xlu0 %7408, %v6814_v44   ;;  %v10659_v10 = vmax.f32 %v8311_v37, 0.0  ;;  %v7087_v44 = vld [vmem:[%s10630_s6 + $0x8] sm:$0x3f] }
 0x184   : > { %1018 = vperm.xlu2 %7407, %v868_v22   ;;  %737 = vrot.lane.b32.xlu1 %v10660_v0, %s7427_s27  ;;  %v1987_v22 = vmul.f32 %v1886_v35, %v1762_v16 }
 0x185   : > { %v8316_v39 = vpop.permute.xlu0 %963  ;;  %7088 = vmatpush.msk.msra.mxu0 %vm1419_vm2, %v7087_v44 }
 0x186   : > { %v722_v2 = vpop.permute.xlu2 %721  ;;  %v8313_v8 = vpop.permute.xlu1 %1221  ;;  %6871 = vmatmul.msk.f32.gmra.mxu0 %vm773_vm4, %v2265_v50  ;;  %v1079_v12 = vld [vmem:[#allocation2 + $0x79] sm:$0xff] }
 0x187   : > { %796 = vst.msk [vmem:[#allocation2 + $0xb3] sm:$0xff] %vm773_vm4, %v722_v2  ;;  %v822_v35 = vld [vmem:[#allocation2 + $0x78] sm:$0xff]  ;;  %v1304_v16 = vmul.f32 %v8198_v46, %v1079_v12  ;;  %v869_v46 = vld [vmem:[%s10629_s5 + $0xf0] sm:$0xff]  ;;  %v823_v44 = vld [vmem:[#allocation2 + $0x80] sm:$0xff] }
 0x188   : > { %v1763_v19 = vld [vmem:[#allocation2 + $0x7a] sm:$0xff] }
 0x189   : > { %6738 = vmatmul.msk.f32.gmra.mxu1 %vm773_vm4, %v1303_v45  ;;  %v2266_v45 = vld [vmem:[#allocation2 + $0x7b] sm:$0xff] }
 0x18a   : > { %6771 = vmatmul.msk.f32.gmra.mxu2 %vm773_vm4, %v1045_v43  ;;  %v1046_v43 = vmul.f32 %v8225_v38, %v822_v35  ;;  %v3550_v61 = vld [vmem:[#allocation2 + $0x7e] sm:$0xff] }
 0x18b   : > { %6837 = vmatmul.msk.f32.gmra.mxu3 %vm773_vm4, %v1987_v22  ;;  %1276 = vperm.xlu0 %7408, %v6719_v20   ;;  %v1988_v22 = vmul.f32 %v8243_v28, %v1763_v19  ;;  %v6720_v20 = vld [vmem:[%s10629_s5 + $0x1f0] sm:$0xff]  ;;  %v8359_v38 = vpop.f32.mrf.mxu0  ;;  %v1080_v28 = vld [vmem:[#allocation2 + $0x81] sm:$0xff] }
 0x18c   : > { %739 = vrot.lane.b32.xlu2 %v10659_v10, %s7427_s27  ;;  %1945 = vperm.xlu1 %7409, %v6815_v34   ;;  %v6816_v34 = vld [vmem:[%s10629_s5 + $0x2d8] sm:$0xff] }
 0x18d   : > { %v718_v50 = vpop.permute.xlu0 %717 }
 0x18e   : > { %v8338_v18 = vpop.permute.xlu2 %1905  ;;  %v8340_v2 = vpop.permute.xlu1 %968  ;;  %794 = vst.msk [vmem:[#allocation2 + $0xa3] sm:$0xff] %vm773_vm4, %v718_v50  ;;  %6872 = vmatmul.msk.f32.gmra.mxu0 %vm773_vm4, %v2266_v45  ;;  %v1764_v50 = vld [vmem:[#allocation2 + $0x82] sm:$0xff] }
 0x18f   : > { %v8363_v19 = vpop.f32.mrf.mxu1 }
 0x191   : > { %6739 = vmatmul.msk.f32.gmra.mxu1 %vm773_vm4, %v1304_v16  ;;  %v2267_v16 = vld [vmem:[#allocation2 + $0x83] sm:$0xff] }
 0x192   : > { %6772 = vmatmul.msk.f32.gmra.mxu2 %vm773_vm4, %v1046_v43 }
 0x193   : > { %6838 = vmatmul.msk.f32.gmra.mxu3 %vm773_vm4, %v1988_v22  ;;  %1023 = vperm.xlu0 %7408, %v869_v46   ;;  %v1305_v22 = vmul.f32 %v8172_v11, %v1080_v28  ;;  %v6721_v46 = vld [vmem:[%s10629_s5 + $0x1f8] sm:$0xff] }
 0x194   : > { %1950 = vperm.xlu2 %7407, %v6816_v34   ;;  %1281 = vperm.xlu1 %7409, %v6720_v20   ;;  %v1047_v34 = vmul.f32 %v8222_v56, %v823_v44  ;;  %v6817_v20 = vld [vmem:[%s10629_s5 + $0x2e0] sm:$0xff]  ;;  %v824_v44 = vld [vmem:[#allocation2 + $0x88] sm:$0xff] }
 0x195   : > { %v1896_v45 = vpop.permute.xlu0 %1895  ;;  %v8381_v11 = vpop.f32.mrf.mxu2 }
 0x196   : > { %v8361_v12 = vpop.permute.xlu2 %1241  ;;  %v720_v35 = vpop.permute.xlu1 %719  ;;  %v1989_v43 = vmul.f32 %v1896_v45, %v1764_v50  ;;  %6873 = vmatmul.msk.f32.gmra.mxu0 %vm773_vm4, %v2267_v16  ;;  %v1765_v16 = vld [vmem:[#allocation2 + $0x8a] sm:$0xff] }
 0x197   : > { %795 = vst.msk [vmem:[#allocation2 + $0xab] sm:$0xff] %vm773_vm4, %v720_v35  ;;  %v870_v35 = vld [vmem:[%s10629_s5 + $0xf8] sm:$0xff]  ;;  %v8383_v56 = vpop.f32.mrf.mxu3 }
 0x199   : > { %6740 = vmatmul.msk.f32.gmra.mxu1 %vm773_vm4, %v1305_v22  ;;  %v1081_v22 = vld [vmem:[#allocation2 + $0x89] sm:$0xff] }
 0x19a   : > { %6773 = vmatmul.msk.f32.gmra.mxu2 %vm773_vm4, %v1047_v34 }
 0x19b   : > { %6839 = vmatmul.msk.f32.gmra.mxu3 %vm773_vm4, %v1989_v43  ;;  %1028 = vperm.xlu0 %7408, %v870_v35   ;;  %v2404_v28 = vpop.f32.mrf.mxu0  ;;  %v1306_v43 = vmul.f32 %v8293_v41, %v1081_v22  ;;  %v6889_v35 = vld [vmem:[%s10629_s5 + $0x400] sm:$0xff]  ;;  %v1082_v22 = vld [vmem:[#allocation2 + $0x91] sm:$0xff] }
 0x19c   : > { %1955 = vperm.xlu2 %7407, %v6817_v20   ;;  %1286 = vperm.xlu1 %7409, %v6721_v46   ;;  %v1048_v20 = vmul.f32 %v8196_v48, %v824_v44  ;;  %v6818_v46 = vld [vmem:[%s10629_s5 + $0x2e8] sm:$0xff]  ;;  %v6955_v41 = vld [vmem:[%s10629_s5 + $0x500] sm:$0xff]  ;;  %v1307_v6 = vmul.f32 %v8313_v8, %v1082_v22 }
 0x19d   : > { %v8387_v0 = vpop.permute.xlu0 %1231 }
 0x19e   : > { %v8385_v50 = vpop.permute.xlu2 %988  ;;  %v1901_v45 = vpop.permute.xlu1 %1900  ;;  %6874 = vmatmul.msk.f32.gmra.mxu0 %vm773_vm4, %v2268_v51 }
 0x19f   : > { %v1990_v34 = vmul.f32 %v1901_v45, %v1765_v16  ;;  %v1443_v10 = vpop.f32.mrf.mxu1 }
 0x1a1   : > { %6741 = vmatmul.msk.f32.gmra.mxu1 %vm773_vm4, %v1306_v43 }
 0x1a2   : > { %6774 = vmatmul.msk.f32.gmra.mxu2 %vm773_vm4, %v1048_v20 }
 0x1a3   : > { %6840 = vmatmul.msk.f32.gmra.mxu3 %vm773_vm4, %v1990_v34  ;;  %3099 = vperm.xlu0 %7408, %v6955_v41   ;;  %v2407_v51 = vpop.f32.mrf.mxu0  ;;  %v1049_v34 = vmul.f32 %v8316_v39, %v825_v53  ;;  %v6956_v53 = vld [vmem:[%s10629_s5 + $0x508] sm:$0xff] }
 0x1a4   : > { %1960 = vperm.xlu2 %7407, %v6818_v46   ;;  %2596 = vperm.xlu1 %7409, %v6889_v35   ;;  %v1766_v46 = vld [vmem:[#allocation2 + $0x92] sm:$0xff] }
 0x1a5   : > { %v1655_v48 = vpop.f32.mrf.mxu2  ;;  %v8409_v41 = vpop.permute.xlu0 %978 }
 0x1a6   : > { %v1656_v44 = vadd.f32 %v1655_v48, %v1443_v10  ;;  %v2126_v45 = vpop.f32.mrf.mxu3  ;;  %v728_v16 = vpop.permute.xlu2 %727  ;;  %6875 = vmatmul.msk.f32.gmra.mxu0 %vm773_vm4, %v2269_v15  ;;  %v1991_v10 = vmul.f32 %v8338_v18, %v1766_v46  ;;  %v6819_v48 = vld [vmem:[%s10629_s5 + $0x2f0] sm:$0xff]  ;;  %v1083_v15 = vld [vmem:[#allocation2 + $0x99] sm:$0xff] }
 0x1a7   : > { %799 = vst.msk [vmem:[#allocation2 + $0xcb] sm:$0xff] %vm773_vm4, %v728_v16  ;;  %v8405_v43 = vpop.permute.xlu1 %1236  ;;  %v1446_v20 = vpop.f32.mrf.mxu1  ;;  %v6890_v16 = vld [vmem:[%s10629_s5 + $0x408] sm:$0xff] }
 0x1a8   : > { %v2220_v35 = vadd.f32 %v2126_v45, %v1656_v44 }
 0x1a9   : > { %6742 = vmatmul.msk.f32.gmra.mxu1 %vm773_vm4, %v1307_v6  ;;  %v826_v6 = vld [vmem:[#allocation2 + $0x98] sm:$0xff] }
 0x1aa   : > { %6775 = vmatmul.msk.f32.gmra.mxu2 %vm773_vm4, %v1049_v34  ;;  %v8424_v8 = vadd.f32 %v2404_v28, %v2220_v35  ;;  %v1308_v28 = vmul.f32 %v8266_v62, %v1083_v15  ;;  %v1050_v35 = vmul.f32 %v8340_v2, %v826_v6  ;;  %v6957_v62 = vld [vmem:[%s10629_s5 + $0x510] sm:$0xff] }
 0x1ab   : > { %6841 = vmatmul.msk.f32.gmra.mxu3 %vm773_vm4, %v1991_v10  ;;  %3104 = vperm.xlu0 %7408, %v6956_v53   ;;  %v2410_v18 = vpop.f32.mrf.mxu0  ;;  %v827_v53 = vld [vmem:[#allocation2 + $0xa0] sm:$0xff] }
 0x1ac   : > { %1965 = vperm.xlu2 %7407, %v6819_v48   ;;  %2601 = vperm.xlu1 %7409, %v6890_v16   ;;  %v6891_v16 = vld [vmem:[%s10629_s5 + $0x410] sm:$0xff] }
 0x1ad   : > { %v1658_v39 = vpop.f32.mrf.mxu2  ;;  %v724_v48 = vpop.permute.xlu0 %723 }
 0x1ae   : > { %v1659_v44 = vadd.f32 %v1658_v39, %v1446_v20  ;;  %v2129_v45 = vpop.f32.mrf.mxu3  ;;  %v8427_v22 = vpop.permute.xlu2 %1920  ;;  %6876 = vmatmul.msk.f32.gmra.mxu0 %vm773_vm4, %v2270_v9  ;;  %797 = vst.msk [vmem:[#allocation2 + $0xbb] sm:$0xff] %vm773_vm4, %v724_v48  ;;  %v6820_v20 = vld [vmem:[%s10629_s5 + $0x2f8] sm:$0xff]  ;;  %v2271_v48 = vld [vmem:[#allocation2 + $0xa3] sm:$0xff] }
 0x1af   : > { %v8429_v34 = vpop.permute.xlu1 %983  ;;  %v1449_v46 = vpop.f32.mrf.mxu1 }
 0x1b0   : > { %v2221_v10 = vadd.f32 %v2129_v45, %v1659_v44  ;;  %v1084_v45 = vld [vmem:[#allocation2 + $0xa1] sm:$0xff] }
 0x1b1   : > { %6743 = vmatmul.msk.f32.gmra.mxu1 %vm773_vm4, %v1308_v28 }
 0x1b2   : > { %6776 = vmatmul.msk.f32.gmra.mxu2 %vm773_vm4, %v1050_v35  ;;  %v8446_v2 = vadd.f32 %v2407_v51, %v2221_v10  ;;  %v1309_v35 = vmul.f32 %v8387_v0, %v1084_v45  ;;  %v1767_v51 = vld [vmem:[#allocation2 + $0x9a] sm:$0xff] }
 0x1b3   : > { %3109 = vperm.xlu0 %7408, %v6957_v62   ;;  %v7021_v62 = vld [vmem:[%s10629_s5 + $0x600] sm:$0xff]  ;;  %v6958_v0 = vld [vmem:[%s10629_s5 + $0x518] sm:$0xff] }
 0x1b4   : > { %1970 = vperm.xlu2 %7407, %v6820_v20   ;;  %2606 = vperm.xlu1 %7409, %v6891_v16   ;;  %v1051_v20 = vmul.f32 %v8290_v33, %v827_v53  ;;  %v2413_v16 = vpop.f32.mrf.mxu0 }
 0x1b5   : > { %v1661_v9 = vpop.f32.mrf.mxu2  ;;  %v1911_v10 = vpop.permute.xlu0 %1910 }
 0x1b6   : > { %v1662_v15 = vadd.f32 %v1661_v9, %v1449_v46  ;;  %v2132_v39 = vpop.f32.mrf.mxu3  ;;  %v8448_v44 = vpop.permute.xlu2 %1256  ;;  %6877 = vmatmul.msk.f32.gmra.mxu0 %vm773_vm4, %v2271_v48  ;;  %v1992_v46 = vmul.f32 %v1911_v10, %v1767_v51  ;;  %v6892_v9 = vld [vmem:[%s10629_s5 + $0x418] sm:$0xff]  ;;  %v1085_v48 = vld [vmem:[#allocation2 + $0xa9] sm:$0xff] }
 0x1b7   : > { %v726_v6 = vpop.permute.xlu1 %725  ;;  %v1452_v28 = vpop.f32.mrf.mxu1  ;;  %v1310_v7 = vmul.f32 %v8405_v43, %v1085_v48  ;;  %v6959_v43 = vld [vmem:[%s10629_s5 + $0x520] sm:$0xff] }
 0x1b8   : > { %v2222_v55 = vadd.f32 %v2132_v39, %v1662_v15  ;;  %798 = vst.msk [vmem:[#allocation2 + $0xc3] sm:$0xff] %vm773_vm4, %v726_v6  ;;  %6842 = vmatmul.msk.f32.gmra.mxu3 %vm773_vm4, %v1992_v46  ;;  %v1768_v6 = vld [vmem:[#allocation2 + $0xa2] sm:$0xff] }
 0x1b9   : > { %6744 = vmatmul.msk.f32.gmra.mxu1 %vm773_vm4, %v1309_v35  ;;  %v828_v35 = vld [vmem:[#allocation2 + $0xa8] sm:$0xff] }
 0x1ba   : > { %6777 = vmatmul.msk.f32.gmra.mxu2 %vm773_vm4, %v1051_v20  ;;  %v8465_v15 = vadd.f32 %v2410_v18, %v2222_v55  ;;  %v2272_v20 = vld [vmem:[#allocation2 + $0xab] sm:$0xff]  ;;  %v1052_v55 = vmul.f32 %v8409_v41, %v828_v35 }
 0x1bb   : > { %3114 = vperm.xlu0 %7408, %v6958_v0  }
 0x1bc   : > { %3602 = vperm.xlu2 %7407, %v7021_v62   ;;  %2611 = vperm.xlu1 %7409, %v6892_v9   ;;  %v6893_v9 = vld [vmem:[%s10629_s5 + $0x420] sm:$0xff]  ;;  %v2416_v0 = vpop.f32.mrf.mxu0 }
 0x1bd   : > { %v1664_v33 = vpop.f32.mrf.mxu2  ;;  %v1247_v62 = vpop.permute.xlu0 %1246 }
 0x1be   : > { %v1665_v53 = vadd.f32 %v1664_v33, %v1452_v28  ;;  %v2135_v39 = vpop.f32.mrf.mxu3  ;;  %v8468_v45 = vpop.permute.xlu2 %1003  ;;  %6878 = vmatmul.msk.f32.gmra.mxu0 %vm773_vm4, %v2272_v20  ;;  %v7022_v28 = vld [vmem:[%s10629_s5 + $0x608] sm:$0xff]  ;;  %v2273_v20 = vld [vmem:[#allocation2 + $0xb3] sm:$0xff] }
 0x1bf   : > { %v1916_v51 = vpop.permute.xlu1 %1915  ;;  %v1455_v10 = vpop.f32.mrf.mxu1 }
 0x1c0   : > { %v2223_v18 = vadd.f32 %v2135_v39, %v1665_v53  ;;  %v1993_v46 = vmul.f32 %v1916_v51, %v1768_v6  ;;  %v1086_v53 = vld [vmem:[#allocation2 + $0xb1] sm:$0xff] }
 0x1c1   : > { %6745 = vmatmul.msk.f32.gmra.mxu1 %vm773_vm4, %v1310_v7  ;;  %v829_v7 = vld [vmem:[#allocation2 + $0xb0] sm:$0xff] }
 0x1c2   : > { %6778 = vmatmul.msk.f32.gmra.mxu2 %vm773_vm4, %v1052_v55  ;;  %v8484_v41 = vadd.f32 %v2413_v16, %v2223_v18  ;;  %6843 = vmatmul.msk.f32.gmra.mxu3 %vm773_vm4, %v1993_v46  ;;  %v1769_v55 = vld [vmem:[#allocation2 + $0xaa] sm:$0xff]  ;;  %v1053_v16 = vmul.f32 %v8429_v34, %v829_v7  ;;  %v1311_v46 = vmul.f32 %v8361_v12, %v1086_v53 }
 0x1c3   : > { %3119 = vperm.xlu0 %7408, %v6959_v43   ;;  %v6960_v34 = vld [vmem:[%s10629_s5 + $0x528] sm:$0xff] }
 0x1c4   : > { %3607 = vperm.xlu2 %7407, %v7022_v28   ;;  %2616 = vperm.xlu1 %7409, %v6893_v9   ;;  %v1994_v28 = vmul.f32 %v8427_v22, %v1769_v55  ;;  %v6894_v9 = vld [vmem:[%s10629_s5 + $0x428] sm:$0xff]  ;;  %v2419_v12 = vpop.f32.mrf.mxu0  ;;  %v2274_v55 = vld [vmem:[#allocation2 + $0xbb] sm:$0xff] }
 0x1c5   : > { %v1667_v33 = vpop.f32.mrf.mxu2  ;;  %v994_v37 = vpop.permute.xlu0 %993 }
 0x1c6   : > { %v1668_v39 = vadd.f32 %v1667_v33, %v1455_v10  ;;  %v2138_v6 = vpop.f32.mrf.mxu3  ;;  %v734_v48 = vpop.permute.xlu2 %733  ;;  %6879 = vmatmul.msk.f32.gmra.mxu0 %vm773_vm4, %v2273_v20  ;;  %v7023_v10 = vld [vmem:[%s10629_s5 + $0x610] sm:$0xff]  ;;  %v830_v33 = vld [vmem:[#allocation2 + $0xb8] sm:$0xff] }
 0x1c7   : > { %802 = vst.msk [vmem:[#allocation2 + $0xe3] sm:$0xff] %vm773_vm4, %v734_v48  ;;  %v1252_v35 = vpop.permute.xlu1 %1251  ;;  %v1458_v51 = vpop.f32.mrf.mxu1  ;;  %v1087_v48 = vld [vmem:[#allocation2 + $0xb9] sm:$0xff] }
 0x1c8   : > { %v2224_v18 = vadd.f32 %v2138_v6, %v1668_v39 }
 0x1c9   : > { %6746 = vmatmul.msk.f32.gmra.mxu1 %vm773_vm4, %v1311_v46 }
 0x1ca   : > { %6779 = vmatmul.msk.f32.gmra.mxu2 %vm773_vm4, %v1053_v16  ;;  %v8503_v43 = vadd.f32 %v2416_v0, %v2224_v18  ;;  %6844 = vmatmul.msk.f32.gmra.mxu3 %vm773_vm4, %v1994_v28  ;;  %v1312_v16 = vmul.f32 %v1247_v62, %v1087_v48  ;;  %v1054_v18 = vmul.f32 %v8385_v50, %v830_v33  ;;  %v6895_v28 = vld [vmem:[%s10629_s5 + $0x430] sm:$0xff]  ;;  %v1088_v33 = vld [vmem:[#allocation2 + $0xc1] sm:$0xff] }
 0x1cb   : > { %3124 = vperm.xlu0 %7408, %v6960_v34   ;;  %v6961_v62 = vld [vmem:[%s10629_s5 + $0x530] sm:$0xff] }
 0x1cc   : > { %3612 = vperm.xlu2 %7407, %v7023_v10   ;;  %2621 = vperm.xlu1 %7409, %v6894_v9  }
 0x1cd   : > { %v1670_v22 = vpop.f32.mrf.mxu2  ;;  %v730_v0 = vpop.permute.xlu0 %729 }
 0x1ce   : > { %v1671_v53 = vadd.f32 %v1670_v22, %v1458_v51  ;;  %v2141_v39 = vpop.f32.mrf.mxu3  ;;  %v8506_v6 = vpop.permute.xlu2 %1935  ;;  %6880 = vmatmul.msk.f32.gmra.mxu0 %vm773_vm4, %v2274_v55  ;;  %800 = vst.msk [vmem:[#allocation2 + $0xd3] sm:$0xff] %vm773_vm4, %v730_v0  ;;  %v7024_v51 = vld [vmem:[%s10629_s5 + $0x618] sm:$0xff]  ;;  %v2275_v55 = vld [vmem:[#allocation2 + $0xc3] sm:$0xff] }
 0x1cf   : > { %v999_v7 = vpop.permute.xlu1 %998  ;;  %v1461_v20 = vpop.f32.mrf.mxu1 }
 0x1d0   : > { %v2225_v46 = vadd.f32 %v2141_v39, %v1671_v53  ;;  %v831_v53 = vld [vmem:[#allocation2 + $0xc0] sm:$0xff] }
 0x1d1   : > { %6747 = vmatmul.msk.f32.gmra.mxu1 %vm773_vm4, %v1312_v16  ;;  %v1313_v16 = vmul.f32 %v1252_v35, %v1088_v33  ;;  %v1055_v0 = vmul.f32 %v994_v37, %v831_v53  ;;  %v6962_v37 = vld [vmem:[%s10629_s5 + $0x538] sm:$0xff] }
 0x1d2   : > { %6780 = vmatmul.msk.f32.gmra.mxu2 %vm773_vm4, %v1054_v18  ;;  %v8522_v10 = vadd.f32 %v2419_v12, %v2225_v46  ;;  %v1770_v12 = vld [vmem:[#allocation2 + $0xb2] sm:$0xff] }
 0x1d3   : > { %3129 = vperm.xlu0 %7408, %v6961_v62   ;;  %v6896_v62 = vld [vmem:[%s10629_s5 + $0x438] sm:$0xff] }
 0x1d4   : > { %3617 = vperm.xlu2 %7407, %v7024_v51   ;;  %2626 = vperm.xlu1 %7409, %v6895_v28   ;;  %v2422_v51 = vpop.f32.mrf.mxu0 }
 0x1d5   : > { %v1673_v50 = vpop.f32.mrf.mxu2  ;;  %v1926_v46 = vpop.permute.xlu0 %1925 }
 0x1d6   : > { %v1674_v9 = vadd.f32 %v1673_v50, %v1461_v20  ;;  %v2144_v34 = vpop.f32.mrf.mxu3  ;;  %v8524_v22 = vpop.permute.xlu2 %1271  ;;  %6881 = vmatmul.msk.f32.gmra.mxu0 %vm773_vm4, %v2275_v55  ;;  %v1995_v28 = vmul.f32 %v1926_v46, %v1770_v12  ;;  %v7025_v20 = vld [vmem:[%s10629_s5 + $0x620] sm:$0xff]  ;;  %v2276_v12 = vld [vmem:[#allocation2 + $0xcb] sm:$0xff] }
 0x1d7   : > { %v732_v39 = vpop.permute.xlu1 %731  ;;  %v1464_v48 = vpop.f32.mrf.mxu1 }
 0x1d8   : > { %v2226_v18 = vadd.f32 %v2144_v34, %v1674_v9  ;;  %801 = vst.msk [vmem:[#allocation2 + $0xdb] sm:$0xff] %vm773_vm4, %v732_v39  ;;  %6845 = vmatmul.msk.f32.gmra.mxu3 %vm773_vm4, %v1995_v28  ;;  %v1089_v9 = vld [vmem:[#allocation2 + $0xc9] sm:$0xff] }
 0x1d9   : > { %6748 = vmatmul.msk.f32.gmra.mxu1 %vm773_vm4, %v1313_v16  ;;  %v832_v39 = vld [vmem:[#allocation2 + $0xc8] sm:$0xff]  ;;  %v1771_v16 = vld [vmem:[#allocation2 + $0xba] sm:$0xff]  ;;  %v1314_v28 = vmul.f32 %v8448_v44, %v1089_v9 }
 0x1da   : > { %6781 = vmatmul.msk.f32.gmra.mxu2 %vm773_vm4, %v1055_v0  ;;  %v8539_v35 = vadd.f32 %v2422_v51, %v2226_v18  ;;  %v1056_v18 = vmul.f32 %v999_v7, %v832_v39  ;;  %v6963_v7 = vld [vmem:[%s10629_s5 + $0x540] sm:$0xff]  ;;  %v1090_v39 = vld [vmem:[#allocation2 + $0xd1] sm:$0xff] }
 0x1db   : > { %3134 = vperm.xlu0 %7408, %v6962_v37  }
 0x1dc   : > { %3622 = vperm.xlu2 %7407, %v7025_v20   ;;  %2631 = vperm.xlu1 %7409, %v6896_v62   ;;  %v6897_v20 = vld [vmem:[%s10629_s5 + $0x440] sm:$0xff]  ;;  %v833_v62 = vld [vmem:[#allocation2 + $0xd0] sm:$0xff] }
 0x1dd   : > { %v1676_v50 = vpop.f32.mrf.mxu2  ;;  %v1262_v51 = vpop.permute.xlu0 %1261 }
 0x1de   : > { %v8542_v34 = vadd.f32 %v1676_v50, %v1464_v48  ;;  %v8544_v33 = vpop.f32.mrf.mxu3  ;;  %v8546_v53 = vpop.permute.xlu2 %1018  ;;  %6882 = vmatmul.msk.f32.gmra.mxu0 %vm773_vm4, %v2276_v12  ;;  %v7026_v48 = vld [vmem:[%s10629_s5 + $0x628] sm:$0xff]  ;;  %v2277_v12 = vld [vmem:[#allocation2 + $0xd3] sm:$0xff] }
 0x1df   : > { %v1931_v55 = vpop.permute.xlu1 %1930  ;;  %v1467_v0 = vpop.f32.mrf.mxu1 }
 0x1e0   : > { %v1996_v46 = vmul.f32 %v1931_v55, %v1771_v16 }
 0x1e1   : > { %6749 = vmatmul.msk.f32.gmra.mxu1 %vm773_vm4, %v1314_v28  ;;  %v1315_v28 = vmul.f32 %v1262_v51, %v1090_v39  ;;  %v6964_v51 = vld [vmem:[%s10629_s5 + $0x548] sm:$0xff] }
 0x1e2   : > { %6782 = vmatmul.msk.f32.gmra.mxu2 %vm773_vm4, %v1056_v18  ;;  %6846 = vmatmul.msk.f32.gmra.mxu3 %vm773_vm4, %v1996_v46  ;;  %v1772_v18 = vld [vmem:[#allocation2 + $0xc2] sm:$0xff]  ;;  %v1057_v46 = vmul.f32 %v8468_v45, %v833_v62  ;;  %v1091_v62 = vld [vmem:[#allocation2 + $0xd9] sm:$0xff] }
 0x1e3   : > { %3139 = vperm.xlu0 %7408, %v6963_v7  }
 0x1e4   : > { %3627 = vperm.xlu2 %7407, %v7026_v48   ;;  %2636 = vperm.xlu1 %7409, %v6897_v20   ;;  %v1997_v48 = vmul.f32 %v8506_v6, %v1772_v18  ;;  %v6898_v20 = vld [vmem:[%s10629_s5 + $0x448] sm:$0xff]  ;;  %v2278_v18 = vld [vmem:[#allocation2 + $0xdb] sm:$0xff] }
 0x1e5   : > { %v1679_v44 = vpop.f32.mrf.mxu2  ;;  %v1009_v17 = vpop.permute.xlu0 %1008 }
 0x1e6   : > { %v8562_v37 = vadd.f32 %v1679_v44, %v1467_v0  ;;  %v8564_v50 = vpop.f32.mrf.mxu3  ;;  %v740_v9 = vpop.permute.xlu2 %739  ;;  %6883 = vmatmul.msk.f32.gmra.mxu0 %vm773_vm4, %v2277_v12  ;;  %v7027_v0 = vld [vmem:[%s10629_s5 + $0x630] sm:$0xff] }
 0x1e7   : > { %10727 = vst [vmem:[#allocation30_spill] sm:$0xff] %v8564_v50  ;;  %v1267_v55 = vpop.permute.xlu1 %1266  ;;  %v1470_v16 = vpop.f32.mrf.mxu1 }
 0x1e8   : > { %10726 = vst [vmem:[#allocation29_spill] sm:$0xff] %v8562_v37  ;;  %v3543_v37 = vld [vmem:[#allocation2 + $0x46] sm:$0xff] }
 0x1e9   : > { %805 = vst.msk [vmem:[#allocation2 + $0xfb] sm:$0xff] %vm773_vm4, %v740_v9  ;;  %6750 = vmatmul.msk.f32.gmra.mxu1 %vm773_vm4, %v1315_v28  ;;  %v834_v9 = vld [vmem:[#allocation2 + $0xd8] sm:$0xff]  ;;  %v1316_v28 = vmul.f32 %v1267_v55, %v1091_v62  ;;  %v1092_v55 = vld [vmem:[#allocation2 + $0xe1] sm:$0xff] }
 0x1ea   : > { %6783 = vmatmul.msk.f32.gmra.mxu2 %vm773_vm4, %v1057_v46  ;;  %6847 = vmatmul.msk.f32.gmra.mxu3 %vm773_vm4, %v1997_v48  ;;  %v1058_v46 = vmul.f32 %v1009_v17, %v834_v9  ;;  %v6899_v48 = vld [vmem:[%s10629_s5 + $0x450] sm:$0xff]  ;;  %v2279_v9 = vld [vmem:[#allocation2 + $0xe3] sm:$0xff] }
 0x1eb   : > { %3144 = vperm.xlu0 %7408, %v6964_v51   ;;  %v6965_v17 = vld [vmem:[%s10629_s5 + $0x550] sm:$0xff]  ;;  %v835_v51 = vld [vmem:[#allocation2 + $0xe0] sm:$0xff] }
 0x1ec   : > { %3632 = vperm.xlu2 %7407, %v7027_v0   ;;  %2641 = vperm.xlu1 %7409, %v6898_v20  }
 0x1ed   : > { %v1682_v45 = vpop.f32.mrf.mxu2  ;;  %v736_v50 = vpop.permute.xlu0 %735 }
 0x1ee   : > { %v8582_v6 = vadd.f32 %v1682_v45, %v1470_v16  ;;  %v8584_v7 = vpop.f32.mrf.mxu3  ;;  %v8586_v44 = vpop.permute.xlu2 %1950  ;;  %6884 = vmatmul.msk.f32.gmra.mxu0 %vm773_vm4, %v2278_v18  ;;  %803 = vst.msk [vmem:[#allocation2 + $0xeb] sm:$0xff] %vm773_vm4, %v736_v50  ;;  %v7028_v16 = vld [vmem:[%s10629_s5 + $0x638] sm:$0xff] }
 0x1ef   : > { %10729 = vst [vmem:[#allocation32_spill] sm:$0xff] %v8584_v7  ;;  %v1014_v39 = vpop.permute.xlu1 %1013  ;;  %v1473_v12 = vpop.f32.mrf.mxu1 }
 0x1f0   : > { %10728 = vst [vmem:[#allocation31_spill] sm:$0xff] %v8582_v6  ;;  %v1059_v18 = vmul.f32 %v1014_v39, %v835_v51  ;;  %v6966_v39 = vld [vmem:[%s10629_s5 + $0x558] sm:$0xff]  ;;  %v3535_v6 = vld [vmem:[#allocation2 + $0x6] sm:$0xff] }
 0x1f1   : > { %6751 = vmatmul.msk.f32.gmra.mxu1 %vm773_vm4, %v1316_v28 }
 0x1f2   : > { %6784 = vmatmul.msk.f32.gmra.mxu2 %vm773_vm4, %v1058_v46  ;;  %v1773_v46 = vld [vmem:[#allocation2 + $0xca] sm:$0xff] }
 0x1f3   : > { %3149 = vperm.xlu0 %7408, %v6965_v17   ;;  %v6900_v17 = vld [vmem:[%s10629_s5 + $0x458] sm:$0xff] }
 0x1f4   : > { %3637 = vperm.xlu2 %7407, %v7028_v16   ;;  %2646 = vperm.xlu1 %7409, %v6899_v48   ;;  %v1317_v16 = vmul.f32 %v8524_v22, %v1092_v55  ;;  %v7154_v22 = vld [vmem:[%s10630_s6 + $0x10] sm:$0x3f] }
 0x1f5   : > { %v1685_v50 = vpop.f32.mrf.mxu2  ;;  %v1941_v7 = vpop.permute.xlu0 %1940  ;;  %7155 = vmatpush.msk.msrb.mxu2 %vm1419_vm2, %v7154_v22  ;;  %v7030_v22 = vld [vmem:[%s10629_s5 + $0x648] sm:$0xff] }
 0x1f6   : > { %v8601_v0 = vadd.f32 %v1685_v50, %v1473_v12  ;;  %v8603_v20 = vpop.permute.xlu2 %1955  ;;  %v8605_v28 = vpop.f32.mrf.mxu3  ;;  %6885 = vmatmul.msk.f32.gmra.mxu0 %vm773_vm4, %v2279_v9  ;;  %v1998_v48 = vmul.f32 %v1941_v7, %v1773_v46  ;;  %v7029_v12 = vld [vmem:[%s10629_s5 + $0x640] sm:$0xff]  ;;  %v836_v50 = vld [vmem:[#allocation2 + $0xe8] sm:$0xff]  ;;  %v1774_v9 = vld [vmem:[#allocation2 + $0xd2] sm:$0xff] }
 0x1f7   : > { %v738_v45 = vpop.permute.xlu1 %737  ;;  %v1476_v62 = vpop.f32.mrf.mxu1  ;;  %10731 = vst [vmem:[#allocation34_spill] sm:$0xff] %v8605_v28  ;;  %v2280_v46 = vld [vmem:[#allocation2 + $0xeb] sm:$0xff] }
 0x1f8   : > { %10730 = vst [vmem:[#allocation33_spill] sm:$0xff] %v8601_v0  ;;  %6848 = vmatmul.msk.f32.gmra.mxu3 %vm773_vm4, %v1998_v48  ;;  %v1093_v48 = vld [vmem:[#allocation2 + $0xe9] sm:$0xff] }
 0x1f9   : > { %804 = vst.msk [vmem:[#allocation2 + $0xf3] sm:$0xff] %vm773_vm4, %v738_v45  ;;  %6752 = vmatmul.msk.f32.gmra.mxu1 %vm773_vm4, %v1317_v16 }
 0x1fa   : > { %6785 = vmatmul.msk.f32.gmra.mxu2 %vm773_vm4, %v1059_v18 }
 0x1fb   : > { %3154 = vperm.xlu0 %7408, %v6966_v39  }
 0x1fc   : > { %3642 = vperm.xlu2 %7407, %v7029_v12   ;;  %2651 = vperm.xlu1 %7409, %v6900_v17   ;;  %v1060_v17 = vmul.f32 %v8546_v53, %v836_v50  ;;  %v6967_v53 = vld [vmem:[%s10629_s5 + $0x560] sm:$0xff] }
 0x1fd   : > { %v1688_v7 = vpop.f32.mrf.mxu2  ;;  %v1277_v12 = vpop.permute.xlu0 %1276 }
 0x1fe   : > { %v8626_v55 = vadd.f32 %v1688_v7, %v1476_v62  ;;  %v8628_v51 = vpop.permute.xlu2 %1960  ;;  %6886 = vmatmul.msk.f32.gmra.mxu0 %vm773_vm4, %v2280_v46  ;;  %v1318_v39 = vmul.f32 %v1277_v12, %v1093_v48  ;;  %v6901_v62 = vld [vmem:[%s10629_s5 + $0x460] sm:$0xff] }
 0x1ff   : > { %v1946_v45 = vpop.permute.xlu1 %1945  ;;  %v1479_v18 = vpop.f32.mrf.mxu1  ;;  %v4182_v7 = vld [vmem:[%s10630_s6] sm:$0x3f] }
 0x200   : > { %10732 = vst [vmem:[#allocation35_spill] sm:$0xff] %v8626_v55  ;;  %v1999_v16 = vmul.f32 %v1946_v45, %v1774_v9  ;;  %v8641_v45 = vpop.f32.mrf.mxu3  ;;  %7121 = vmatpush.msk.msrb.mxu1 %vm1419_vm2, %v4182_v7  ;;  %v1094_v12 = vld [vmem:[#allocation2 + $0xf1] sm:$0xff] }
 0x201   : > { %10733 = vst [vmem:[#allocation36_spill] sm:$0xff] %v8641_v45  ;;  %6753 = vmatmul.msk.f32.gmra.mxu1 %vm773_vm4, %v1318_v39  ;;  %v2281_v45 = vld [vmem:[#allocation2 + $0xf3] sm:$0xff] }
 0x202   : > { %6786 = vmatmul.msk.f32.gmra.mxu2 %vm773_vm4, %v1060_v17  ;;  %6849 = vmatmul.msk.f32.gmra.mxu3 %vm773_vm4, %v1999_v16  ;;  %v837_v28 = vld [vmem:[#allocation2 + $0xf0] sm:$0xff]  ;;  %v1775_v39 = vld [vmem:[#allocation2 + $0xda] sm:$0xff] }
 0x203   : > { %3159 = vperm.xlu0 %7408, %v6967_v53   ;;  %v7031_v16 = vld [vmem:[%s10629_s5 + $0x650] sm:$0xff]  ;;  %v1095_v53 = vld [vmem:[#allocation2 + $0xf9] sm:$0xff] }
 0x204   : > { %3647 = vperm.xlu2 %7407, %v7030_v22   ;;  %2656 = vperm.xlu1 %7409, %v6901_v62   ;;  %v6902_v22 = vld [vmem:[%s10629_s5 + $0x468] sm:$0xff] }
 0x205   : > { %v1691_v50 = vpop.f32.mrf.mxu2  ;;  %v1024_v0 = vpop.permute.xlu0 %1023  ;;  %v6968_v62 = vld [vmem:[%s10629_s5 + $0x568] sm:$0xff] }
 0x206   : > { %v8650_v9 = vadd.f32 %v1691_v50, %v1479_v18  ;;  %v8652_v46 = vpop.permute.xlu2 %1965  ;;  %6887 = vmatmul.msk.f32.gmra.mxu0 %vm773_vm4, %v2281_v45  ;;  %v1061_v7 = vmul.f32 %v1024_v0, %v837_v28  ;;  %v2000_v18 = vmul.f32 %v8586_v44, %v1775_v39 }
 0x207   : > { %v1282_v48 = vpop.permute.xlu1 %1281  ;;  %v1482_v17 = vpop.f32.mrf.mxu1 }
 0x208   : > { %10734 = vst [vmem:[#allocation37_spill] sm:$0xff] %v8650_v9  ;;  %v1319_v55 = vmul.f32 %v1282_v48, %v1094_v12  ;;  %v8667_v45 = vpop.f32.mrf.mxu3  ;;  %v2282_v12 = vld [vmem:[#allocation2 + $0xfb] sm:$0xff] }
 0x209   : > { %10735 = vst [vmem:[#allocation38_spill] sm:$0xff] %v8667_v45 }
 0x20a   : > { %6754 = vmatmul.msk.f32.gmra.mxu1 %vm773_vm4, %v1319_v55  ;;  %6787 = vmatmul.msk.f32.gmra.mxu2 %vm773_vm4, %v1061_v7  ;;  %v838_v55 = vld [vmem:[#allocation2 + $0xf8] sm:$0xff]  ;;  %v1776_v7 = vld [vmem:[#allocation2 + $0xe2] sm:$0xff] }
 0x20b   : > { %6850 = vmatmul.msk.f32.gmra.mxu3 %vm773_vm4, %v2000_v18  ;;  %3164 = vperm.xlu0 %7408, %v6968_v62   ;;  %v6903_v18 = vld [vmem:[%s10629_s5 + $0x470] sm:$0xff] }
 0x20c   : > { %3652 = vperm.xlu2 %7407, %v7031_v16   ;;  %2661 = vperm.xlu1 %7409, %v6902_v22   ;;  %v7032_v16 = vld [vmem:[%s10629_s5 + $0x658] sm:$0xff]  ;;  %v6969_v22 = vld [vmem:[%s10629_s5 + $0x570] sm:$0xff] }
 0x20d   : > { %v1694_v44 = vpop.f32.mrf.mxu2  ;;  %v1029_v9 = vpop.permute.xlu0 %1028 }
 0x20e   : > { %v8670_v0 = vadd.f32 %v1694_v44, %v1482_v17  ;;  %v8672_v28 = vpop.permute.xlu2 %1970  ;;  %6888 = vmatmul.msk.f32.gmra.mxu0 %vm773_vm4, %v2282_v12  ;;  %v1062_v45 = vmul.f32 %v1029_v9, %v838_v55  ;;  %v2001_v17 = vmul.f32 %v8603_v20, %v1776_v7  ;;  %v3032_v7 = vld [vmem:[#allocation2 + $0x5] sm:$0xff] }
 0x20f   : > { %v1287_v50 = vpop.permute.xlu1 %1286  ;;  %v1485_v48 = vpop.f32.mrf.mxu1 }
 0x210   : > { %10736 = vst [vmem:[#allocation39_spill] sm:$0xff] %v8670_v0  ;;  %v1320_v39 = vmul.f32 %v1287_v50, %v1095_v53  ;;  %v8688_v62 = vpop.f32.mrf.mxu3  ;;  %v2529_v50 = vld [vmem:[#allocation2 + $0x4] sm:$0xff] }
 0x211   : > { %10737 = vst [vmem:[#allocation40_spill] sm:$0xff] %v8688_v62  ;;  %v1777_v0 = vld [vmem:[#allocation2 + $0xea] sm:$0xff]  ;;  %v1778_v62 = vld [vmem:[#allocation2 + $0xf2] sm:$0xff] }
 0x212   : > { %6755 = vmatmul.msk.f32.gmra.mxu1 %vm773_vm4, %v1320_v39  ;;  %6788 = vmatmul.msk.f32.gmra.mxu2 %vm773_vm4, %v1062_v45 }
 0x213   : > { %6851 = vmatmul.msk.f32.gmra.mxu3 %vm773_vm4, %v2001_v17  ;;  %3169 = vperm.xlu0 %7408, %v6969_v22   ;;  %v2002_v17 = vmul.f32 %v8628_v51, %v1777_v0 }
 0x214   : > { %3657 = vperm.xlu2 %7407, %v7032_v16   ;;  %2666 = vperm.xlu1 %7409, %v6903_v18   ;;  %v7033_v16 = vld [vmem:[%s10629_s5 + $0x660] sm:$0xff]  ;;  %v6970_v18 = vld [vmem:[%s10629_s5 + $0x578] sm:$0xff] }
 0x215   : > { %v1697_v9 = vpop.f32.mrf.mxu2  ;;  %v3100_v39 = vpop.permute.xlu0 %3099 }
 0x216   : > { %v8690_v20 = vadd.f32 %v1697_v9, %v1485_v48  ;;  %v8692_v44 = vpop.permute.xlu2 %3602  ;;  %v3257_v45 = vmul.f32 %v3100_v39, %v3032_v7  ;;  %v6904_v48 = vld [vmem:[%s10629_s5 + $0x478] sm:$0xff] }
 0x217   : > { %v2597_v53 = vpop.permute.xlu1 %2596  ;;  %v1488_v12 = vpop.f32.mrf.mxu1 }
 0x218   : > { %10738 = vst [vmem:[#allocation41_spill] sm:$0xff] %v8690_v20  ;;  %v2754_v55 = vmul.f32 %v2597_v53, %v2529_v50  ;;  %v2530_v53 = vld [vmem:[#allocation2 + $0xc] sm:$0xff]  ;;  %v8711_v7 = vpop.f32.mrf.mxu3 }
 0x219   : > { %10740 = vst [vmem:[#allocation43_spill] sm:$0xff] %v8711_v7  ;;  %v3033_v20 = vld [vmem:[#allocation2 + $0xd] sm:$0xff]  ;;  %v1779_v7 = vld [vmem:[#allocation2 + $0xfa] sm:$0xff] }
 0x21a   : > { %6923 = vmatmul.msk.f32.vlgmr.msra.gmra.mxu1 %vm773_vm4, %v2754_v55  ;;  %6989 = vmatmul.msk.f32.vlgmr.msra.gmra.mxu2 %vm773_vm4, %v3257_v45 }
 0x21b   : > { %6852 = vmatmul.msk.f32.gmra.mxu3 %vm773_vm4, %v2002_v17  ;;  %3174 = vperm.xlu0 %7408, %v6970_v18   ;;  %v2003_v17 = vmul.f32 %v8652_v46, %v1778_v62  ;;  %v8725_v18 = vpop.f32.mrf.mxu0 }
 0x21c   : > { %3662 = vperm.xlu2 %7407, %v7033_v16   ;;  %2671 = vperm.xlu1 %7409, %v6904_v48   ;;  %v7034_v16 = vld [vmem:[%s10629_s5 + $0x668] sm:$0xff]  ;;  %v6971_v48 = vld [vmem:[%s10629_s5 + $0x580] sm:$0xff] }
 0x21d   : > { %v1700_v22 = vpop.f32.mrf.mxu2  ;;  %v3105_v55 = vpop.permute.xlu0 %3104 }
 0x21e   : > { %v8707_v9 = vadd.f32 %v1700_v22, %v1488_v12  ;;  %v8709_v51 = vpop.permute.xlu2 %3607  ;;  %v3258_v45 = vmul.f32 %v3105_v55, %v3033_v20  ;;  %v6905_v12 = vld [vmem:[%s10629_s5 + $0x480] sm:$0xff]  ;;  %v2531_v22 = vld [vmem:[#allocation2 + $0x14] sm:$0xff] }
 0x21f   : > { %v2602_v0 = vpop.permute.xlu1 %2601  ;;  %v1491_v50 = vpop.f32.mrf.mxu1 }
 0x220   : > { %10739 = vst [vmem:[#allocation42_spill] sm:$0xff] %v8707_v9  ;;  %v2755_v39 = vmul.f32 %v2602_v0, %v2530_v53  ;;  %v3034_v9 = vld [vmem:[#allocation2 + $0x15] sm:$0xff] }
 0x222   : > { %6924 = vmatmul.msk.f32.gmra.mxu1 %vm773_vm4, %v2755_v39  ;;  %6990 = vmatmul.msk.f32.gmra.mxu2 %vm773_vm4, %v3258_v45 }
 0x223   : > { %6853 = vmatmul.msk.f32.gmra.mxu3 %vm773_vm4, %v2003_v17  ;;  %3179 = vperm.xlu0 %7408, %v6971_v48   ;;  %v7035_v17 = vld [vmem:[%s10629_s5 + $0x670] sm:$0xff]  ;;  %v6972_v48 = vld [vmem:[%s10629_s5 + $0x588] sm:$0xff] }
 0x224   : > { %3667 = vperm.xlu2 %7407, %v7034_v16   ;;  %2676 = vperm.xlu1 %7409, %v6905_v12   ;;  %v2004_v16 = vmul.f32 %v8672_v28, %v1779_v7  ;;  %v8736_v12 = vpop.f32.mrf.mxu3 }
 0x225   : > { %v1703_v46 = vpop.f32.mrf.mxu2  ;;  %v3110_v39 = vpop.permute.xlu0 %3109  ;;  %10742 = vst [vmem:[#allocation45_spill] sm:$0xff] %v8736_v12  ;;  %v3035_v12 = vld [vmem:[#allocation2 + $0x1d] sm:$0xff] }
 0x226   : > { %v8728_v62 = vadd.f32 %v1703_v46, %v1491_v50  ;;  %v8730_v20 = vpop.permute.xlu2 %3612  ;;  %v3259_v45 = vmul.f32 %v3110_v39, %v3034_v9  ;;  %v6906_v50 = vld [vmem:[%s10629_s5 + $0x488] sm:$0xff]  ;;  %v8747_v9 = vpop.f32.mrf.mxu0 }
 0x227   : > { %v2607_v0 = vpop.permute.xlu1 %2606  ;;  %v1494_v53 = vpop.f32.mrf.mxu1  ;;  %10743 = vst [vmem:[#allocation46_spill] sm:$0xff] %v8747_v9  ;;  %v3536_v9 = vld [vmem:[#allocation2 + $0xe] sm:$0xff] }
 0x228   : > { %10741 = vst [vmem:[#allocation44_spill] sm:$0xff] %v8728_v62  ;;  %v2756_v55 = vmul.f32 %v2607_v0, %v2531_v22  ;;  %v2532_v22 = vld [vmem:[#allocation2 + $0x1c] sm:$0xff] }
 0x22a   : > { %6925 = vmatmul.msk.f32.gmra.mxu1 %vm773_vm4, %v2756_v55  ;;  %6991 = vmatmul.msk.f32.gmra.mxu2 %vm773_vm4, %v3259_v45 }
 0x22b   : > { %6854 = vmatmul.msk.f32.gmra.mxu3 %vm773_vm4, %v2004_v16  ;;  %3184 = vperm.xlu0 %7408, %v6972_v48   ;;  %v3760_v16 = vmul.f32 %v8692_v44, %v3535_v6 }
 0x22c   : > { %3672 = vperm.xlu2 %7407, %v7035_v17   ;;  %2681 = vperm.xlu1 %7409, %v6906_v50   ;;  %v7036_v17 = vld [vmem:[%s10629_s5 + $0x678] sm:$0xff]  ;;  %v6973_v50 = vld [vmem:[%s10629_s5 + $0x590] sm:$0xff]  ;;  %v8765_v48 = vpop.f32.mrf.mxu3 }
 0x22d   : > { %v1706_v28 = vpop.f32.mrf.mxu2  ;;  %v3115_v55 = vpop.permute.xlu0 %3114  ;;  %10745 = vst [vmem:[#allocation48_spill] sm:$0xff] %v8765_v48 }
 0x22e   : > { %v8749_v7 = vadd.f32 %v1706_v28, %v1494_v53  ;;  %v8751_v46 = vpop.permute.xlu2 %3617  ;;  %v3260_v45 = vmul.f32 %v3115_v55, %v3035_v12  ;;  %v6907_v53 = vld [vmem:[%s10629_s5 + $0x490] sm:$0xff]  ;;  %v8772_v55 = vpop.f32.mrf.mxu0 }
 0x22f   : > { %v2612_v0 = vpop.permute.xlu1 %2611  ;;  %v1497_v39 = vpop.f32.mrf.mxu1  ;;  %10747 = vst [vmem:[#allocation50_spill] sm:$0xff] %v8772_v55  ;;  %v3537_v55 = vld [vmem:[#allocation2 + $0x16] sm:$0xff] }
 0x230   : > { %10744 = vst [vmem:[#allocation47_spill] sm:$0xff] %v8749_v7  ;;  %v2757_v62 = vmul.f32 %v2612_v0, %v2532_v22  ;;  %v2533_v22 = vld [vmem:[#allocation2 + $0x24] sm:$0xff] }
 0x231   : > { %v3036_v7 = vld [vmem:[#allocation2 + $0x25] sm:$0xff] }
 0x232   : > { %6926 = vmatmul.msk.f32.gmra.mxu1 %vm773_vm4, %v2757_v62  ;;  %6992 = vmatmul.msk.f32.gmra.mxu2 %vm773_vm4, %v3260_v45 }
 0x233   : > { %7055 = vmatmul.msk.f32.vlgmr.msra.gmra.mxu3 %vm773_vm4, %v3760_v16  ;;  %3189 = vperm.xlu0 %7408, %v6973_v50   ;;  %v3761_v16 = vmul.f32 %v8709_v51, %v3536_v9 }
 0x234   : > { %3677 = vperm.xlu2 %7407, %v7036_v17   ;;  %2686 = vperm.xlu1 %7409, %v6907_v53   ;;  %v7037_v17 = vld [vmem:[%s10629_s5 + $0x680] sm:$0xff]  ;;  %v6974_v53 = vld [vmem:[%s10629_s5 + $0x598] sm:$0xff]  ;;  %v8787_v50 = vpop.f32.mrf.mxu3 }
 0x235   : > { %v1709_v6 = vpop.f32.mrf.mxu2  ;;  %v3120_v45 = vpop.permute.xlu0 %3119  ;;  %10748 = vst [vmem:[#allocation51_spill] sm:$0xff] %v8787_v50  ;;  %v3038_v50 = vld [vmem:[#allocation2 + $0x35] sm:$0xff] }
 0x236   : > { %v8768_v44 = vadd.f32 %v1709_v6, %v1497_v39  ;;  %v8770_v12 = vpop.permute.xlu2 %3622  ;;  %v3261_v48 = vmul.f32 %v3120_v45, %v3036_v7  ;;  %v6908_v39 = vld [vmem:[%s10629_s5 + $0x498] sm:$0xff] }
 0x237   : > { %v2617_v28 = vpop.permute.xlu1 %2616  ;;  %v1500_v0 = vpop.f32.mrf.mxu1 }
 0x238   : > { %10746 = vst [vmem:[#allocation49_spill] sm:$0xff] %v8768_v44  ;;  %v2758_v62 = vmul.f32 %v2617_v28, %v2533_v22  ;;  %v2534_v28 = vld [vmem:[#allocation2 + $0x2c] sm:$0xff] }
 0x239   : > { %v3037_v44 = vld [vmem:[#allocation2 + $0x2d] sm:$0xff] }
 0x23a   : > { %6927 = vmatmul.msk.f32.gmra.mxu1 %vm773_vm4, %v2758_v62  ;;  %6993 = vmatmul.msk.f32.gmra.mxu2 %vm773_vm4, %v3261_v48 }
 0x23b   : > { %7056 = vmatmul.msk.f32.gmra.mxu3 %vm773_vm4, %v3761_v16  ;;  %3194 = vperm.xlu0 %7408, %v6974_v53   ;;  %v8796_v16 = vpop.f32.mrf.mxu0  ;;  %v6975_v53 = vld [vmem:[%s10629_s5 + $0x5a0] sm:$0xff] }
 0x23c   : > { %3682 = vperm.xlu2 %7407, %v7037_v17   ;;  %2691 = vperm.xlu1 %7409, %v6908_v39   ;;  %v7038_v17 = vld [vmem:[%s10629_s5 + $0x688] sm:$0xff]  ;;  %10750 = vst [vmem:[#allocation53_spill] sm:$0xff] %v8796_v16  ;;  %v3762_v39 = vmul.f32 %v8730_v20, %v3537_v55  ;;  %v3538_v16 = vld [vmem:[#allocation2 + $0x1e] sm:$0xff] }
 0x23d   : > { %v1712_v7 = vpop.f32.mrf.mxu2  ;;  %v3125_v62 = vpop.permute.xlu0 %3124 }
 0x23e   : > { %v8789_v51 = vadd.f32 %v1712_v7, %v1500_v0  ;;  %v8791_v9 = vpop.permute.xlu2 %3627  ;;  %v3262_v48 = vmul.f32 %v3125_v62, %v3037_v44  ;;  %v6909_v0 = vld [vmem:[%s10629_s5 + $0x4a0] sm:$0xff]  ;;  %v8808_v7 = vpop.f32.mrf.mxu3 }
 0x23f   : > { %v2622_v6 = vpop.permute.xlu1 %2621  ;;  %v1503_v22 = vpop.f32.mrf.mxu1  ;;  %10751 = vst [vmem:[#allocation54_spill] sm:$0xff] %v8808_v7  ;;  %v3539_v7 = vld [vmem:[#allocation2 + $0x26] sm:$0xff] }
 0x240   : > { %10749 = vst [vmem:[#allocation52_spill] sm:$0xff] %v8789_v51  ;;  %v2759_v45 = vmul.f32 %v2622_v6, %v2534_v28  ;;  %v2535_v6 = vld [vmem:[#allocation2 + $0x34] sm:$0xff] }
 0x242   : > { %6928 = vmatmul.msk.f32.gmra.mxu1 %vm773_vm4, %v2759_v45  ;;  %6994 = vmatmul.msk.f32.gmra.mxu2 %vm773_vm4, %v3262_v48 }
 0x243   : > { %7057 = vmatmul.msk.f32.gmra.mxu3 %vm773_vm4, %v3762_v39  ;;  %3199 = vperm.xlu0 %7408, %v6975_v53   ;;  %v3763_v39 = vmul.f32 %v8751_v46, %v3538_v16  ;;  %v8826_v53 = vpop.f32.mrf.mxu0 }
 0x244   : > { %3687 = vperm.xlu2 %7407, %v7038_v17   ;;  %2696 = vperm.xlu1 %7409, %v6909_v0   ;;  %v7039_v17 = vld [vmem:[%s10629_s5 + $0x690] sm:$0xff]  ;;  %v6976_v0 = vld [vmem:[%s10629_s5 + $0x5a8] sm:$0xff]  ;;  %10753 = vst [vmem:[#allocation56_spill] sm:$0xff] %v8826_v53 }
 0x245   : > { %v1715_v44 = vpop.f32.mrf.mxu2  ;;  %v3130_v45 = vpop.permute.xlu0 %3129 }
 0x246   : > { %v8810_v20 = vadd.f32 %v1715_v44, %v1503_v22  ;;  %v8812_v55 = vpop.permute.xlu2 %3632  ;;  %v3263_v48 = vmul.f32 %v3130_v45, %v3038_v50  ;;  %v6910_v22 = vld [vmem:[%s10629_s5 + $0x4a8] sm:$0xff]  ;;  %v8833_v45 = vpop.f32.mrf.mxu3 }
 0x247   : > { %v2627_v28 = vpop.permute.xlu1 %2626  ;;  %v1506_v62 = vpop.f32.mrf.mxu1  ;;  %10755 = vst [vmem:[#allocation58_spill] sm:$0xff] %v8833_v45  ;;  %v3540_v45 = vld [vmem:[#allocation2 + $0x2e] sm:$0xff] }
 0x248   : > { %10752 = vst [vmem:[#allocation55_spill] sm:$0xff] %v8810_v20  ;;  %v2760_v51 = vmul.f32 %v2627_v28, %v2535_v6  ;;  %v2536_v6 = vld [vmem:[#allocation2 + $0x3c] sm:$0xff] }
 0x249   : > { %v3039_v20 = vld [vmem:[#allocation2 + $0x3d] sm:$0xff] }
 0x24a   : > { %6929 = vmatmul.msk.f32.gmra.mxu1 %vm773_vm4, %v2760_v51  ;;  %6995 = vmatmul.msk.f32.gmra.mxu2 %vm773_vm4, %v3263_v48 }
 0x24b   : > { %7058 = vmatmul.msk.f32.gmra.mxu3 %vm773_vm4, %v3763_v39  ;;  %3204 = vperm.xlu0 %7408, %v6976_v0   ;;  %v3764_v39 = vmul.f32 %v8770_v12, %v3539_v7  ;;  %v8848_v0 = vpop.f32.mrf.mxu0 }
 0x24c   : > { %3692 = vperm.xlu2 %7407, %v7039_v17   ;;  %2701 = vperm.xlu1 %7409, %v6910_v22   ;;  %v7040_v17 = vld [vmem:[%s10629_s5 + $0x698] sm:$0xff]  ;;  %v6977_v22 = vld [vmem:[%s10629_s5 + $0x5b0] sm:$0xff]  ;;  %10756 = vst [vmem:[#allocation59_spill] sm:$0xff] %v8848_v0 }
 0x24d   : > { %v1718_v46 = vpop.f32.mrf.mxu2  ;;  %v3135_v48 = vpop.permute.xlu0 %3134 }
 0x24e   : > { %v8829_v50 = vadd.f32 %v1718_v46, %v1506_v62  ;;  %v8831_v16 = vpop.permute.xlu2 %3637  ;;  %v3264_v53 = vmul.f32 %v3135_v48, %v3039_v20  ;;  %v6911_v62 = vld [vmem:[%s10629_s5 + $0x4b0] sm:$0xff] }
 0x24f   : > { %v2632_v44 = vpop.permute.xlu1 %2631  ;;  %v1509_v28 = vpop.f32.mrf.mxu1 }
 0x250   : > { %10754 = vst [vmem:[#allocation57_spill] sm:$0xff] %v8829_v50  ;;  %v2761_v51 = vmul.f32 %v2632_v44, %v2536_v6  ;;  %v2537_v44 = vld [vmem:[#allocation2 + $0x44] sm:$0xff] }
 0x251   : > { %v3040_v50 = vld [vmem:[#allocation2 + $0x45] sm:$0xff] }
 0x252   : > { %6930 = vmatmul.msk.f32.gmra.mxu1 %vm773_vm4, %v2761_v51  ;;  %6996 = vmatmul.msk.f32.gmra.mxu2 %vm773_vm4, %v3264_v53 }
 0x253   : > { %7059 = vmatmul.msk.f32.gmra.mxu3 %vm773_vm4, %v3764_v39  ;;  %3209 = vperm.xlu0 %7408, %v6977_v22   ;;  %v3765_v39 = vmul.f32 %v8791_v9, %v3540_v45  ;;  %v6978_v22 = vld [vmem:[%s10629_s5 + $0x5b8] sm:$0xff]  ;;  %v8873_v0 = vpop.f32.mrf.mxu0 }
 0x254   : > { %3697 = vperm.xlu2 %7407, %v7040_v17   ;;  %2706 = vperm.xlu1 %7409, %v6911_v62   ;;  %v7041_v17 = vld [vmem:[%s10629_s5 + $0x6a0] sm:$0xff]  ;;  %v8858_v62 = vpop.f32.mrf.mxu3  ;;  %10760 = vst [vmem:[#allocation63_spill] sm:$0xff] %v8873_v0 }
 0x255   : > { %v1721_v20 = vpop.f32.mrf.mxu2  ;;  %v3140_v51 = vpop.permute.xlu0 %3139  ;;  %10758 = vst [vmem:[#allocation61_spill] sm:$0xff] %v8858_v62  ;;  %v3542_v0 = vld [vmem:[#allocation2 + $0x3e] sm:$0xff] }
 0x256   : > { %v8850_v12 = vadd.f32 %v1721_v20, %v1509_v28  ;;  %v8852_v7 = vpop.permute.xlu2 %3642  ;;  %v3265_v53 = vmul.f32 %v3140_v51, %v3040_v50  ;;  %v6912_v28 = vld [vmem:[%s10629_s5 + $0x4b8] sm:$0xff]  ;;  %v2538_v20 = vld [vmem:[#allocation2 + $0x4c] sm:$0xff] }
 0x257   : > { %v2637_v46 = vpop.permute.xlu1 %2636  ;;  %v1512_v6 = vpop.f32.mrf.mxu1 }
 0x258   : > { %10757 = vst [vmem:[#allocation60_spill] sm:$0xff] %v8850_v12  ;;  %v2762_v48 = vmul.f32 %v2637_v46, %v2537_v44  ;;  %v3041_v12 = vld [vmem:[#allocation2 + $0x4d] sm:$0xff] }
 0x25a   : > { %6931 = vmatmul.msk.f32.gmra.mxu1 %vm773_vm4, %v2762_v48  ;;  %6997 = vmatmul.msk.f32.gmra.mxu2 %vm773_vm4, %v3265_v53  ;;  %v3541_v48 = vld [vmem:[#allocation2 + $0x36] sm:$0xff] }
 0x25b   : > { %7060 = vmatmul.msk.f32.gmra.mxu3 %vm773_vm4, %v3765_v39  ;;  %3214 = vperm.xlu0 %7408, %v6978_v22   ;;  %v3766_v39 = vmul.f32 %v8812_v55, %v3541_v48  ;;  %v6979_v22 = vld [vmem:[%s10629_s5 + $0x5c0] sm:$0xff] }
 0x25c   : > { %3702 = vperm.xlu2 %7407, %v7041_v17   ;;  %2711 = vperm.xlu1 %7409, %v6912_v28   ;;  %v7042_v17 = vld [vmem:[%s10629_s5 + $0x6a8] sm:$0xff]  ;;  %v6913_v28 = vld [vmem:[%s10629_s5 + $0x4c0] sm:$0xff] }
 0x25d   : > { %v1724_v9 = vpop.f32.mrf.mxu2  ;;  %v3145_v62 = vpop.permute.xlu0 %3144 }
 0x25e   : > { %v8869_v50 = vadd.f32 %v1724_v9, %v1512_v6  ;;  %v8871_v45 = vpop.permute.xlu2 %3647  ;;  %v3266_v53 = vmul.f32 %v3145_v62, %v3041_v12  ;;  %v8879_v6 = vpop.f32.mrf.mxu3 }
 0x25f   : > { %v2642_v46 = vpop.permute.xlu1 %2641  ;;  %v1515_v44 = vpop.f32.mrf.mxu1  ;;  %10761 = vst [vmem:[#allocation64_spill] sm:$0xff] %v8879_v6 }
 0x260   : > { %10759 = vst [vmem:[#allocation62_spill] sm:$0xff] %v8869_v50  ;;  %v2763_v51 = vmul.f32 %v2642_v46, %v2538_v20  ;;  %v2539_v20 = vld [vmem:[#allocation2 + $0x54] sm:$0xff] }
 0x261   : > { %v3042_v50 = vld [vmem:[#allocation2 + $0x55] sm:$0xff] }
 0x262   : > { %6932 = vmatmul.msk.f32.gmra.mxu1 %vm773_vm4, %v2763_v51  ;;  %6998 = vmatmul.msk.f32.gmra.mxu2 %vm773_vm4, %v3266_v53  ;;  %v7043_v53 = vld [vmem:[%s10629_s5 + $0x6b0] sm:$0xff] }
 0x263   : > { %7061 = vmatmul.msk.f32.gmra.mxu3 %vm773_vm4, %v3766_v39  ;;  %3219 = vperm.xlu0 %7408, %v6979_v22   ;;  %v6980_v39 = vld [vmem:[%s10629_s5 + $0x5c8] sm:$0xff] }
 0x264   : > { %3707 = vperm.xlu2 %7407, %v7042_v17   ;;  %2716 = vperm.xlu1 %7409, %v6913_v28   ;;  %v3767_v17 = vmul.f32 %v8831_v16, %v3542_v0  ;;  %v8904_v28 = vpop.f32.mrf.mxu0 }
 0x265   : > { %v1727_v55 = vpop.f32.mrf.mxu2  ;;  %v3150_v6 = vpop.permute.xlu0 %3149  ;;  %10762 = vst [vmem:[#allocation65_spill] sm:$0xff] %v8904_v28  ;;  %v3043_v28 = vld [vmem:[#allocation2 + $0x5d] sm:$0xff] }
 0x266   : > { %v8890_v12 = vadd.f32 %v1727_v55, %v1515_v44  ;;  %v8892_v62 = vpop.permute.xlu2 %3652  ;;  %v3267_v51 = vmul.f32 %v3150_v6, %v3042_v50  ;;  %v6914_v44 = vld [vmem:[%s10629_s5 + $0x4c8] sm:$0xff]  ;;  %v8908_v50 = vpop.f32.mrf.mxu3  ;;  %v2540_v55 = vld [vmem:[#allocation2 + $0x5c] sm:$0xff] }
 0x267   : > { %v2647_v9 = vpop.permute.xlu1 %2646  ;;  %v1518_v46 = vpop.f32.mrf.mxu1  ;;  %10763 = vst [vmem:[#allocation66_spill] sm:$0xff] %v8908_v50  ;;  %v3044_v50 = vld [vmem:[#allocation2 + $0x65] sm:$0xff] }
 0x268   : > { %v2764_v48 = vmul.f32 %v2647_v9, %v2539_v20 }
 0x26a   : > { %6933 = vmatmul.msk.f32.gmra.mxu1 %vm773_vm4, %v2764_v48  ;;  %6999 = vmatmul.msk.f32.gmra.mxu2 %vm773_vm4, %v3267_v51 }
 0x26b   : > { %7062 = vmatmul.msk.f32.gmra.mxu3 %vm773_vm4, %v3767_v17  ;;  %3224 = vperm.xlu0 %7408, %v6980_v39   ;;  %v7044_v17 = vld [vmem:[%s10629_s5 + $0x6b8] sm:$0xff] }
 0x26c   : > { %3712 = vperm.xlu2 %7407, %v7043_v53   ;;  %2721 = vperm.xlu1 %7409, %v6914_v44   ;;  %v3768_v53 = vmul.f32 %v8852_v7, %v3543_v37  ;;  %v6981_v44 = vld [vmem:[%s10629_s5 + $0x5d0] sm:$0xff]  ;;  %v8928_v39 = vpop.f32.mrf.mxu0 }
 0x26d   : > { %v1730_v16 = vpop.f32.mrf.mxu2  ;;  %v3155_v48 = vpop.permute.xlu0 %3154  ;;  %10764 = vst [vmem:[#allocation67_spill] sm:$0xff] %v8928_v39  ;;  %v3045_v39 = vld [vmem:[#allocation2 + $0x6d] sm:$0xff] }
 0x26e   : > { %v8911_v0 = vadd.f32 %v1730_v16, %v1518_v46  ;;  %v8913_v6 = vpop.permute.xlu2 %3657  ;;  %v3268_v51 = vmul.f32 %v3155_v48, %v3043_v28  ;;  %v6915_v46 = vld [vmem:[%s10629_s5 + $0x4d0] sm:$0xff]  ;;  %v8930_v7 = vpop.f32.mrf.mxu3 }
 0x26f   : > { %v2652_v22 = vpop.permute.xlu1 %2651  ;;  %v1521_v9 = vpop.f32.mrf.mxu1  ;;  %10765 = vst [vmem:[#allocation68_spill] sm:$0xff] %v8930_v7 }
 0x270   : > { %v2765_v20 = vmul.f32 %v2652_v22, %v2540_v55  ;;  %v2541_v22 = vld [vmem:[#allocation2 + $0x64] sm:$0xff] }
 0x272   : > { %6934 = vmatmul.msk.f32.gmra.mxu1 %vm773_vm4, %v2765_v20  ;;  %7000 = vmatmul.msk.f32.gmra.mxu2 %vm773_vm4, %v3268_v51 }
 0x273   : > { %7063 = vmatmul.msk.f32.gmra.mxu3 %vm773_vm4, %v3768_v53  ;;  %3229 = vperm.xlu0 %7408, %v6981_v44   ;;  %v6982_v44 = vld [vmem:[%s10629_s5 + $0x5d8] sm:$0xff] }
 0x274   : > { %3717 = vperm.xlu2 %7407, %v7044_v17   ;;  %2726 = vperm.xlu1 %7409, %v6915_v46   ;;  %v7045_v17 = vld [vmem:[%s10629_s5 + $0x6c0] sm:$0xff]  ;;  %v3769_v46 = vmul.f32 %v8871_v45, %v3544_v31 }
 0x275   : > { %v1733_v37 = vpop.f32.mrf.mxu2  ;;  %v3160_v51 = vpop.permute.xlu0 %3159 }
 0x276   : > { %v8932_v28 = vadd.f32 %v1733_v37, %v1521_v9  ;;  %v8934_v16 = vpop.permute.xlu2 %3662  ;;  %v3269_v53 = vmul.f32 %v3160_v51, %v3044_v50  ;;  %v6916_v9 = vld [vmem:[%s10629_s5 + $0x4d8] sm:$0xff] }
 0x277   : > { %v2657_v55 = vpop.permute.xlu1 %2656  ;;  %v1524_v48 = vpop.f32.mrf.mxu1 }
 0x278   : > { %v2766_v20 = vmul.f32 %v2657_v55, %v2541_v22  ;;  %v8953_v22 = vpop.f32.mrf.mxu0 }
 0x279   : > { %10766 = vst [vmem:[#allocation69_spill] sm:$0xff] %v8953_v22  ;;  %v7047_v22 = vld [vmem:[%s10629_s5 + $0x6d0] sm:$0xff] }
 0x27a   : > { %6935 = vmatmul.msk.f32.gmra.mxu1 %vm773_vm4, %v2766_v20  ;;  %7001 = vmatmul.msk.f32.gmra.mxu2 %vm773_vm4, %v3269_v53  ;;  %v2542_v20 = vld [vmem:[#allocation2 + $0x6c] sm:$0xff] }
 0x27b   : > { %7064 = vmatmul.msk.f32.gmra.mxu3 %vm773_vm4, %v3769_v46  ;;  %3234 = vperm.xlu0 %7408, %v6982_v44   ;;  %v2198_v31 = vpop.f32.mrf.mxu3 }
 0x27c   : > { %3722 = vperm.xlu2 %7407, %v7045_v17   ;;  %2731 = vperm.xlu1 %7409, %v6916_v9   ;;  %v8956_v55 = vadd.f32 %v2198_v31, %v8890_v12  ;;  %v3545_v17 = vld [vmem:[#allocation2 + $0x56] sm:$0xff]  ;;  %v6983_v12 = vld [vmem:[%s10629_s5 + $0x5e0] sm:$0xff] }
 0x27d   : > { %v1736_v50 = vpop.f32.mrf.mxu2  ;;  %v3165_v46 = vpop.permute.xlu0 %3164  ;;  %v3770_v44 = vmul.f32 %v8892_v62, %v3545_v17  ;;  %v7188_v62 = vld [vmem:[%s10630_s6 + $0x18] sm:$0x3f] }
 0x27e   : > { %v8949_v37 = vadd.f32 %v1736_v50, %v1524_v48  ;;  %v8951_v45 = vpop.permute.xlu2 %3667  ;;  %10767 = vst [vmem:[#allocation70_spill] sm:$0xff] %v8956_v55  ;;  %v3270_v9 = vmul.f32 %v3165_v46, %v3045_v39  ;;  %v7046_v48 = vld [vmem:[%s10629_s5 + $0x6c8] sm:$0xff]  ;;  %v6917_v50 = vld [vmem:[%s10629_s5 + $0x4e0] sm:$0xff]  ;;  %v4152_v39 = vld [vmem:[#allocation3 + $0x10] sm:$0xff]  ;;  %7189 = vmatpush.msk.msrb.mxu3 %vm1419_vm2, %v7188_v62 }
 0x27f   : > { %v2662_v51 = vpop.permute.xlu1 %2661  ;;  %v1527_v53 = vpop.f32.mrf.mxu1  ;;  %7089 = vmatmul.msk.f32.vlgmr.msra.gmra.mxu0 %vm773_vm4, %v4152_v39  ;;  %v3046_v55 = vld [vmem:[#allocation2 + $0x75] sm:$0xff]  ;;  %v6984_v62 = vld [vmem:[%s10629_s5 + $0x5e8] sm:$0xff] }
 0x280   : > { %v2767_v7 = vmul.f32 %v2662_v51, %v2542_v20 }
 0x282   : > { %6936 = vmatmul.msk.f32.gmra.mxu1 %vm773_vm4, %v2767_v7  ;;  %7002 = vmatmul.msk.f32.gmra.mxu2 %vm773_vm4, %v3270_v9  ;;  %v2543_v9 = vld [vmem:[#allocation2 + $0x74] sm:$0xff] }
 0x283   : > { %7065 = vmatmul.msk.f32.gmra.mxu3 %vm773_vm4, %v3770_v44  ;;  %3239 = vperm.xlu0 %7408, %v6983_v12   ;;  %v8983_v12 = vpop.f32.mrf.mxu0 }
 0x284   : > { %3727 = vperm.xlu2 %7407, %v7046_v48   ;;  %2736 = vperm.xlu1 %7409, %v6917_v50   ;;  %10769 = vst [vmem:[#allocation72_spill] sm:$0xff] %v8983_v12 }
 0x285   : > { %v1739_v31 = vpop.f32.mrf.mxu2  ;;  %v2201_v20 = vpop.f32.mrf.mxu3 }
 0x286   : > { %v8974_v51 = vadd.f32 %v1739_v31, %v1527_v53  ;;  %v8976_v46 = vpop.permute.xlu2 %3672  ;;  %v8981_v7 = vadd.f32 %v2201_v20, %v8911_v0  ;;  %v3170_v50 = vpop.permute.xlu0 %3169  ;;  %v3546_v53 = vld [vmem:[#allocation2 + $0x5e] sm:$0xff]  ;;  %v6918_v0 = vld [vmem:[%s10629_s5 + $0x4e8] sm:$0xff] }
 0x287   : > { %v2667_v17 = vpop.permute.xlu1 %2666  ;;  %v1530_v44 = vpop.f32.mrf.mxu1  ;;  %v3271_v31 = vmul.f32 %v3170_v50, %v3046_v55  ;;  %v3771_v39 = vmul.f32 %v8913_v6, %v3546_v53  ;;  %v7222_v55 = vld [vmem:[%s10630_s6 + $0x20] sm:$0x3f] }
 0x288   : > { %10768 = vst [vmem:[#allocation71_spill] sm:$0xff] %v8981_v7  ;;  %v2768_v48 = vmul.f32 %v2667_v17, %v2543_v9  ;;  %v4153_v6 = vld [vmem:[#allocation3 + $0x18] sm:$0xff]  ;;  %7223 = vmatpush.msk.msrb.mxu0 %vm1419_vm2, %v7222_v55  ;;  %v7048_v55 = vld [vmem:[%s10629_s5 + $0x6d8] sm:$0xff] }
 0x289   : > { %v2544_v50 = vld [vmem:[#allocation2 + $0x7c] sm:$0xff]  ;;  %7090 = vmatmul.msk.f32.gmra.mxu0 %vm773_vm4, %v4153_v6 }
 0x28a   : > { %6937 = vmatmul.msk.f32.gmra.mxu1 %vm773_vm4, %v2768_v48  ;;  %7003 = vmatmul.msk.f32.gmra.mxu2 %vm773_vm4, %v3271_v31  ;;  %v3047_v7 = vld [vmem:[#allocation2 + $0x7d] sm:$0xff] }
 0x28b   : > { %7066 = vmatmul.msk.f32.gmra.mxu3 %vm773_vm4, %v3771_v39  ;;  %3244 = vperm.xlu0 %7408, %v6984_v62   ;;  %v3547_v62 = vld [vmem:[#allocation2 + $0x66] sm:$0xff]  ;;  %v9020_v6 = vpop.f32.mrf.mxu0 }
 0x28c   : > { %3732 = vperm.xlu2 %7407, %v7047_v22   ;;  %2741 = vperm.xlu1 %7409, %v6918_v0   ;;  %10771 = vst [vmem:[#allocation74_spill] sm:$0xff] %v9020_v6  ;;  %v6920_v6 = vld [vmem:[%s10629_s5 + $0x4f8] sm:$0xff] }
 0x28d   : > { %v1742_v20 = vpop.f32.mrf.mxu2 }
 0x28e   : > { %v9001_v17 = vpop.permute.xlu2 %3677  ;;  %v9004_v9 = vadd.f32 %v1742_v20, %v1530_v44  ;;  %v2204_v48 = vpop.f32.mrf.mxu3  ;;  %v3772_v44 = vmul.f32 %v8934_v16, %v3547_v62  ;;  %v6919_v20 = vld [vmem:[%s10629_s5 + $0x4f0] sm:$0xff]  ;;  %v2545_v62 = vld [vmem:[#allocation2 + $0x84] sm:$0xff] }
 0x28f   : > { %v2672_v53 = vpop.permute.xlu1 %2671  ;;  %v9008_v22 = vadd.f32 %v2204_v48, %v8932_v28  ;;  %v1533_v39 = vpop.f32.mrf.mxu1  ;;  %v6985_v28 = vld [vmem:[%s10629_s5 + $0x5f0] sm:$0xff] }
 0x290   : > { %v2769_v31 = vmul.f32 %v2672_v53, %v2544_v50  ;;  %v3175_v0 = vpop.permute.xlu0 %3174 }
 0x291   : > { %10770 = vst [vmem:[#allocation73_spill] sm:$0xff] %v9008_v22  ;;  %v3272_v12 = vmul.f32 %v3175_v0, %v3047_v7  ;;  %v9025_v7 = vld [vmem:[#allocation3 + $0x20] sm:$0xff] }
 0x292   : > { %6938 = vmatmul.msk.f32.gmra.mxu1 %vm773_vm4, %v2769_v31  ;;  %10772 = vst [vmem:[#allocation75_spill] sm:$0xff] %v9025_v7  ;;  %7091 = vmatmul.msk.f32.gmra.mxu0 %vm773_vm4, %v9025_v7 }
 0x293   : > { %7004 = vmatmul.msk.f32.gmra.mxu2 %vm773_vm4, %v3272_v12  ;;  %7067 = vmatmul.msk.f32.gmra.mxu3 %vm773_vm4, %v3772_v44  ;;  %v3048_v44 = vld [vmem:[#allocation2 + $0x85] sm:$0xff] }
 0x294   : > { %3737 = vperm.xlu2 %7407, %v7048_v55   ;;  %2746 = vperm.xlu1 %7409, %v6919_v20  }
 0x295   : > { %3249 = vperm.xlu0 %7408, %v6985_v28   ;;  %v1745_v16 = vpop.f32.mrf.mxu2  ;;  %v3548_v28 = vld [vmem:[#allocation2 + $0x6e] sm:$0xff] }
 0x296   : > { %v9027_v48 = vpop.permute.xlu2 %3682  ;;  %v9029_v50 = vadd.f32 %v1745_v16, %v1533_v39  ;;  %v2207_v53 = vpop.f32.mrf.mxu3  ;;  %v7049_v39 = vld [vmem:[%s10629_s5 + $0x6e0] sm:$0xff]  ;;  %v3773_v16 = vmul.f32 %v8951_v45, %v3548_v28  ;;  %v2546_v28 = vld [vmem:[#allocation2 + $0x8c] sm:$0xff] }
 0x297   : > { %v2677_v0 = vpop.permute.xlu1 %2676  ;;  %v9034_v12 = vadd.f32 %v2207_v53, %v8949_v37  ;;  %v9036_v55 = vpop.f32.mrf.mxu1  ;;  %v6986_v37 = vld [vmem:[%s10629_s5 + $0x5f8] sm:$0xff] }
 0x298   : > { %v2770_v31 = vmul.f32 %v2677_v0, %v2545_v62  ;;  %v3180_v20 = vpop.permute.xlu0 %3179  ;;  %v9051_v53 = vpop.f32.mrf.mxu0  ;;  %v9057_v62 = vld [vmem:[#allocation3 + $0x28] sm:$0xff] }
 0x299   : > { %10773 = vst [vmem:[#allocation76_spill] sm:$0xff] %v9034_v12  ;;  %v3273_v22 = vmul.f32 %v3180_v20, %v3048_v44 }
 0x29a   : > { %6939 = vmatmul.msk.f32.gmra.mxu1 %vm773_vm4, %v2770_v31  ;;  %10774 = vst [vmem:[#allocation77_spill] sm:$0xff] %v9051_v53  ;;  %7092 = vmatmul.msk.f32.gmra.mxu0 %vm773_vm4, %v9057_v62  ;;  %v7052_v53 = vld [vmem:[%s10629_s5 + $0x6f8] sm:$0xff] }
 0x29b   : > { %7005 = vmatmul.msk.f32.gmra.mxu2 %vm773_vm4, %v3273_v22  ;;  %7068 = vmatmul.msk.f32.gmra.mxu3 %vm773_vm4, %v3773_v16  ;;  %10775 = vst [vmem:[#allocation78_spill] sm:$0xff] %v9057_v62  ;;  %v7051_v62 = vld [vmem:[%s10629_s5 + $0x6f0] sm:$0xff] }
 0x29c   : > { %3742 = vperm.xlu2 %7407, %v7049_v39   ;;  %2751 = vperm.xlu1 %7409, %v6920_v6   ;;  %v3049_v6 = vld [vmem:[#allocation2 + $0x8d] sm:$0xff] }
 0x29d   : > { %3254 = vperm.xlu0 %7408, %v6986_v37   ;;  %v9053_v45 = vpop.f32.mrf.mxu2  ;;  %v3549_v37 = vld [vmem:[#allocation2 + $0x76] sm:$0xff] }
 0x29e   : > { %v9055_v0 = vpop.permute.xlu2 %3687  ;;  %v2210_v44 = vpop.f32.mrf.mxu3  ;;  %v3774_v7 = vmul.f32 %v8976_v46, %v3549_v37 }
 0x29f   : > { %v2682_v20 = vpop.permute.xlu1 %2681  ;;  %v9062_v22 = vadd.f32 %v2210_v44, %v8974_v51  ;;  %v9064_v39 = vpop.f32.mrf.mxu1  ;;  %v7050_v51 = vld [vmem:[%s10629_s5 + $0x6e8] sm:$0xff] }
 0x2a0   : > { %v2771_v31 = vmul.f32 %v2682_v20, %v2546_v28  ;;  %v3185_v16 = vpop.permute.xlu0 %3184  ;;  %v2547_v28 = vld [vmem:[#allocation2 + $0x94] sm:$0xff] }
 0x2a1   : > { %10776 = vst [vmem:[#allocation79_spill] sm:$0xff] %v9062_v22  ;;  %v3274_v12 = vmul.f32 %v3185_v16, %v3049_v6 }
 0x2a2   : > { %6940 = vmatmul.msk.f32.gmra.mxu1 %vm773_vm4, %v2771_v31  ;;  %v3050_v31 = vld [vmem:[#allocation2 + $0x95] sm:$0xff] }
 0x2a3   : > { %7006 = vmatmul.msk.f32.gmra.mxu2 %vm773_vm4, %v3274_v12  ;;  %7069 = vmatmul.msk.f32.gmra.mxu3 %vm773_vm4, %v3774_v7 }
 0x2a4   : > { %3757 = vperm.xlu2 %7407, %v7052_v53   ;;  %3752 = vperm.xlu1 %7409, %v7051_v62   ;;  %v1653_v53 = vadd.f32 %v8381_v11, %v8363_v19  ;;  %v9090_v62 = vpop.f32.mrf.mxu0 }
 0x2a5   : > { %3747 = vperm.xlu0 %7408, %v7050_v51   ;;  %v9079_v44 = vpop.f32.mrf.mxu2  ;;  %v3775_v51 = vmul.f32 %v9001_v17, %v3550_v61 }
 0x2a6   : > { %v9081_v46 = vpop.permute.xlu2 %3692  ;;  %v2213_v20 = vpop.f32.mrf.mxu3  ;;  %v2219_v19 = vadd.f32 %v8383_v56, %v1653_v53 }
 0x2a7   : > { %v2687_v6 = vpop.permute.xlu1 %2686  ;;  %v9084_v16 = vadd.f32 %v2213_v20, %v9004_v9  ;;  %v9086_v22 = vpop.f32.mrf.mxu1  ;;  %v2548_v20 = vld [vmem:[#allocation2 + $0x9c] sm:$0xff] }
 0x2a8   : > { %v2772_v37 = vmul.f32 %v2687_v6, %v2547_v28  ;;  %v3190_v12 = vpop.permute.xlu0 %3189  ;;  %v2497_v56 = vadd.f32 %v8359_v38, %v2219_v19  ;;  %v9132_v19 = vld [vmem:[%s10628_s4] ss:$0 sm:$0xff] }
 0x2a9   : > { %v3275_v7 = vmul.f32 %v3190_v12, %v3050_v31  ;;  %v3051_v31 = vld [vmem:[#allocation2 + $0x9d] sm:$0xff] }
 0x2aa   : > { %6941 = vmatmul.msk.f32.gmra.mxu1 %vm773_vm4, %v2772_v37 }
 0x2ab   : > { %7007 = vmatmul.msk.f32.gmra.mxu2 %vm773_vm4, %v3275_v7  ;;  %7070 = vmatmul.msk.f32.gmra.mxu3 %vm773_vm4, %v3775_v51  ;;  %v3551_v7 = vld [vmem:[#allocation2 + $0x86] sm:$0xff] }
 0x2ac   : > { %6404 = vrot.lane.b32.xlu2 %v7670_v4, %s7429_s20  ;;  %6402 = vrot.lane.b32.xlu1 %v7667_v1, %s7429_s20  ;;  %v3776_v4 = vmul.f32 %v9027_v48, %v3551_v7  ;;  %v9116_v53 = vpop.f32.mrf.mxu0  ;;  %v3552_v7 = vld [vmem:[#allocation2 + $0x8e] sm:$0xff] }
 0x2ad   : > { %6400 = vrot.lane.b32.xlu0 %v7640_v54, %s7429_s20  ;;  %v9103_v11 = vpop.f32.mrf.mxu2 }
 0x2ae   : > { %v9105_v61 = vpop.permute.xlu2 %3697  ;;  %v2216_v17 = vpop.f32.mrf.mxu3 }
 0x2af   : > { %v2692_v9 = vpop.permute.xlu1 %2691  ;;  %v9108_v28 = vadd.f32 %v2216_v17, %v9029_v50  ;;  %v9110_v37 = vpop.f32.mrf.mxu1  ;;  %v3000_v50 = vadd.f32 %v9036_v55, %v2497_v56  ;;  %v2549_v17 = vld [vmem:[#allocation2 + $0xa4] sm:$0xff] }
 0x2b0   : > { %v2773_v6 = vmul.f32 %v2692_v9, %v2548_v20  ;;  %v3195_v12 = vpop.permute.xlu0 %3194 }
 0x2b1   : > { %v3276_v51 = vmul.f32 %v3195_v12, %v3051_v31  ;;  %v3503_v38 = vadd.f32 %v9053_v45, %v3000_v50  ;;  %v3052_v31 = vld [vmem:[#allocation2 + $0xa5] sm:$0xff]  ;;  %v3777_v45 = vmul.f32 %v9055_v0, %v3552_v7  ;;  %v3053_v7 = vld [vmem:[#allocation2 + $0xad] sm:$0xff] }
 0x2b2   : > { %6942 = vmatmul.msk.f32.gmra.mxu1 %vm773_vm4, %v2773_v6 }
 0x2b3   : > { %7008 = vmatmul.msk.f32.gmra.mxu2 %vm773_vm4, %v3276_v51  ;;  %7071 = vmatmul.msk.f32.gmra.mxu3 %vm773_vm4, %v3776_v4 }
 0x2b4   : > { %6410 = vrot.lane.b32.xlu2 %v7760_v40, %s7429_s20  ;;  %6408 = vrot.lane.b32.xlu1 %v7709_v21, %s7429_s20  ;;  %v9151_v0 = vpop.f32.mrf.mxu0 }
 0x2b5   : > { %6406 = vrot.lane.b32.xlu0 %v7692_v13, %s7429_s20  ;;  %v9127_v48 = vpop.f32.mrf.mxu2 }
 0x2b6   : > { %v3910_v55 = vpop.f32.mrf.mxu3  ;;  %v9138_v50 = vpop.permute.xlu2 %3702 }
 0x2b7   : > { %v2697_v4 = vpop.permute.xlu1 %2696  ;;  %v4006_v9 = vadd.f32 %v3910_v55, %v3503_v38  ;;  %v9134_v6 = vpop.f32.mrf.mxu1  ;;  %v3001_v38 = vadd.f32 %v9064_v39, %v8424_v8  ;;  %v2550_v39 = vld [vmem:[#allocation2 + $0xac] sm:$0xff] }
 0x2b8   : > { %v2774_v20 = vmul.f32 %v2697_v4, %v2549_v17  ;;  %v3200_v12 = vpop.permute.xlu0 %3199 }
 0x2b9   : > { %v3277_v51 = vmul.f32 %v3200_v12, %v3052_v31  ;;  %v4042_v56 = vadd.f32 %v9132_v19, %v4006_v9  ;;  %v3504_v4 = vadd.f32 %v9079_v44, %v3001_v38  ;;  %v3002_v44 = vadd.f32 %v9086_v22, %v8446_v2  ;;  %v2551_v22 = vld [vmem:[#allocation2 + $0xb4] sm:$0xff] }
 0x2ba   : > { %6943 = vmatmul.msk.f32.gmra.mxu1 %vm773_vm4, %v2774_v20 }
 0x2bb   : > { %7009 = vmatmul.msk.f32.gmra.mxu2 %vm773_vm4, %v3277_v51  ;;  %v4074_v55 = vmax.f32 %v4042_v56, 0.0  ;;  %7072 = vmatmul.msk.f32.gmra.mxu3 %vm773_vm4, %v3777_v45  ;;  %v3553_v45 = vld [vmem:[#allocation2 + $0x96] sm:$0xff] }
 0x2bc   : > { %6416 = vrot.lane.b32.xlu2 %v7649_v57, %s7429_s20  ;;  %6414 = vrot.lane.b32.xlu1 %v7782_v49, %s7429_s20  ;;  %v3778_v57 = vmul.f32 %v9081_v46, %v3553_v45  ;;  %v3505_v46 = vadd.f32 %v9103_v11, %v3002_v44  ;;  %v9184_v45 = vpop.f32.mrf.mxu0  ;;  %v3003_v44 = vadd.f32 %v9110_v37, %v8465_v15 }
 0x2bd   : > { %6412 = vrot.lane.b32.xlu0 %v7763_v42, %s7429_s20  ;;  %4112 = vst.msk [vmem:[#allocation3 + $0x30] sm:$0xff] %vm773_vm4, %v4074_v55  ;;  %v9155_v17 = vpop.f32.mrf.mxu2 }
 0x2be   : > { %v3913_v8 = vpop.f32.mrf.mxu3  ;;  %v9165_v55 = vpop.permute.xlu2 %3707 }
 0x2bf   : > { %v2702_v9 = vpop.permute.xlu1 %2701  ;;  %v4007_v20 = vadd.f32 %v3913_v8, %v3504_v4  ;;  %v9157_v12 = vpop.f32.mrf.mxu1 }
 0x2c0   : > { %v2775_v31 = vmul.f32 %v2702_v9, %v2550_v39  ;;  %v3205_v51 = vpop.permute.xlu0 %3204 }
 0x2c1   : > { %v3278_v56 = vmul.f32 %v3205_v51, %v3053_v7  ;;  %v4043_v49 = vadd.f32 %v9132_v19, %v4007_v20  ;;  %v3054_v20 = vld [vmem:[#allocation2 + $0xb5] sm:$0xff]  ;;  %v3554_v7 = vld [vmem:[#allocation2 + $0x9e] sm:$0xff] }
 0x2c2   : > { %6944 = vmatmul.msk.f32.gmra.mxu1 %vm773_vm4, %v2775_v31  ;;  %v3779_v11 = vmul.f32 %v9105_v61, %v3554_v7  ;;  %v3506_v61 = vadd.f32 %v9127_v48, %v3003_v44 }
 0x2c3   : > { %7010 = vmatmul.msk.f32.gmra.mxu2 %vm773_vm4, %v3278_v56  ;;  %v4075_v38 = vmax.f32 %v4043_v49, 0.0  ;;  %7073 = vmatmul.msk.f32.gmra.mxu3 %vm773_vm4, %v3778_v57 }
 0x2c4   : > { %6422 = vrot.lane.b32.xlu2 %v7733_v29, %s7429_s20  ;;  %v9170_v4 = vld [vmem:[#allocation3 + $0x30] sm:$0xff]  ;;  %6420 = vrot.lane.b32.xlu1 %v7673_v5, %s7429_s20  ;;  %v9215_v44 = vpop.f32.mrf.mxu0 }
 0x2c5   : > { %6418 = vrot.lane.b32.xlu0 %v7652_v60, %s7429_s20  ;;  %4113 = vst.msk [vmem:[#allocation3 + $0x38] sm:$0xff] %vm773_vm4, %v4075_v38  ;;  %7093 = vmatmul.msk.f32.gmra.mxu0 %vm773_vm4, %v9170_v4  ;;  %v9180_v49 = vpop.f32.mrf.mxu2 }
 0x2c6   : > { %v3916_v57 = vpop.f32.mrf.mxu3 }
 0x2c7   : > { %v2707_v2 = vpop.permute.xlu1 %2706  ;;  %v4008_v8 = vadd.f32 %v3916_v57, %v3505_v46  ;;  %v9182_v9 = vpop.f32.mrf.mxu1 }
 0x2c8   : > { %v2776_v39 = vmul.f32 %v2707_v2, %v2551_v22  ;;  %v3210_v31 = vpop.permute.xlu0 %3209  ;;  %v9203_v57 = vpop.permute.xlu2 %3712  ;;  %v2552_v22 = vld [vmem:[#allocation2 + $0xbc] sm:$0xff] }
 0x2c9   : > { %v3279_v51 = vmul.f32 %v3210_v31, %v3054_v20  ;;  %v4044_v56 = vadd.f32 %v9132_v19, %v4008_v8  ;;  %v3055_v31 = vld [vmem:[#allocation2 + $0xbd] sm:$0xff] }
 0x2ca   : > { %6945 = vmatmul.msk.f32.gmra.mxu1 %vm773_vm4, %v2776_v39 }
 0x2cb   : > { %7011 = vmatmul.msk.f32.gmra.mxu2 %vm773_vm4, %v3279_v51  ;;  %v4076_v38 = vmax.f32 %v4044_v56, 0.0  ;;  %7074 = vmatmul.msk.f32.gmra.mxu3 %vm773_vm4, %v3779_v11  ;;  %v3555_v51 = vld [vmem:[#allocation2 + $0xa6] sm:$0xff] }
 0x2cc   : > { %6428 = vrot.lane.b32.xlu2 %v7814_v14, %s7429_s20  ;;  %v9195_v46 = vld [vmem:[#allocation3 + $0x38] sm:$0xff]  ;;  %6426 = vrot.lane.b32.xlu1 %v7746_v36, %s7429_s20  ;;  %v3780_v11 = vmul.f32 %v9138_v50, %v3555_v51  ;;  %v7414_v36 = vld [vmem:[#allocation3 + $0x10] sm:$0xff] }
 0x2cd   : > { %6424 = vrot.lane.b32.xlu0 %v7722_v25, %s7429_s20  ;;  %4114 = vst.msk [vmem:[#allocation3 + $0x40] sm:$0xff] %vm773_vm4, %v4076_v38  ;;  %7094 = vmatmul.msk.f32.gmra.mxu0 %vm773_vm4, %v9195_v46  ;;  %v9207_v15 = vpop.f32.mrf.mxu2  ;;  %v3004_v38 = vadd.f32 %v9134_v6, %v8484_v41 }
 0x2ce   : > { %v3919_v37 = vpop.f32.mrf.mxu3 }
 0x2cf   : > { %v2712_v2 = vpop.permute.xlu1 %2711  ;;  %v4009_v8 = vadd.f32 %v3919_v37, %v3506_v61  ;;  %v9209_v20 = vpop.f32.mrf.mxu1  ;;  %v3507_v50 = vadd.f32 %v9155_v17, %v3004_v38 }
 0x2d0   : > { %v2777_v39 = vmul.f32 %v2712_v2, %v2552_v22  ;;  %v3215_v7 = vpop.permute.xlu0 %3214  ;;  %v2553_v2 = vld [vmem:[#allocation2 + $0xc4] sm:$0xff] }
 0x2d1   : > { %v3280_v48 = vmul.f32 %v3215_v7, %v3055_v31  ;;  %v4045_v56 = vadd.f32 %v9132_v19, %v4009_v8  ;;  %v3056_v7 = vld [vmem:[#allocation2 + $0xc5] sm:$0xff] }
 0x2d2   : > { %6946 = vmatmul.msk.f32.gmra.mxu1 %vm773_vm4, %v2777_v39 }
 0x2d3   : > { %7012 = vmatmul.msk.f32.gmra.mxu2 %vm773_vm4, %v3280_v48  ;;  %v4077_v61 = vmax.f32 %v4045_v56, 0.0  ;;  %7075 = vmatmul.msk.f32.gmra.mxu3 %vm773_vm4, %v3780_v11  ;;  %v3556_v48 = vld [vmem:[#allocation2 + $0xae] sm:$0xff]  ;;  %v3718_v56 = vpop.permute.xlu2 %3717 }
 0x2d4   : > { %6434 = vrot.lane.b32.xlu2 %v7907_v24, %s7429_s20  ;;  %v9222_v37 = vld [vmem:[#allocation3 + $0x40] sm:$0xff]  ;;  %6432 = vrot.lane.b32.xlu1 %v7854_v52, %s7429_s20  ;;  %v3781_v17 = vmul.f32 %v9165_v55, %v3556_v48  ;;  %v9251_v55 = vpop.f32.mrf.mxu0  ;;  %v10803_v52 = vld [vmem:[#allocation43_spill] sm:$0xff] }
 0x2d5   : > { %6430 = vrot.lane.b32.xlu0 %v7943_v59, %s7429_s20  ;;  %4115 = vst.msk [vmem:[#allocation3 + $0x48] sm:$0xff] %vm773_vm4, %v4077_v61  ;;  %7095 = vmatmul.msk.f32.gmra.mxu0 %vm773_vm4, %v9222_v37  ;;  %v9232_v41 = vpop.f32.mrf.mxu2  ;;  %v3005_v61 = vadd.f32 %v9157_v12, %v8503_v43  ;;  %v3057_v48 = vld [vmem:[#allocation2 + $0xcd] sm:$0xff] }
 0x2d6   : > { %v3922_v6 = vpop.f32.mrf.mxu3 }
 0x2d7   : > { %v2717_v22 = vpop.permute.xlu1 %2716  ;;  %v4010_v8 = vadd.f32 %v3922_v6, %v3507_v50  ;;  %v9234_v31 = vpop.f32.mrf.mxu1 }
 0x2d8   : > { %v2778_v39 = vmul.f32 %v2717_v22, %v2553_v2  ;;  %v3220_v51 = vpop.permute.xlu0 %3219  ;;  %v3508_v2 = vadd.f32 %v9180_v49, %v3005_v61 }
 0x2d9   : > { %v3281_v11 = vmul.f32 %v3220_v51, %v3056_v7  ;;  %v4046_v38 = vadd.f32 %v9132_v19, %v4010_v8  ;;  %v2554_v8 = vld [vmem:[#allocation2 + $0xcc] sm:$0xff] }
 0x2da   : > { %6947 = vmatmul.msk.f32.gmra.mxu1 %vm773_vm4, %v2778_v39 }
 0x2db   : > { %7013 = vmatmul.msk.f32.gmra.mxu2 %vm773_vm4, %v3281_v11  ;;  %v4078_v50 = vmax.f32 %v4046_v38, 0.0  ;;  %7076 = vmatmul.msk.f32.gmra.mxu3 %vm773_vm4, %v3781_v17  ;;  %v3557_v17 = vld [vmem:[#allocation2 + $0xb6] sm:$0xff] }
 0x2dc   : > { %6440 = vrot.lane.b32.xlu2 %v7984_v23, %s7429_s20  ;;  %v9245_v6 = vld [vmem:[#allocation3 + $0x48] sm:$0xff]  ;;  %6438 = vrot.lane.b32.xlu1 %v7946_v30, %s7429_s20  ;;  %v3782_v49 = vmul.f32 %v9203_v57, %v3557_v17  ;;  %v3723_v23 = vpop.permute.xlu2 %3722 }
 0x2dd   : > { %6436 = vrot.lane.b32.xlu0 %v7899_v3, %s7429_s20  ;;  %4116 = vst.msk [vmem:[#allocation3 + $0x50] sm:$0xff] %vm773_vm4, %v4078_v50  ;;  %7096 = vmatmul.msk.f32.gmra.mxu0 %vm773_vm4, %v9245_v6  ;;  %v9257_v43 = vpop.f32.mrf.mxu2  ;;  %v3006_v50 = vadd.f32 %v9182_v9, %v8522_v10 }
 0x2de   : > { %v3925_v12 = vpop.f32.mrf.mxu3 }
 0x2df   : > { %v2722_v22 = vpop.permute.xlu1 %2721  ;;  %v4011_v39 = vadd.f32 %v3925_v12, %v3508_v2  ;;  %v9259_v51 = vpop.f32.mrf.mxu1  ;;  %v3509_v57 = vadd.f32 %v9207_v15, %v3006_v50 }
 0x2e0   : > { %v2779_v7 = vmul.f32 %v2722_v22, %v2554_v8  ;;  %v3225_v11 = vpop.permute.xlu0 %3224  ;;  %v2555_v8 = vld [vmem:[#allocation2 + $0xd4] sm:$0xff] }
 0x2e1   : > { %v3282_v38 = vmul.f32 %v3225_v11, %v3057_v48  ;;  %v4047_v61 = vadd.f32 %v9132_v19, %v4011_v39  ;;  %v3058_v11 = vld [vmem:[#allocation2 + $0xd5] sm:$0xff] }
 0x2e2   : > { %6948 = vmatmul.msk.f32.gmra.mxu1 %vm773_vm4, %v2779_v7 }
 0x2e3   : > { %7014 = vmatmul.msk.f32.gmra.mxu2 %vm773_vm4, %v3282_v38  ;;  %v4079_v2 = vmax.f32 %v4047_v61, 0.0  ;;  %7077 = vmatmul.msk.f32.gmra.mxu3 %vm773_vm4, %v3782_v49  ;;  %v3558_v38 = vld [vmem:[#allocation2 + $0xbe] sm:$0xff]  ;;  %v9284_v61 = vpop.f32.mrf.mxu0 }
 0x2e4   : > { %6446 = vrot.lane.b32.xlu2 %v8074_v58, %s7429_s20  ;;  %v9270_v12 = vld [vmem:[#allocation3 + $0x50] sm:$0xff]  ;;  %6444 = vrot.lane.b32.xlu1 %v8029_v26, %s7429_s20  ;;  %v3783_v15 = vmul.f32 %v3718_v56, %v3558_v38  ;;  %v2227_v56 = vadd.f32 %v8544_v33, %v8542_v34  ;;  %v3559_v34 = vld [vmem:[#allocation2 + $0xc6] sm:$0xff] }
 0x2e5   : > { %6442 = vrot.lane.b32.xlu0 %v8002_v32, %s7429_s20  ;;  %4117 = vst.msk [vmem:[#allocation3 + $0x58] sm:$0xff] %vm773_vm4, %v4079_v2  ;;  %7097 = vmatmul.msk.f32.gmra.mxu0 %vm773_vm4, %v9270_v12  ;;  %v9280_v10 = vpop.f32.mrf.mxu2  ;;  %v3007_v2 = vadd.f32 %v9209_v20, %v8539_v35  ;;  %v3728_v35 = vpop.permute.xlu2 %3727 }
 0x2e6   : > { %v3928_v9 = vpop.f32.mrf.mxu3 }
 0x2e7   : > { %v2727_v22 = vpop.permute.xlu1 %2726  ;;  %v4012_v39 = vadd.f32 %v3928_v9, %v3509_v57  ;;  %v9282_v48 = vpop.f32.mrf.mxu1 }
 0x2e8   : > { %v2780_v7 = vmul.f32 %v2727_v22, %v2555_v8  ;;  %v3230_v17 = vpop.permute.xlu0 %3229  ;;  %v3510_v22 = vadd.f32 %v9232_v41, %v3007_v2  ;;  %v3784_v41 = vmul.f32 %v3723_v23, %v3559_v34  ;;  %v10778_v23 = vld [vmem:[#allocation25_spill] sm:$0xff] }
 0x2e9   : > { %v3283_v49 = vmul.f32 %v3230_v17, %v3058_v11  ;;  %v4048_v50 = vadd.f32 %v9132_v19, %v4012_v39  ;;  %v2556_v39 = vld [vmem:[#allocation2 + $0xdc] sm:$0xff] }
 0x2ea   : > { %6949 = vmatmul.msk.f32.gmra.mxu1 %vm773_vm4, %v2780_v7 }
 0x2eb   : > { %7015 = vmatmul.msk.f32.gmra.mxu2 %vm773_vm4, %v3283_v49  ;;  %v4080_v57 = vmax.f32 %v4048_v50, 0.0  ;;  %7078 = vmatmul.msk.f32.gmra.mxu3 %vm773_vm4, %v3783_v15  ;;  %v3059_v49 = vld [vmem:[#allocation2 + $0xdd] sm:$0xff]  ;;  %v2505_v50 = vadd.f32 %v8725_v18, %v2227_v56  ;;  %v10779_v18 = vld [vmem:[#allocation24_spill] sm:$0xff]  ;;  %v10780_v56 = vld [vmem:[#allocation29_spill] sm:$0xff] }
 0x2ec   : > { %6452 = vrot.lane.b32.xlu2 %v8170_v27, %s7429_s20  ;;  %v9294_v9 = vld [vmem:[#allocation3 + $0x58] sm:$0xff]  ;;  %6450 = vrot.lane.b32.xlu1 %v8124_v63, %s7429_s20 }
 0x2ed   : > { %6448 = vrot.lane.b32.xlu0 %v8095_v47, %s7429_s20  ;;  %4118 = vst.msk [vmem:[#allocation3 + $0x60] sm:$0xff] %vm773_vm4, %v4080_v57  ;;  %7098 = vmatmul.msk.f32.gmra.mxu0 %vm773_vm4, %v9294_v9  ;;  %v9306_v20 = vpop.f32.mrf.mxu2  ;;  %v9314_v57 = vpop.f32.mrf.mxu0 }
 0x2ee   : > { %v3931_v8 = vpop.f32.mrf.mxu3 }
 0x2ef   : > { %v2732_v7 = vpop.permute.xlu1 %2731  ;;  %v4013_v11 = vadd.f32 %v3931_v8, %v3510_v22  ;;  %v9308_v38 = vpop.f32.mrf.mxu1  ;;  %v3008_v22 = vadd.f32 %v9234_v31, %v2505_v50 }
 0x2f0   : > { %v2781_v17 = vmul.f32 %v2732_v7, %v2556_v39  ;;  %v3235_v15 = vpop.permute.xlu0 %3234  ;;  %v10777_v39 = vld [vmem:[#allocation26_spill] sm:$0xff] }
 0x2f1   : > { %v3284_v33 = vmul.f32 %v3235_v15, %v3059_v49  ;;  %v4049_v2 = vadd.f32 %v9132_v19, %v4013_v11  ;;  %v10781_v11 = vld [vmem:[#allocation30_spill] sm:$0xff]  ;;  %v3511_v49 = vadd.f32 %v9257_v43, %v3008_v22 }
 0x2f2   : > { %6950 = vmatmul.msk.f32.gmra.mxu1 %vm773_vm4, %v2781_v17  ;;  %v2228_v17 = vadd.f32 %v10781_v11, %v10780_v56  ;;  %v10782_v43 = vld [vmem:[#allocation46_spill] sm:$0xff] }
 0x2f3   : > { %7016 = vmatmul.msk.f32.gmra.mxu2 %vm773_vm4, %v3284_v33  ;;  %v4081_v8 = vmax.f32 %v4049_v2, 0.0  ;;  %7079 = vmatmul.msk.f32.gmra.mxu3 %vm773_vm4, %v3784_v41  ;;  %v2557_v33 = vld [vmem:[#allocation2 + $0xe4] sm:$0xff] }
 0x2f4   : > { %6458 = vrot.lane.b32.xlu2 %v10777_v39, %s7429_s20  ;;  %v9320_v7 = vld [vmem:[#allocation3 + $0x60] sm:$0xff]  ;;  %6456 = vrot.lane.b32.xlu1 %v10778_v23, %s7429_s20  ;;  %v2506_v22 = vadd.f32 %v10782_v43, %v2228_v17 }
 0x2f5   : > { %6454 = vrot.lane.b32.xlu0 %v10779_v18, %s7429_s20  ;;  %4119 = vst.msk [vmem:[#allocation3 + $0x68] sm:$0xff] %vm773_vm4, %v4081_v8  ;;  %7099 = vmatmul.msk.f32.gmra.mxu0 %vm773_vm4, %v9320_v7  ;;  %v9332_v31 = vpop.f32.mrf.mxu2  ;;  %v3060_v39 = vld [vmem:[#allocation2 + $0xe5] sm:$0xff]  ;;  %v3560_v18 = vld [vmem:[#allocation2 + $0xce] sm:$0xff]  ;;  %v3733_v8 = vpop.permute.xlu2 %3732 }
 0x2f6   : > { %v3934_v15 = vpop.f32.mrf.mxu3  ;;  %v3785_v11 = vmul.f32 %v3728_v35, %v3560_v18  ;;  %v3009_v63 = vadd.f32 %v9259_v51, %v2506_v22  ;;  %v10784_v35 = vld [vmem:[#allocation27_spill] sm:$0xff]  ;;  %v9350_v17 = vpop.f32.mrf.mxu0  ;;  %v7290_v51 = vld [vmem:[%s10630_s6 + $0x30] sm:$0x3f] }
 0x2f7   : > { %v2737_v34 = vpop.permute.xlu1 %2736  ;;  %v4014_v41 = vadd.f32 %v3934_v15, %v3511_v49  ;;  %v9334_v2 = vpop.f32.mrf.mxu1  ;;  %7291 = vmatpush.msk.msra.mxu2 %vm1419_vm2, %v7290_v51 }
 0x2f8   : > { %v2782_v50 = vmul.f32 %v2737_v34, %v2557_v33  ;;  %v3240_v23 = vpop.permute.xlu0 %3239  ;;  %v10783_v34 = vld [vmem:[#allocation28_spill] sm:$0xff]  ;;  %v3512_v33 = vadd.f32 %v9280_v10, %v3009_v63 }
 0x2f9   : > { %v3285_v56 = vmul.f32 %v3240_v23, %v3060_v39  ;;  %v4050_v27 = vadd.f32 %v9132_v19, %v4014_v41  ;;  %v10785_v39 = vld [vmem:[#allocation31_spill] sm:$0xff]  ;;  %v10786_v23 = vld [vmem:[#allocation32_spill] sm:$0xff] }
 0x2fa   : > { %6951 = vmatmul.msk.f32.gmra.mxu1 %vm773_vm4, %v2782_v50  ;;  %v2229_v18 = vadd.f32 %v10786_v23, %v10785_v39  ;;  %v3061_v63 = vld [vmem:[#allocation2 + $0xed] sm:$0xff] }
 0x2fb   : > { %7017 = vmatmul.msk.f32.gmra.mxu2 %vm773_vm4, %v3285_v56  ;;  %v4082_v49 = vmax.f32 %v4050_v27, 0.0  ;;  %7080 = vmatmul.msk.f32.gmra.mxu3 %vm773_vm4, %v3785_v11  ;;  %v2558_v56 = vld [vmem:[#allocation2 + $0xec] sm:$0xff] }
 0x2fc   : > { %v9342_v15 = vld [vmem:[#allocation3 + $0x68] sm:$0xff]  ;;  %6462 = vrot.lane.b32.xlu1 %v10783_v34, %s7429_s20  ;;  %v10787_v34 = vld [vmem:[#allocation50_spill] sm:$0xff] }
 0x2fd   : > { %6460 = vrot.lane.b32.xlu0 %v10784_v35, %s7429_s20  ;;  %4120 = vst.msk [vmem:[#allocation3 + $0x70] sm:$0xff] %vm773_vm4, %v4082_v49  ;;  %7100 = vmatmul.msk.f32.gmra.mxu0 %vm773_vm4, %v9342_v15  ;;  %v9356_v27 = vpop.f32.mrf.mxu2  ;;  %v3561_v49 = vld [vmem:[#allocation2 + $0xd6] sm:$0xff]  ;;  %v2507_v35 = vadd.f32 %v10787_v34, %v2229_v18  ;;  %v3738_v51 = vpop.permute.xlu2 %3737  ;;  %s10414_s20 = scalar_lea.vmem %s10634_s10, %s7390_s23 }
 0x2fe   : > { %v3937_v41 = vpop.f32.mrf.mxu3  ;;  %v3786_v23 = vmul.f32 %v3733_v8, %v3561_v49  ;;  %v9386_v49 = vpop.f32.mrf.mxu0 }
 0x2ff   : > { %v2742_v50 = vpop.permute.xlu1 %2741  ;;  %v4015_v11 = vadd.f32 %v3937_v41, %v3512_v33  ;;  %v9362_v22 = vpop.f32.mrf.mxu1  ;;  %v3010_v58 = vadd.f32 %v9282_v48, %v2507_v35  ;;  %v2559_v35 = vld [vmem:[#allocation2 + $0xf4] sm:$0xff] }
 0x300   : > { %v2783_v43 = vmul.f32 %v2742_v50, %v2558_v56  ;;  %v3245_v10 = vpop.permute.xlu0 %3244  ;;  %v10788_v50 = vld [vmem:[#allocation33_spill] sm:$0xff]  ;;  %v10789_v56 = vld [vmem:[#allocation34_spill] sm:$0xff] }
 0x301   : > { %v3286_v39 = vmul.f32 %v3245_v10, %v3061_v63  ;;  %v4051_v47 = vadd.f32 %v9132_v19, %v4015_v11  ;;  %v2230_v63 = vadd.f32 %v10789_v56, %v10788_v50  ;;  %v3513_v8 = vadd.f32 %v9306_v20, %v3010_v58  ;;  %v3062_v58 = vld [vmem:[#allocation2 + $0xf5] sm:$0xff] }
 0x302   : > { %6952 = vmatmul.msk.f32.gmra.mxu1 %vm773_vm4, %v2783_v43  ;;  %v10790_v50 = vld [vmem:[#allocation53_spill] sm:$0xff] }
 0x303   : > { %7018 = vmatmul.msk.f32.gmra.mxu2 %vm773_vm4, %v3286_v39  ;;  %v4083_v33 = vmax.f32 %v4051_v47, 0.0  ;;  %7081 = vmatmul.msk.f32.gmra.mxu3 %vm773_vm4, %v3786_v23  ;;  %v7256_v47 = vld [vmem:[%s10630_s6 + $0x28] sm:$0x3f]  ;;  %v3562_v39 = vld [vmem:[#allocation2 + $0xde] sm:$0xff]  ;;  %v2508_v56 = vadd.f32 %v10790_v50, %v2230_v63 }
 0x304   : > { %v9370_v41 = vld [vmem:[#allocation3 + $0x70] sm:$0xff]  ;;  %7257 = vmatpush.msk.msra.mxu1 %vm1419_vm2, %v7256_v47  ;;  %v3563_v50 = vld [vmem:[#allocation2 + $0xe6] sm:$0xff] }
 0x305   : > { %4121 = vst.msk [vmem:[#allocation3 + $0x78] sm:$0xff] %vm773_vm4, %v4083_v33  ;;  %7101 = vmatmul.msk.f32.gmra.mxu0 %vm773_vm4, %v9370_v41  ;;  %v9378_v34 = vpop.f32.mrf.mxu2  ;;  %v3787_v33 = vmul.f32 %v3738_v51, %v3562_v39 }
 0x306   : > { %v3940_v48 = vpop.f32.mrf.mxu3 }
 0x307   : > { %v2747_v18 = vpop.permute.xlu1 %2746  ;;  %v4016_v11 = vadd.f32 %v3940_v48, %v3513_v8  ;;  %v9384_v10 = vpop.f32.mrf.mxu1  ;;  %v3011_v8 = vadd.f32 %v9308_v38, %v2508_v56  ;;  %v2560_v38 = vld [vmem:[#allocation2 + $0xfc] sm:$0xff] }
 0x308   : > { %v2784_v43 = vmul.f32 %v2747_v18, %v2559_v35  ;;  %v3250_v20 = vpop.permute.xlu0 %3249  ;;  %v10791_v35 = vld [vmem:[#allocation35_spill] sm:$0xff]  ;;  %v10792_v18 = vld [vmem:[#allocation36_spill] sm:$0xff] }
 0x309   : > { %v3287_v23 = vmul.f32 %v3250_v20, %v3062_v58  ;;  %v4052_v26 = vadd.f32 %v9132_v19, %v4016_v11  ;;  %v2231_v32 = vadd.f32 %v10792_v18, %v10791_v35  ;;  %v3514_v51 = vadd.f32 %v9332_v31, %v3011_v8  ;;  %v3743_v58 = vpop.permute.xlu2 %3742  ;;  %v10793_v8 = vld [vmem:[#allocation56_spill] sm:$0xff]  ;;  %v9408_v18 = vpop.f32.mrf.mxu0 }
 0x30a   : > { %6953 = vmatmul.msk.f32.gmra.mxu1 %vm773_vm4, %v2784_v43  ;;  %v3788_v31 = vmul.f32 %v3743_v58, %v3563_v50 }
 0x30b   : > { %7019 = vmatmul.msk.f32.gmra.mxu2 %vm773_vm4, %v3287_v23  ;;  %v4084_v47 = vmax.f32 %v4052_v26, 0.0  ;;  %7082 = vmatmul.msk.f32.gmra.mxu3 %vm773_vm4, %v3787_v33  ;;  %v3063_v23 = vld [vmem:[#allocation2 + $0xfd] sm:$0xff]  ;;  %v2509_v35 = vadd.f32 %v10793_v8, %v2231_v32 }
 0x30c   : > { %v9394_v48 = vld [vmem:[#allocation3 + $0x78] sm:$0xff] }
 0x30d   : > { %4122 = vst.msk [vmem:[#allocation3 + $0x80] sm:$0xff] %vm773_vm4, %v4084_v47  ;;  %7102 = vmatmul.msk.f32.gmra.mxu0 %vm773_vm4, %v9394_v48  ;;  %v9402_v63 = vpop.f32.mrf.mxu2 }
 0x30e   : > { %v3943_v11 = vpop.f32.mrf.mxu3 }
 0x30f   : > { %v2752_v26 = vpop.permute.xlu1 %2751  ;;  %v4017_v43 = vadd.f32 %v3943_v11, %v3514_v51  ;;  %v9404_v39 = vpop.f32.mrf.mxu1  ;;  %v3012_v51 = vadd.f32 %v9334_v2, %v2509_v35  ;;  %v3564_v2 = vld [vmem:[#allocation2 + $0xee] sm:$0xff]  ;;  %v10796_v35 = vld [vmem:[#allocation59_spill] sm:$0xff] }
 0x310   : > { %v2785_v20 = vmul.f32 %v2752_v26, %v2560_v38  ;;  %v3255_v33 = vpop.permute.xlu0 %3254  ;;  %v10794_v26 = vld [vmem:[#allocation37_spill] sm:$0xff] }
 0x311   : > { %v3288_v56 = vmul.f32 %v3255_v33, %v3063_v23  ;;  %v4053_v47 = vadd.f32 %v9132_v19, %v4017_v43  ;;  %v10795_v23 = vld [vmem:[#allocation38_spill] sm:$0xff]  ;;  %v3515_v32 = vadd.f32 %v9356_v27, %v3012_v51  ;;  %v10797_v27 = vld [vmem:[#allocation75_spill] sm:$0xff]  ;;  %v9429_v51 = vpop.f32.mrf.mxu0 }
 0x312   : > { %6954 = vmatmul.msk.f32.gmra.mxu1 %vm773_vm4, %v2785_v20  ;;  %v2232_v58 = vadd.f32 %v10795_v23, %v10794_v26 }
 0x313   : > { %7020 = vmatmul.msk.f32.gmra.mxu2 %vm773_vm4, %v3288_v56  ;;  %v4085_v11 = vmax.f32 %v4053_v47, 0.0  ;;  %7083 = vmatmul.msk.f32.gmra.mxu3 %vm773_vm4, %v3788_v31  ;;  %v4150_v31 = vld [vmem:[#allocation3] sm:$0xff] }
 0x314   : > { %v9414_v38 = vld [vmem:[#allocation3 + $0x80] sm:$0xff]  ;;  %v2510_v47 = vadd.f32 %v10796_v35, %v2232_v58 }
 0x315   : > { %4123 = vst.msk [vmem:[#allocation3 + $0x88] sm:$0xff] %vm773_vm4, %v4085_v11  ;;  %7103 = vmatmul.msk.f32.gmra.mxu0 %vm773_vm4, %v9414_v38 }
 0x316   : > { %v3452_v43 = vpop.f32.mrf.mxu2  ;;  %v3946_v20 = vpop.f32.mrf.mxu3  ;;  %v3013_v11 = vadd.f32 %v9362_v22, %v2510_v47  ;;  %v4151_v47 = vld [vmem:[#allocation3 + $0x8] sm:$0xff] }
 0x317   : > { %v4018_v33 = vadd.f32 %v3946_v20, %v3515_v32  ;;  %v9422_v50 = vpop.f32.mrf.mxu1  ;;  %v10798_v20 = vld [vmem:[#allocation39_spill] sm:$0xff] }
 0x318   : > { %v3748_v56 = vpop.permute.xlu0 %3747  ;;  %v3516_v58 = vadd.f32 %v9378_v34, %v3013_v11  ;;  %v10801_v34 = vld [vmem:[#allocation78_spill] sm:$0xff] }
 0x319   : > { %v3789_v8 = vmul.f32 %v3748_v56, %v3564_v2  ;;  %v4054_v26 = vadd.f32 %v9132_v19, %v4018_v33  ;;  %v10799_v2 = vld [vmem:[#allocation40_spill] sm:$0xff] }
 0x31a   : > { %7122 = vmatmul.msk.f32.vlgmr.msrb.gmra.mxu1 %vm773_vm4, %v4150_v31  ;;  %v2233_v56 = vadd.f32 %v10799_v2, %v10798_v20  ;;  %v3753_v31 = vpop.permute.xlu1 %3752 }
 0x31b   : > { %7156 = vmatmul.msk.f32.vlgmr.msrb.gmra.mxu2 %vm773_vm4, %v10797_v27  ;;  %v4086_v23 = vmax.f32 %v4054_v26, 0.0  ;;  %7084 = vmatmul.msk.f32.gmra.mxu3 %vm773_vm4, %v3789_v8  ;;  %v3565_v8 = vld [vmem:[#allocation2 + $0xf6] sm:$0xff]  ;;  %v10800_v26 = vld [vmem:[#allocation63_spill] sm:$0xff] }
 0x31c   : > { %v9433_v32 = vld [vmem:[#allocation3 + $0x88] sm:$0xff]  ;;  %v2511_v3 = vadd.f32 %v10800_v26, %v2233_v56  ;;  %v3790_v24 = vmul.f32 %v3753_v31, %v3565_v8 }
 0x31d   : > { %4124 = vst.msk [vmem:[#allocation3 + $0x90] sm:$0xff] %vm773_vm4, %v4086_v23  ;;  %7104 = vmatmul.msk.f32.gmra.mxu0 %vm773_vm4, %v9433_v32 }
 0x31e   : > { %v3455_v33 = vpop.f32.mrf.mxu2  ;;  %v3949_v35 = vpop.f32.mrf.mxu3  ;;  %v3014_v11 = vadd.f32 %v9384_v10, %v2511_v3 }
 0x31f   : > { %v4019_v30 = vadd.f32 %v3949_v35, %v3516_v58  ;;  %v9441_v22 = vpop.f32.mrf.mxu1  ;;  %v9452_v58 = vpop.f32.mrf.mxu0  ;;  %v10802_v35 = vld [vmem:[#allocation41_spill] sm:$0xff] }
 0x320   : > { %v2234_v56 = vadd.f32 %v10803_v52, %v10802_v35  ;;  %v3517_v31 = vadd.f32 %v9402_v63, %v3014_v11  ;;  %v10806_v35 = vld [vmem:[#allocation45_spill] sm:$0xff] }
 0x321   : > { %v4055_v20 = vadd.f32 %v9132_v19, %v4019_v30 }
 0x322   : > { %7123 = vmatmul.msk.f32.gmra.mxu1 %vm773_vm4, %v4151_v47  ;;  %v3758_v47 = vpop.permute.xlu2 %3757 }
 0x323   : > { %7157 = vmatmul.msk.f32.gmra.mxu2 %vm773_vm4, %v10801_v34  ;;  %v4087_v23 = vmax.f32 %v4055_v20, 0.0  ;;  %7085 = vmatmul.msk.f32.gmra.mxu3 %vm773_vm4, %v3790_v24  ;;  %v3566_v24 = vld [vmem:[#allocation2 + $0xfe] sm:$0xff]  ;;  %v10804_v20 = vld [vmem:[#allocation65_spill] sm:$0xff] }
 0x324   : > { %v9450_v2 = vld [vmem:[#allocation3 + $0x90] sm:$0xff]  ;;  %v3791_v26 = vmul.f32 %v3758_v47, %v3566_v24  ;;  %v2512_v59 = vadd.f32 %v10804_v20, %v2234_v56 }
 0x325   : > { %4125 = vst.msk [vmem:[#allocation3 + $0x98] sm:$0xff] %vm773_vm4, %v4087_v23  ;;  %7105 = vmatmul.msk.f32.gmra.mxu0 %vm773_vm4, %v9450_v2  ;;  %v10805_v23 = vld [vmem:[#allocation42_spill] sm:$0xff] }
 0x326   : > { %v3458_v30 = vpop.f32.mrf.mxu2  ;;  %v3952_v3 = vpop.f32.mrf.mxu3  ;;  %v3015_v52 = vadd.f32 %v9404_v39, %v2512_v59 }
 0x327   : > { %v4020_v10 = vadd.f32 %v3952_v3, %v3517_v31  ;;  %v2958_v8 = vpop.f32.mrf.mxu1  ;;  %v2235_v31 = vadd.f32 %v10806_v35, %v10805_v23  ;;  %v9474_v3 = vpop.f32.mrf.mxu0  ;;  %v10809_v23 = vld [vmem:[#allocation48_spill] sm:$0xff] }
 0x328   : > { %v3518_v47 = vadd.f32 %v3452_v43, %v3015_v52 }
 0x329   : > { %v4056_v14 = vadd.f32 %v9132_v19, %v4020_v10 }
 0x32a   : > { %7124 = vmatmul.msk.f32.gmra.mxu1 %vm773_vm4, %v7414_v36 }
 0x32b   : > { %7158 = vmatmul.msk.f32.gmra.mxu2 %vm773_vm4, %v9170_v4  ;;  %v4088_v63 = vmax.f32 %v4056_v14, 0.0  ;;  %7086 = vmatmul.msk.f32.gmra.mxu3 %vm773_vm4, %v3791_v26  ;;  %v10807_v14 = vld [vmem:[#allocation67_spill] sm:$0xff] }
 0x32c   : > { %v9467_v11 = vld [vmem:[#allocation3 + $0x98] sm:$0xff]  ;;  %v2513_v39 = vadd.f32 %v10807_v14, %v2235_v31 }
 0x32d   : > { %4126 = vst.msk [vmem:[#allocation3 + $0xa0] sm:$0xff] %vm773_vm4, %v4088_v63  ;;  %7106 = vmatmul.msk.f32.gmra.mxu0 %vm773_vm4, %v9467_v11  ;;  %v7415_v26 = vld [vmem:[#allocation3 + $0x18] sm:$0xff]  ;;  %v10808_v63 = vld [vmem:[#allocation44_spill] sm:$0xff] }
 0x32e   : > { %v3461_v36 = vpop.f32.mrf.mxu2  ;;  %v3955_v56 = vpop.f32.mrf.mxu3  ;;  %v3016_v43 = vadd.f32 %v9422_v50, %v2513_v39  ;;  %v2236_v35 = vadd.f32 %v10809_v23, %v10808_v63  ;;  %v10810_v39 = vld [vmem:[#allocation69_spill] sm:$0xff]  ;;  %v10811_v63 = vld [vmem:[#allocation47_spill] sm:$0xff] }
 0x32f   : > { %v4021_v10 = vadd.f32 %v3955_v56, %v3518_v47  ;;  %v2961_v59 = vpop.f32.mrf.mxu1  ;;  %v9491_v50 = vpop.f32.mrf.mxu0  ;;  %v10812_v23 = vld [vmem:[#allocation51_spill] sm:$0xff] }
 0x330   : > { %v3519_v31 = vadd.f32 %v3455_v33, %v3016_v43 }
 0x331   : > { %v4057_v24 = vadd.f32 %v9132_v19, %v4021_v10 }
 0x332   : > { %7125 = vmatmul.msk.f32.gmra.mxu1 %vm773_vm4, %v7415_v26 }
 0x333   : > { %7159 = vmatmul.msk.f32.gmra.mxu2 %vm773_vm4, %v9195_v46  ;;  %v4089_v20 = vmax.f32 %v4057_v24, 0.0  ;;  %7190 = vmatmul.msk.f32.vlgmr.msrb.gmra.mxu3 %vm773_vm4, %v9170_v4  ;;  %v2514_v24 = vadd.f32 %v10810_v39, %v2236_v35 }
 0x334   : > { %v9484_v52 = vld [vmem:[#allocation3 + $0xa0] sm:$0xff] }
 0x335   : > { %4127 = vst.msk [vmem:[#allocation3 + $0xa8] sm:$0xff] %vm773_vm4, %v4089_v20  ;;  %7107 = vmatmul.msk.f32.gmra.mxu0 %vm773_vm4, %v9484_v52  ;;  %v3017_v33 = vadd.f32 %v9441_v22, %v2514_v24  ;;  %v10813_v22 = vld [vmem:[#allocation72_spill] sm:$0xff] }
 0x336   : > { %v3464_v47 = vpop.f32.mrf.mxu2  ;;  %v3958_v56 = vpop.f32.mrf.mxu3 }
 0x337   : > { %v4022_v10 = vadd.f32 %v3958_v56, %v3519_v31  ;;  %v2964_v14 = vpop.f32.mrf.mxu1  ;;  %v2237_v31 = vadd.f32 %v10812_v23, %v10811_v63  ;;  %v3520_v35 = vadd.f32 %v3458_v30, %v3017_v33  ;;  %v10814_v63 = vld [vmem:[#allocation49_spill] sm:$0xff]  ;;  %v10815_v23 = vld [vmem:[#allocation54_spill] sm:$0xff] }
 0x339   : > { %v4058_v26 = vadd.f32 %v9132_v19, %v4022_v10  ;;  %v2515_v24 = vadd.f32 %v10813_v22, %v2237_v31  ;;  %v2238_v31 = vadd.f32 %v10815_v23, %v10814_v63  ;;  %v10817_v63 = vld [vmem:[#allocation52_spill] sm:$0xff]  ;;  %v10818_v23 = vld [vmem:[#allocation58_spill] sm:$0xff] }
 0x33a   : > { %7126 = vmatmul.msk.f32.gmra.mxu1 %vm773_vm4, %v10797_v27 }
 0x33b   : > { %7160 = vmatmul.msk.f32.gmra.mxu2 %vm773_vm4, %v9222_v37  ;;  %v4090_v43 = vmax.f32 %v4058_v26, 0.0  ;;  %7191 = vmatmul.msk.f32.gmra.mxu3 %vm773_vm4, %v9195_v46  ;;  %v3018_v30 = vadd.f32 %v2958_v8, %v2515_v24  ;;  %v10816_v8 = vld [vmem:[#allocation74_spill] sm:$0xff] }
 0x33c   : > { %v9502_v20 = vld [vmem:[#allocation3 + $0xa8] sm:$0xff]  ;;  %v2516_v24 = vadd.f32 %v10816_v8, %v2238_v31  ;;  %v2239_v31 = vadd.f32 %v10818_v23, %v10817_v63  ;;  %v10820_v63 = vld [vmem:[#allocation55_spill] sm:$0xff] }
 0x33d   : > { %4128 = vst.msk [vmem:[#allocation3 + $0xb0] sm:$0xff] %vm773_vm4, %v4090_v43  ;;  %7108 = vmatmul.msk.f32.gmra.mxu0 %vm773_vm4, %v9502_v20  ;;  %v10821_v23 = vld [vmem:[#allocation61_spill] sm:$0xff] }
 0x33e   : > { %v3467_v27 = vpop.f32.mrf.mxu2  ;;  %v3961_v56 = vpop.f32.mrf.mxu3 }
 0x33f   : > { %v4023_v10 = vadd.f32 %v3961_v56, %v3520_v35  ;;  %v2967_v39 = vpop.f32.mrf.mxu1  ;;  %v3521_v35 = vadd.f32 %v3461_v36, %v3018_v30  ;;  %v3019_v36 = vadd.f32 %v2961_v59, %v2516_v24  ;;  %v10819_v59 = vld [vmem:[#allocation77_spill] sm:$0xff] }
 0x340   : > { %v2517_v24 = vadd.f32 %v10819_v59, %v2239_v31  ;;  %v2240_v31 = vadd.f32 %v10821_v23, %v10820_v63  ;;  %v10822_v63 = vld [vmem:[#allocation57_spill] sm:$0xff]  ;;  %v10823_v23 = vld [vmem:[#allocation64_spill] sm:$0xff] }
 0x341   : > { %v4059_v26 = vadd.f32 %v9132_v19, %v4023_v10 }
 0x342   : > { %v9511_v25 = vpop.f32.mrf.mxu0  ;;  %7127 = vmatmul.msk.f32.gmra.mxu1 %vm773_vm4, %v10801_v34 }
 0x343   : > { %7161 = vmatmul.msk.f32.gmra.mxu2 %vm773_vm4, %v9245_v6  ;;  %v4091_v33 = vmax.f32 %v4059_v26, 0.0  ;;  %7192 = vmatmul.msk.f32.gmra.mxu3 %vm773_vm4, %v9222_v37 }
 0x344   : > { %v9519_v43 = vld [vmem:[#allocation3 + $0xb0] sm:$0xff] }
 0x345   : > { %4129 = vst.msk [vmem:[#allocation3 + $0xb8] sm:$0xff] %vm773_vm4, %v4091_v33  ;;  %7109 = vmatmul.msk.f32.gmra.mxu0 %vm773_vm4, %v9519_v43 }
 0x346   : > { %v3470_v34 = vpop.f32.mrf.mxu2  ;;  %v3964_v56 = vpop.f32.mrf.mxu3 }
 0x347   : > { %v4024_v10 = vadd.f32 %v3964_v56, %v3521_v35  ;;  %v2970_v22 = vpop.f32.mrf.mxu1  ;;  %v3522_v35 = vadd.f32 %v3464_v47, %v3019_v36  ;;  %v3020_v47 = vadd.f32 %v2964_v14, %v2517_v24  ;;  %v2518_v14 = vadd.f32 %v9090_v62, %v2240_v31 }
 0x348   : > { %v2241_v62 = vadd.f32 %v10823_v23, %v10822_v63  ;;  %v10824_v63 = vld [vmem:[#allocation60_spill] sm:$0xff]  ;;  %v10825_v23 = vld [vmem:[#allocation66_spill] sm:$0xff] }
 0x349   : > { %v4060_v26 = vadd.f32 %v9132_v19, %v4024_v10 }
 0x34a   : > { %v9528_v29 = vpop.f32.mrf.mxu0  ;;  %7128 = vmatmul.msk.f32.gmra.mxu1 %vm773_vm4, %v9170_v4 }
 0x34b   : > { %7162 = vmatmul.msk.f32.gmra.mxu2 %vm773_vm4, %v9270_v12  ;;  %v4092_v30 = vmax.f32 %v4060_v26, 0.0  ;;  %7193 = vmatmul.msk.f32.gmra.mxu3 %vm773_vm4, %v9245_v6 }
 0x34c   : > { %v9536_v33 = vld [vmem:[#allocation3 + $0xb8] sm:$0xff] }
 0x34d   : > { %4130 = vst.msk [vmem:[#allocation3 + $0xc0] sm:$0xff] %vm773_vm4, %v4092_v30  ;;  %7110 = vmatmul.msk.f32.gmra.mxu0 %vm773_vm4, %v9536_v33 }
 0x34e   : > { %v3473_v4 = vpop.f32.mrf.mxu2  ;;  %v3967_v56 = vpop.f32.mrf.mxu3 }
 0x34f   : > { %v4025_v10 = vadd.f32 %v3967_v56, %v3522_v35  ;;  %v2973_v8 = vpop.f32.mrf.mxu1  ;;  %v3523_v35 = vadd.f32 %v3467_v27, %v3020_v47  ;;  %v3021_v27 = vadd.f32 %v2967_v39, %v2518_v14  ;;  %v2519_v39 = vadd.f32 %v9116_v53, %v2241_v62 }
 0x350   : > { %v2242_v53 = vadd.f32 %v10825_v23, %v10824_v63  ;;  %v10826_v63 = vld [vmem:[#allocation62_spill] sm:$0xff]  ;;  %v10827_v23 = vld [vmem:[#allocation68_spill] sm:$0xff] }
 0x351   : > { %v4061_v26 = vadd.f32 %v9132_v19, %v4025_v10  ;;  %v3524_v31 = vadd.f32 %v3470_v34, %v3021_v27  ;;  %v3022_v34 = vadd.f32 %v2970_v22, %v2519_v39 }
 0x352   : > { %v9545_v5 = vpop.f32.mrf.mxu0  ;;  %7129 = vmatmul.msk.f32.gmra.mxu1 %vm773_vm4, %v9195_v46  ;;  %v2520_v22 = vadd.f32 %v9151_v0, %v2242_v53  ;;  %v2243_v0 = vadd.f32 %v10827_v23, %v10826_v63 }
 0x353   : > { %7163 = vmatmul.msk.f32.gmra.mxu2 %vm773_vm4, %v9294_v9  ;;  %v4093_v36 = vmax.f32 %v4061_v26, 0.0  ;;  %7194 = vmatmul.msk.f32.gmra.mxu3 %vm773_vm4, %v9270_v12  ;;  %v3525_v62 = vadd.f32 %v3473_v4, %v3022_v34 }
 0x354   : > { %v9553_v30 = vld [vmem:[#allocation3 + $0xc0] sm:$0xff]  ;;  %v3023_v4 = vadd.f32 %v2973_v8, %v2520_v22  ;;  %v2521_v8 = vadd.f32 %v9184_v45, %v2243_v0 }
 0x355   : > { %4131 = vst.msk [vmem:[#allocation3 + $0xc8] sm:$0xff] %vm773_vm4, %v4093_v36  ;;  %7111 = vmatmul.msk.f32.gmra.mxu0 %vm773_vm4, %v9553_v30 }
 0x356   : > { %v3476_v46 = vpop.f32.mrf.mxu2  ;;  %v3970_v56 = vpop.f32.mrf.mxu3 }
 0x357   : > { %v4026_v10 = vadd.f32 %v3970_v56, %v3523_v35  ;;  %v2976_v59 = vpop.f32.mrf.mxu1  ;;  %v3526_v53 = vadd.f32 %v3476_v46, %v3023_v4 }
 0x358   : > { %v3024_v46 = vadd.f32 %v2976_v59, %v2521_v8 }
 0x359   : > { %v4062_v24 = vadd.f32 %v9132_v19, %v4026_v10 }
 0x35a   : > { %v9562_v26 = vpop.f32.mrf.mxu0  ;;  %7130 = vmatmul.msk.f32.gmra.mxu1 %vm773_vm4, %v9222_v37 }
 0x35b   : > { %7164 = vmatmul.msk.f32.gmra.mxu2 %vm773_vm4, %v9320_v7  ;;  %v4094_v47 = vmax.f32 %v4062_v24, 0.0  ;;  %7195 = vmatmul.msk.f32.gmra.mxu3 %vm773_vm4, %v9294_v9 }
 0x35c   : > { %v9570_v36 = vld [vmem:[#allocation3 + $0xc8] sm:$0xff] }
 0x35d   : > { %4132 = vst.msk [vmem:[#allocation3 + $0xd0] sm:$0xff] %vm773_vm4, %v4094_v47  ;;  %7112 = vmatmul.msk.f32.gmra.mxu0 %vm773_vm4, %v9570_v36 }
 0x35e   : > { %v3479_v37 = vpop.f32.mrf.mxu2  ;;  %v3973_v35 = vpop.f32.mrf.mxu3 }
 0x35f   : > { %v4027_v56 = vadd.f32 %v3973_v35, %v3524_v31  ;;  %v2979_v10 = vpop.f32.mrf.mxu1 }
 0x361   : > { %v4063_v14 = vadd.f32 %v9132_v19, %v4027_v56 }
 0x362   : > { %v9579_v24 = vpop.f32.mrf.mxu0  ;;  %7131 = vmatmul.msk.f32.gmra.mxu1 %vm773_vm4, %v9245_v6 }
 0x363   : > { %7165 = vmatmul.msk.f32.gmra.mxu2 %vm773_vm4, %v9342_v15  ;;  %v4095_v27 = vmax.f32 %v4063_v14, 0.0  ;;  %7196 = vmatmul.msk.f32.gmra.mxu3 %vm773_vm4, %v9320_v7 }
 0x364   : > { %v9587_v47 = vld [vmem:[#allocation3 + $0xd0] sm:$0xff] }
 0x365   : > { %4133 = vst.msk [vmem:[#allocation3 + $0xd8] sm:$0xff] %vm773_vm4, %v4095_v27  ;;  %7113 = vmatmul.msk.f32.gmra.mxu0 %vm773_vm4, %v9587_v47 }
 0x366   : > { %v3482_v6 = vpop.f32.mrf.mxu2  ;;  %v3976_v31 = vpop.f32.mrf.mxu3 }
 0x367   : > { %v4028_v35 = vadd.f32 %v3976_v31, %v3525_v62  ;;  %v2982_v56 = vpop.f32.mrf.mxu1 }
 0x369   : > { %v4064_v39 = vadd.f32 %v9132_v19, %v4028_v35  ;;  %v9615_v35 = vld [vmem:[%s10628_s4] ss:$0 sm:$0xff] }
 0x36a   : > { %v9596_v14 = vpop.f32.mrf.mxu0  ;;  %7132 = vmatmul.msk.f32.gmra.mxu1 %vm773_vm4, %v9270_v12 }
 0x36b   : > { %7166 = vmatmul.msk.f32.gmra.mxu2 %vm773_vm4, %v9370_v41  ;;  %v4096_v34 = vmax.f32 %v4064_v39, 0.0  ;;  %7197 = vmatmul.msk.f32.gmra.mxu3 %vm773_vm4, %v9342_v15 }
 0x36c   : > { %v9604_v27 = vld [vmem:[#allocation3 + $0xd8] sm:$0xff] }
 0x36d   : > { %4134 = vst.msk [vmem:[#allocation3 + $0xe0] sm:$0xff] %vm773_vm4, %v4096_v34  ;;  %7114 = vmatmul.msk.f32.gmra.mxu0 %vm773_vm4, %v9604_v27  ;;  %v3527_v34 = vadd.f32 %v3479_v37, %v3024_v46 }
 0x36e   : > { %v3485_v19 = vpop.f32.mrf.mxu2  ;;  %v3979_v12 = vpop.f32.mrf.mxu3 }
 0x36f   : > { %v4029_v62 = vadd.f32 %v3979_v12, %v3526_v53  ;;  %v2985_v31 = vpop.f32.mrf.mxu1  ;;  %v10828_v53 = vld [vmem:[#allocation70_spill] sm:$0xff] }
 0x370   : > { %v2522_v12 = vadd.f32 %v9215_v44, %v10828_v53 }
 0x371   : > { %v4065_v22 = vadd.f32 %v9615_v35, %v4029_v62 }
 0x372   : > { %v9618_v39 = vpop.f32.mrf.mxu0  ;;  %7133 = vmatmul.msk.f32.gmra.mxu1 %vm773_vm4, %v9294_v9  ;;  %v3025_v37 = vadd.f32 %v2979_v10, %v2522_v12 }
 0x373   : > { %7167 = vmatmul.msk.f32.gmra.mxu2 %vm773_vm4, %v9394_v48  ;;  %v4097_v4 = vmax.f32 %v4065_v22, 0.0  ;;  %7198 = vmatmul.msk.f32.gmra.mxu3 %vm773_vm4, %v9370_v41 }
 0x374   : > { %v9626_v45 = vld [vmem:[#allocation3 + $0xe0] sm:$0xff]  ;;  %v3528_v46 = vadd.f32 %v3482_v6, %v3025_v37 }
 0x375   : > { %4135 = vst.msk [vmem:[#allocation3 + $0xe8] sm:$0xff] %vm773_vm4, %v4097_v4  ;;  %7115 = vmatmul.msk.f32.gmra.mxu0 %vm773_vm4, %v9626_v45 }
 0x376   : > { %v3488_v63 = vpop.f32.mrf.mxu2  ;;  %v3982_v23 = vpop.f32.mrf.mxu3 }
 0x377   : > { %v4030_v0 = vadd.f32 %v3982_v23, %v3527_v34  ;;  %v2988_v9 = vpop.f32.mrf.mxu1  ;;  %v10829_v23 = vld [vmem:[#allocation71_spill] sm:$0xff] }
 0x379   : > { %v4066_v59 = vadd.f32 %v9615_v35, %v4030_v0  ;;  %v2523_v0 = vadd.f32 %v9251_v55, %v10829_v23 }
 0x37a   : > { %v9634_v62 = vpop.f32.mrf.mxu0  ;;  %7134 = vmatmul.msk.f32.gmra.mxu1 %vm773_vm4, %v9320_v7 }
 0x37b   : > { %7168 = vmatmul.msk.f32.gmra.mxu2 %vm773_vm4, %v9414_v38  ;;  %v4098_v8 = vmax.f32 %v4066_v59, 0.0  ;;  %7199 = vmatmul.msk.f32.gmra.mxu3 %vm773_vm4, %v9394_v48  ;;  %v3026_v6 = vadd.f32 %v2982_v56, %v2523_v0 }
 0x37c   : > { %v9642_v22 = vld [vmem:[#allocation3 + $0xe8] sm:$0xff] }
 0x37d   : > { %4136 = vst.msk [vmem:[#allocation3 + $0xf0] sm:$0xff] %vm773_vm4, %v4098_v8  ;;  %7116 = vmatmul.msk.f32.gmra.mxu0 %vm773_vm4, %v9642_v22  ;;  %v3529_v37 = vadd.f32 %v3485_v19, %v3026_v6  ;;  %v5980_v8 = vld [vmem:[%s10633_s9] sm:$0xff] }
 0x37e   : > { %v3491_v44 = vpop.f32.mrf.mxu2  ;;  %v3985_v4 = vpop.f32.mrf.mxu3  ;;  %6093 = vmatpush.msra.mxu3 %v5980_v8  ;;  %v5979_v8 = vld [vmem:[%s10632_s8] sm:$0xff] }
 0x37f   : > { %v4031_v34 = vadd.f32 %v3985_v4, %v3528_v46  ;;  %v2991_v7 = vpop.f32.mrf.mxu1  ;;  %6270 = vmatpush.msra.mxu0 %v5979_v8 }
 0x381   : > { %v4067_v10 = vadd.f32 %v9615_v35, %v4031_v34  ;;  %v10830_v34 = vld [vmem:[#allocation73_spill] sm:$0xff] }
 0x382   : > { %v9650_v53 = vpop.f32.mrf.mxu0  ;;  %7135 = vmatmul.msk.f32.gmra.mxu1 %vm773_vm4, %v9342_v15  ;;  %v2524_v23 = vadd.f32 %v9284_v61, %v10830_v34  ;;  %v10832_v34 = vld [vmem:[#allocation76_spill] sm:$0xff] }
 0x383   : > { %7169 = vmatmul.msk.f32.gmra.mxu2 %vm773_vm4, %v9433_v32  ;;  %v4099_v12 = vmax.f32 %v4067_v10, 0.0  ;;  %7200 = vmatmul.msk.f32.gmra.mxu3 %vm773_vm4, %v9414_v38 }
 0x384   : > { %v9658_v59 = vld [vmem:[#allocation3 + $0xf0] sm:$0xff]  ;;  %v3027_v10 = vadd.f32 %v2985_v31, %v2524_v23  ;;  %v2525_v23 = vadd.f32 %v9314_v57, %v10832_v34 }
 0x385   : > { %4137 = vst.msk [vmem:[#allocation3 + $0xf8] sm:$0xff] %vm773_vm4, %v4099_v12  ;;  %7117 = vmatmul.msk.f32.gmra.mxu0 %vm773_vm4, %v9658_v59 }
 0x386   : > { %v3494_v55 = vpop.f32.mrf.mxu2  ;;  %v3988_v46 = vpop.f32.mrf.mxu3 }
 0x387   : > { %v4032_v56 = vadd.f32 %v3988_v46, %v3529_v37  ;;  %v2994_v4 = vpop.f32.mrf.mxu1  ;;  %v3530_v37 = vadd.f32 %v3488_v63, %v3027_v10  ;;  %v3028_v10 = vadd.f32 %v2988_v9, %v2525_v23 }
 0x389   : > { %v4068_v0 = vadd.f32 %v9615_v35, %v4032_v56  ;;  %v3531_v8 = vadd.f32 %v3491_v44, %v3028_v10 }
 0x38a   : > { %v9669_v19 = vpop.f32.mrf.mxu0  ;;  %7136 = vmatmul.msk.f32.gmra.mxu1 %vm773_vm4, %v9370_v41 }
 0x38b   : > { %10831 = vst [vmem:[#allocation29_spill] sm:$0xff] %v9669_v19  ;;  %7170 = vmatmul.msk.f32.gmra.mxu2 %vm773_vm4, %v9450_v2  ;;  %v4100_v6 = vmax.f32 %v4068_v0, 0.0  ;;  %7201 = vmatmul.msk.f32.gmra.mxu3 %vm773_vm4, %v9433_v32 }
 0x38c   : > { %v9677_v12 = vld [vmem:[#allocation3 + $0xf8] sm:$0xff] }
 0x38d   : > { %4138 = vst.msk [vmem:[#allocation3 + $0x100] sm:$0xff] %vm773_vm4, %v4100_v6  ;;  %7118 = vmatmul.msk.f32.gmra.mxu0 %vm773_vm4, %v9677_v12 }
 0x38e   : > { %v3497_v61 = vpop.f32.mrf.mxu2  ;;  %v3991_v46 = vpop.f32.mrf.mxu3 }
 0x38f   : > { %v4033_v31 = vadd.f32 %v3991_v46, %v3530_v37  ;;  %v2997_v56 = vpop.f32.mrf.mxu1 }
 0x391   : > { %v4069_v0 = vadd.f32 %v9615_v35, %v4033_v31 }
 0x392   : > { %v9688_v63 = vpop.f32.mrf.mxu0  ;;  %7137 = vmatmul.msk.f32.gmra.mxu1 %vm773_vm4, %v9394_v48 }
 0x393   : > { %10833 = vst [vmem:[#allocation30_spill] sm:$0xff] %v9688_v63  ;;  %7171 = vmatmul.msk.f32.gmra.mxu2 %vm773_vm4, %v9467_v11  ;;  %v4101_v6 = vmax.f32 %v4069_v0, 0.0  ;;  %7202 = vmatmul.msk.f32.gmra.mxu3 %vm773_vm4, %v9450_v2  ;;  %v10834_v63 = vld [vmem:[#allocation79_spill] sm:$0xff] }
 0x394   : > { %v9696_v37 = vld [vmem:[#allocation3 + $0x100] sm:$0xff]  ;;  %v2526_v19 = vadd.f32 %v9350_v17, %v10834_v63 }
 0x395   : > { %4139 = vst.msk [vmem:[#allocation3 + $0x108] sm:$0xff] %vm773_vm4, %v4101_v6  ;;  %7119 = vmatmul.msk.f32.gmra.mxu0 %vm773_vm4, %v9696_v37 }
 0x396   : > { %v3500_v57 = vpop.f32.mrf.mxu2  ;;  %v3994_v46 = vpop.f32.mrf.mxu3  ;;  %v3029_v44 = vadd.f32 %v2991_v7, %v2526_v19 }
 0x397   : > { %v4034_v31 = vadd.f32 %v3994_v46, %v3531_v8  ;;  %v4425_v34 = vpop.f32.mrf.mxu1 }
 0x398   : > { %v3532_v6 = vadd.f32 %v3494_v55, %v3029_v44  ;;  %v5077_v44 = vld [vmem:[#allocation3 + $0x40] sm:$0xff] }
 0x399   : > { %v4070_v9 = vadd.f32 %v9615_v35, %v4034_v31  ;;  %v2527_v31 = vadd.f32 %v9386_v49, %v9084_v16 }
 0x39a   : > { %v9704_v23 = vpop.f32.mrf.mxu0  ;;  %7138 = vmatmul.msk.f32.gmra.mxu1 %vm773_vm4, %v9414_v38 }
 0x39b   : > { %10835 = vst [vmem:[#allocation46_spill] sm:$0xff] %v9704_v23  ;;  %7172 = vmatmul.msk.f32.gmra.mxu2 %vm773_vm4, %v9484_v52  ;;  %v4102_v0 = vmax.f32 %v4070_v9, 0.0  ;;  %7203 = vmatmul.msk.f32.gmra.mxu3 %vm773_vm4, %v9467_v11  ;;  %v3030_v55 = vadd.f32 %v2994_v4, %v2527_v31 }
 0x39c   : > { %v9712_v10 = vld [vmem:[#allocation3 + $0x108] sm:$0xff] }
 0x39d   : > { %4140 = vst.msk [vmem:[#allocation3 + $0x110] sm:$0xff] %vm773_vm4, %v4102_v0  ;;  %7120 = vmatmul.msk.f32.gmra.mxu0 %vm773_vm4, %v9712_v10  ;;  %v3533_v0 = vadd.f32 %v3497_v61, %v3030_v55 }
 0x39e   : > { %v4671_v17 = vpop.f32.mrf.mxu2  ;;  %v3997_v63 = vpop.f32.mrf.mxu3 }
 0x39f   : > { %v4035_v8 = vadd.f32 %v3997_v63, %v3532_v6  ;;  %v4428_v46 = vpop.f32.mrf.mxu1 }
 0x3a1   : > { %v4071_v7 = vadd.f32 %v9615_v35, %v4035_v8  ;;  %v2528_v8 = vadd.f32 %v9408_v18, %v9108_v28 }
 0x3a2   : > { %v9720_v19 = vpop.f32.mrf.mxu0  ;;  %7139 = vmatmul.msk.f32.gmra.mxu1 %vm773_vm4, %v9433_v32 }
 0x3a3   : > { %10836 = vst [vmem:[#allocation31_spill] sm:$0xff] %v9720_v19  ;;  %7173 = vmatmul.msk.f32.gmra.mxu2 %vm773_vm4, %v9502_v20  ;;  %v4103_v9 = vmax.f32 %v4071_v7, 0.0  ;;  %7204 = vmatmul.msk.f32.gmra.mxu3 %vm773_vm4, %v9484_v52  ;;  %v3031_v61 = vadd.f32 %v2997_v56, %v2528_v8  ;;  %v5078_v7 = vld [vmem:[#allocation3 + $0x48] sm:$0xff]  ;;  %v4426_v56 = vadd.f32 %v4425_v34, %v9429_v51  ;;  %v9769_v34 = vld [vmem:[#allocation3 + $0x58] sm:$0xff] }
 0x3a4   : > { %v4429_v51 = vadd.f32 %v4428_v46, %v9452_v58  ;;  %v9784_v46 = vld [vmem:[#allocation3 + $0x60] sm:$0xff] }
 0x3a5   : > { %4141 = vst.msk [vmem:[#allocation3 + $0x118] sm:$0xff] %vm773_vm4, %v4103_v9  ;;  %7224 = vmatmul.msk.f32.vlgmr.msrb.gmra.mxu0 %vm773_vm4, %v5077_v44  ;;  %v3534_v55 = vadd.f32 %v3500_v57, %v3031_v61 }
 0x3a6   : > { %v4674_v16 = vpop.f32.mrf.mxu2  ;;  %v4000_v49 = vpop.f32.mrf.mxu3 }
 0x3a7   : > { %v4036_v6 = vadd.f32 %v4000_v49, %v3533_v0  ;;  %v4431_v63 = vpop.f32.mrf.mxu1 }
 0x3a8   : > { %v4432_v58 = vadd.f32 %v4431_v63, %v9474_v3 }
 0x3a9   : > { %v4072_v19 = vadd.f32 %v9615_v35, %v4036_v6  ;;  %v4767_v6 = vadd.f32 %v4671_v17, %v4426_v56  ;;  %v4768_v17 = vadd.f32 %v4674_v16, %v4429_v51 }
 0x3aa   : > { %v9733_v4 = vpop.f32.mrf.mxu0  ;;  %7140 = vmatmul.msk.f32.gmra.mxu1 %vm773_vm4, %v9450_v2 }
 0x3ab   : > { %10837 = vst [vmem:[#allocation32_spill] sm:$0xff] %v9733_v4  ;;  %7174 = vmatmul.msk.f32.gmra.mxu2 %vm773_vm4, %v9519_v43  ;;  %v4104_v31 = vmax.f32 %v4072_v19, 0.0  ;;  %7205 = vmatmul.msk.f32.gmra.mxu3 %vm773_vm4, %v9502_v20  ;;  %v9753_v19 = vld [vmem:[#allocation3 + $0x50] sm:$0xff] }
 0x3ad   : > { %4142 = vst.msk [vmem:[#allocation3 + $0x120] sm:$0xff] %vm773_vm4, %v4104_v31  ;;  %7225 = vmatmul.msk.f32.gmra.mxu0 %vm773_vm4, %v5078_v7 }
 0x3ae   : > { %v4677_v28 = vpop.f32.mrf.mxu2  ;;  %v4003_v18 = vpop.f32.mrf.mxu3 }
 0x3af   : > { %v4037_v9 = vadd.f32 %v4003_v18, %v3534_v55  ;;  %v4434_v44 = vpop.f32.mrf.mxu1  ;;  %v4769_v16 = vadd.f32 %v4677_v28, %v4432_v58 }
 0x3b0   : > { %v4435_v3 = vadd.f32 %v4434_v44, %v9491_v50 }
 0x3b1   : > { %v4073_v0 = vadd.f32 %v9615_v35, %v4037_v9 }
 0x3b2   : > { %v9744_v49 = vpop.f32.mrf.mxu0  ;;  %7141 = vmatmul.msk.f32.gmra.mxu1 %vm773_vm4, %v9467_v11 }
 0x3b3   : > { %10838 = vst [vmem:[#allocation50_spill] sm:$0xff] %v9744_v49  ;;  %7175 = vmatmul.msk.f32.gmra.mxu2 %vm773_vm4, %v9536_v33  ;;  %v4105_v57 = vmax.f32 %v4073_v0, 0.0  ;;  %7206 = vmatmul.msk.f32.gmra.mxu3 %vm773_vm4, %v9519_v43 }
 0x3b5   : > { %4143 = vst.msk [vmem:[#allocation3 + $0x128] sm:$0xff] %vm773_vm4, %v4105_v57  ;;  %7226 = vmatmul.msk.f32.gmra.mxu0 %vm773_vm4, %v9753_v19 }
 0x3b6   : > { %v4680_v35 = vpop.f32.mrf.mxu2  ;;  %v4949_v8 = vpop.f32.mrf.mxu3 }
 0x3b7   : > { %v9758_v61 = vadd.f32 %v4949_v8, %v4767_v6  ;;  %v4437_v31 = vpop.f32.mrf.mxu1  ;;  %v4770_v63 = vadd.f32 %v4680_v35, %v4435_v3 }
 0x3b8   : > { %v4438_v50 = vadd.f32 %v4437_v31, %v9511_v25 }
 0x3ba   : > { %v9760_v7 = vpop.f32.mrf.mxu0  ;;  %7142 = vmatmul.msk.f32.gmra.mxu1 %vm773_vm4, %v9484_v52 }
 0x3bb   : > { %10839 = vst [vmem:[#allocation33_spill] sm:$0xff] %v9760_v7  ;;  %7176 = vmatmul.msk.f32.gmra.mxu2 %vm773_vm4, %v9553_v30  ;;  %7207 = vmatmul.msk.f32.gmra.mxu3 %vm773_vm4, %v9536_v33 }
 0x3bc   : > { %v9974_v7 = vld [vmem:[#allocation3 + $0x128] sm:$0xff] }
 0x3bd   : > { %7227 = vmatmul.msk.f32.gmra.mxu0 %vm773_vm4, %v9769_v34 }
 0x3be   : > { %v4683_v55 = vpop.f32.mrf.mxu2  ;;  %v4952_v18 = vpop.f32.mrf.mxu3 }
 0x3bf   : > { %v9773_v9 = vadd.f32 %v4952_v18, %v4768_v17  ;;  %v4440_v0 = vpop.f32.mrf.mxu1  ;;  %v4771_v44 = vadd.f32 %v4683_v55, %v4438_v50 }
 0x3c0   : > { %v4441_v25 = vadd.f32 %v4440_v0, %v9528_v29 }
 0x3c2   : > { %v9775_v56 = vpop.f32.mrf.mxu0  ;;  %7143 = vmatmul.msk.f32.gmra.mxu1 %vm773_vm4, %v9502_v20 }
 0x3c3   : > { %10840 = vst [vmem:[#allocation34_spill] sm:$0xff] %v9775_v56  ;;  %7177 = vmatmul.msk.f32.gmra.mxu2 %vm773_vm4, %v9570_v36  ;;  %7208 = vmatmul.msk.f32.gmra.mxu3 %vm773_vm4, %v9553_v30 }
 0x3c5   : > { %7228 = vmatmul.msk.f32.gmra.mxu0 %vm773_vm4, %v9784_v46 }
 0x3c6   : > { %v4686_v57 = vpop.f32.mrf.mxu2  ;;  %v4955_v6 = vpop.f32.mrf.mxu3 }
 0x3c7   : > { %v9788_v8 = vadd.f32 %v4955_v6, %v4769_v16  ;;  %v4443_v51 = vpop.f32.mrf.mxu1 }
 0x3c8   : > { %v4444_v29 = vadd.f32 %v4443_v51, %v9545_v5 }
 0x3ca   : > { %v9790_v17 = vpop.f32.mrf.mxu0  ;;  %7144 = vmatmul.msk.f32.gmra.mxu1 %vm773_vm4, %v9519_v43 }
 0x3cb   : > { %10841 = vst [vmem:[#allocation53_spill] sm:$0xff] %v9790_v17  ;;  %7178 = vmatmul.msk.f32.gmra.mxu2 %vm773_vm4, %v9587_v47  ;;  %7209 = vmatmul.msk.f32.gmra.mxu3 %vm773_vm4, %v9570_v36  ;;  %v5635_v17 = vld [vmem:[#allocation3 + $0x70] sm:$0xff] }
 0x3cd   : > { %7229 = vmatmul.msk.f32.gmra.mxu0 %vm773_vm4, %v9342_v15 }
 0x3ce   : > { %v4689_v28 = vpop.f32.mrf.mxu2  ;;  %v4958_v18 = vpop.f32.mrf.mxu3 }
 0x3cf   : > { %v9801_v58 = vadd.f32 %v4958_v18, %v4770_v63  ;;  %v4446_v16 = vpop.f32.mrf.mxu1 }
 0x3d0   : > { %v4447_v5 = vadd.f32 %v4446_v16, %v9562_v26 }
 0x3d2   : > { %v9803_v6 = vpop.f32.mrf.mxu0  ;;  %7145 = vmatmul.msk.f32.gmra.mxu1 %vm773_vm4, %v9536_v33 }
 0x3d3   : > { %10842 = vst [vmem:[#allocation35_spill] sm:$0xff] %v9803_v6  ;;  %7179 = vmatmul.msk.f32.gmra.mxu2 %vm773_vm4, %v9604_v27  ;;  %7210 = vmatmul.msk.f32.gmra.mxu3 %vm773_vm4, %v9587_v47 }
 0x3d5   : > { %7230 = vmatmul.msk.f32.gmra.mxu0 %vm773_vm4, %v9370_v41  ;;  %v4772_v41 = vadd.f32 %v4686_v57, %v4441_v25 }
 0x3d6   : > { %v4692_v15 = vpop.f32.mrf.mxu2  ;;  %v4961_v35 = vpop.f32.mrf.mxu3 }
 0x3d7   : > { %v9814_v3 = vadd.f32 %v4961_v35, %v4771_v44  ;;  %v9816_v63 = vpop.f32.mrf.mxu1 }
 0x3da   : > { %v9818_v18 = vpop.f32.mrf.mxu0  ;;  %7146 = vmatmul.msk.f32.gmra.mxu1 %vm773_vm4, %v9553_v30 }
 0x3db   : > { %10843 = vst [vmem:[#allocation36_spill] sm:$0xff] %v9818_v18  ;;  %7180 = vmatmul.msk.f32.gmra.mxu2 %vm773_vm4, %v9626_v45  ;;  %7211 = vmatmul.msk.f32.gmra.mxu3 %vm773_vm4, %v9604_v27  ;;  %v5634_v18 = vld [vmem:[#allocation3 + $0x68] sm:$0xff] }
 0x3dd   : > { %7231 = vmatmul.msk.f32.gmra.mxu0 %vm773_vm4, %v9394_v48  ;;  %v4773_v48 = vadd.f32 %v4689_v28, %v4444_v29 }
 0x3de   : > { %v9829_v31 = vpop.f32.mrf.mxu2  ;;  %v4964_v55 = vpop.f32.mrf.mxu3 }
 0x3df   : > { %v9831_v50 = vadd.f32 %v4964_v55, %v4772_v41  ;;  %v9833_v44 = vpop.f32.mrf.mxu1 }
 0x3e2   : > { %v9835_v35 = vpop.f32.mrf.mxu0  ;;  %7147 = vmatmul.msk.f32.gmra.mxu1 %vm773_vm4, %v9570_v36 }
 0x3e3   : > { %10844 = vst [vmem:[#allocation56_spill] sm:$0xff] %v9835_v35  ;;  %7181 = vmatmul.msk.f32.gmra.mxu2 %vm773_vm4, %v9642_v22  ;;  %7212 = vmatmul.msk.f32.gmra.mxu3 %vm773_vm4, %v9626_v45 }
 0x3e5   : > { %7232 = vmatmul.msk.f32.gmra.mxu0 %vm773_vm4, %v9414_v38  ;;  %v4774_v38 = vadd.f32 %v4692_v15, %v4447_v5 }
 0x3e6   : > { %v9846_v0 = vpop.f32.mrf.mxu2  ;;  %v4967_v57 = vpop.f32.mrf.mxu3 }
 0x3e7   : > { %v9848_v25 = vadd.f32 %v4967_v57, %v4773_v48  ;;  %v9850_v41 = vpop.f32.mrf.mxu1 }
 0x3ea   : > { %v9852_v55 = vpop.f32.mrf.mxu0  ;;  %7148 = vmatmul.msk.f32.gmra.mxu1 %vm773_vm4, %v9587_v47 }
 0x3eb   : > { %10845 = vst [vmem:[#allocation37_spill] sm:$0xff] %v9852_v55  ;;  %7182 = vmatmul.msk.f32.gmra.mxu2 %vm773_vm4, %v9658_v59  ;;  %7213 = vmatmul.msk.f32.gmra.mxu3 %vm773_vm4, %v9642_v22 }
 0x3ed   : > { %7233 = vmatmul.msk.f32.gmra.mxu0 %vm773_vm4, %v9433_v32 }
 0x3ee   : > { %v9863_v51 = vpop.f32.mrf.mxu2  ;;  %v4970_v28 = vpop.f32.mrf.mxu3 }
 0x3ef   : > { %v9865_v29 = vadd.f32 %v4970_v28, %v4774_v38  ;;  %v9867_v48 = vpop.f32.mrf.mxu1  ;;  %v9911_v28 = vld [vmem:[#allocation3 + $0x110] sm:$0xff] }
 0x3f2   : > { %v9869_v57 = vpop.f32.mrf.mxu0  ;;  %7149 = vmatmul.msk.f32.gmra.mxu1 %vm773_vm4, %v9604_v27 }
 0x3f3   : > { %10846 = vst [vmem:[#allocation38_spill] sm:$0xff] %v9869_v57  ;;  %7183 = vmatmul.msk.f32.gmra.mxu2 %vm773_vm4, %v9677_v12  ;;  %7214 = vmatmul.msk.f32.gmra.mxu3 %vm773_vm4, %v9658_v59  ;;  %v9927_v57 = vld [vmem:[#allocation3 + $0x118] sm:$0xff] }
 0x3f5   : > { %7234 = vmatmul.msk.f32.gmra.mxu0 %vm773_vm4, %v9450_v2 }
 0x3f6   : > { %v9879_v32 = vpop.f32.mrf.mxu2 }
 0x3f7   : > { %v9881_v26 = vpop.f32.mrf.mxu1 }
 0x3fa   : > { %v9883_v16 = vpop.f32.mrf.mxu0  ;;  %7150 = vmatmul.msk.f32.gmra.mxu1 %vm773_vm4, %v9626_v45 }
 0x3fb   : > { %10847 = vst [vmem:[#allocation59_spill] sm:$0xff] %v9883_v16  ;;  %7184 = vmatmul.msk.f32.gmra.mxu2 %vm773_vm4, %v9696_v37  ;;  %7215 = vmatmul.msk.f32.gmra.mxu3 %vm773_vm4, %v9677_v12 }
 0x3fd   : > { %7235 = vmatmul.msk.f32.gmra.mxu0 %vm773_vm4, %v9467_v11 }
 0x3fe   : > { %v9893_v15 = vpop.f32.mrf.mxu2 }
 0x3ff   : > { %10848 = vst [vmem:[#allocation75_spill] sm:$0xff] %v9893_v15  ;;  %v9895_v2 = vpop.f32.mrf.mxu1 }
 0x400   : > { %10849 = vst [vmem:[#allocation39_spill] sm:$0xff] %v9895_v2  ;;  %v5650_v2 = vld [vmem:[#allocation3 + $0xe8] sm:$0xff] }
 0x402   : > { %v9897_v5 = vpop.f32.mrf.mxu0  ;;  %7151 = vmatmul.msk.f32.gmra.mxu1 %vm773_vm4, %v9642_v22 }
 0x403   : > { %10850 = vst [vmem:[#allocation40_spill] sm:$0xff] %v9897_v5  ;;  %7185 = vmatmul.msk.f32.gmra.mxu2 %vm773_vm4, %v9712_v10  ;;  %7216 = vmatmul.msk.f32.gmra.mxu3 %vm773_vm4, %v9696_v37 }
 0x405   : > { %7236 = vmatmul.msk.f32.gmra.mxu0 %vm773_vm4, %v9484_v52 }
 0x406   : > { %v9907_v38 = vpop.f32.mrf.mxu2 }
 0x407   : > { %10851 = vst [vmem:[#allocation63_spill] sm:$0xff] %v9907_v38  ;;  %v9909_v11 = vpop.f32.mrf.mxu1 }
 0x408   : > { %10852 = vst [vmem:[#allocation78_spill] sm:$0xff] %v9909_v11 }
 0x40a   : > { %v9913_v16 = vpop.f32.mrf.mxu0  ;;  %7152 = vmatmul.msk.f32.gmra.mxu1 %vm773_vm4, %v9658_v59 }
 0x40b   : > { %10853 = vst [vmem:[#allocation41_spill] sm:$0xff] %v9913_v16  ;;  %7186 = vmatmul.msk.f32.gmra.mxu2 %vm773_vm4, %v9911_v28  ;;  %7217 = vmatmul.msk.f32.gmra.mxu3 %vm773_vm4, %v9712_v10 }
 0x40d   : > { %7237 = vmatmul.msk.f32.gmra.mxu0 %vm773_vm4, %v9502_v20 }
 0x40e   : > { %v9923_v52 = vpop.f32.mrf.mxu2 }
 0x40f   : > { %10854 = vst [vmem:[#allocation43_spill] sm:$0xff] %v9923_v52  ;;  %v9925_v5 = vpop.f32.mrf.mxu1  ;;  %v5646_v52 = vld [vmem:[#allocation3 + $0xc8] sm:$0xff] }
 0x410   : > { %10855 = vst [vmem:[#allocation65_spill] sm:$0xff] %v9925_v5 }
 0x412   : > { %v9929_v55 = vpop.f32.mrf.mxu0  ;;  %7153 = vmatmul.msk.f32.gmra.mxu1 %vm773_vm4, %v9677_v12 }
 0x413   : > { %10856 = vst [vmem:[#allocation42_spill] sm:$0xff] %v9929_v55  ;;  %7187 = vmatmul.msk.f32.gmra.mxu2 %vm773_vm4, %v9927_v57  ;;  %7218 = vmatmul.msk.f32.gmra.mxu3 %vm773_vm4, %v9911_v28 }
 0x415   : > { %7238 = vmatmul.msk.f32.gmra.mxu0 %vm773_vm4, %v9519_v43 }
 0x416   : > { %v9939_v20 = vpop.f32.mrf.mxu2 }
 0x417   : > { %10857 = vst [vmem:[#allocation45_spill] sm:$0xff] %v9939_v20  ;;  %v9941_v16 = vpop.f32.mrf.mxu1 }
 0x418   : > { %10858 = vst [vmem:[#allocation67_spill] sm:$0xff] %v9941_v16 }
 0x41a   : > { %v9943_v35 = vpop.f32.mrf.mxu0  ;;  %7258 = vmatmul.msk.f32.vlgmr.msra.gmra.mxu1 %vm773_vm4, %v9753_v19 }
 0x41b   : > { %10859 = vst [vmem:[#allocation44_spill] sm:$0xff] %v9943_v35  ;;  %7292 = vmatmul.msk.f32.vlgmr.msra.gmra.mxu2 %vm773_vm4, %v9784_v46  ;;  %7219 = vmatmul.msk.f32.gmra.mxu3 %vm773_vm4, %v9927_v57  ;;  %v9959_v35 = vld [vmem:[#allocation3 + $0x120] sm:$0xff] }
 0x41d   : > { %7239 = vmatmul.msk.f32.gmra.mxu0 %vm773_vm4, %v9536_v33 }
 0x41e   : > { %v9953_v55 = vpop.f32.mrf.mxu2 }
 0x41f   : > { %10860 = vst [vmem:[#allocation48_spill] sm:$0xff] %v9953_v55  ;;  %v9955_v43 = vpop.f32.mrf.mxu1 }
 0x420   : > { %10861 = vst [vmem:[#allocation69_spill] sm:$0xff] %v9955_v43  ;;  %v9997_v43 = vpop.f32.mrf.mxu3 }
 0x422   : > { %v9957_v6 = vpop.f32.mrf.mxu0  ;;  %7259 = vmatmul.msk.f32.gmra.mxu1 %vm773_vm4, %v9769_v34 }
 0x423   : > { %7293 = vmatmul.msk.f32.gmra.mxu2 %vm773_vm4, %v5634_v18  ;;  %7220 = vmatmul.msk.f32.gmra.mxu3 %vm773_vm4, %v9959_v35 }
 0x425   : > { %7240 = vmatmul.msk.f32.gmra.mxu0 %vm773_vm4, %v9553_v30 }
 0x426   : > { %v9968_v33 = vpop.f32.mrf.mxu2 }
 0x427   : > { %10862 = vst [vmem:[#allocation47_spill] sm:$0xff] %v9968_v33  ;;  %v9970_v19 = vpop.f32.mrf.mxu1 }
 0x428   : > { %10863 = vst [vmem:[#allocation51_spill] sm:$0xff] %v9970_v19  ;;  %v5636_v19 = vld [vmem:[#allocation3 + $0x78] sm:$0xff] }
 0x42a   : > { %v9972_v56 = vpop.f32.mrf.mxu0  ;;  %7260 = vmatmul.msk.f32.gmra.mxu1 %vm773_vm4, %v9784_v46 }
 0x42b   : > { %7294 = vmatmul.msk.f32.gmra.mxu2 %vm773_vm4, %v5635_v17  ;;  %7221 = vmatmul.msk.f32.gmra.mxu3 %vm773_vm4, %v9974_v7 }
 0x42d   : > { %7241 = vmatmul.msk.f32.gmra.mxu0 %vm773_vm4, %v9570_v36  ;;  %v5637_v36 = vld [vmem:[#allocation3 + $0x80] sm:$0xff] }
 0x42e   : > { %v9983_v30 = vpop.f32.mrf.mxu2 }
 0x42f   : > { %10864 = vst [vmem:[#allocation72_spill] sm:$0xff] %v9983_v30  ;;  %v9985_v34 = vpop.f32.mrf.mxu1 }
 0x430   : > { %10865 = vst [vmem:[#allocation49_spill] sm:$0xff] %v9985_v34 }
 0x432   : > { %v9987_v49 = vpop.f32.mrf.mxu0  ;;  %7261 = vmatmul.msk.f32.gmra.mxu1 %vm773_vm4, %v5634_v18 }
 0x433   : > { %7295 = vmatmul.msk.f32.gmra.mxu2 %vm773_vm4, %v5636_v19 }
 0x435   : > { %7242 = vmatmul.msk.f32.gmra.mxu0 %vm773_vm4, %v9587_v47  ;;  %v5638_v47 = vld [vmem:[#allocation3 + $0x88] sm:$0xff] }
 0x436   : > { %v9993_v46 = vpop.f32.mrf.mxu2 }
 0x437   : > { %10866 = vst [vmem:[#allocation54_spill] sm:$0xff] %v9993_v46  ;;  %v9995_v33 = vpop.f32.mrf.mxu1 }
 0x438   : > { %10867 = vst [vmem:[#allocation74_spill] sm:$0xff] %v9995_v33  ;;  %v10013_v33 = vpop.f32.mrf.mxu3 }
 0x43a   : > { %v9999_v30 = vpop.f32.mrf.mxu0  ;;  %7262 = vmatmul.msk.f32.gmra.mxu1 %vm773_vm4, %v5635_v17 }
 0x43b   : > { %7296 = vmatmul.msk.f32.gmra.mxu2 %vm773_vm4, %v5637_v36 }
 0x43d   : > { %7243 = vmatmul.msk.f32.gmra.mxu0 %vm773_vm4, %v9604_v27  ;;  %v5639_v27 = vld [vmem:[#allocation3 + $0x90] sm:$0xff] }
 0x43e   : > { %v10005_v18 = vpop.f32.mrf.mxu2 }
 0x43f   : > { %10868 = vst [vmem:[#allocation52_spill] sm:$0xff] %v10005_v18  ;;  %v10007_v34 = vpop.f32.mrf.mxu1 }
 0x440   : > { %10869 = vst [vmem:[#allocation58_spill] sm:$0xff] %v10007_v34  ;;  %v10025_v34 = vpop.f32.mrf.mxu3 }
 0x442   : > { %v10009_v46 = vpop.f32.mrf.mxu0  ;;  %7263 = vmatmul.msk.f32.gmra.mxu1 %vm773_vm4, %v5636_v19 }
 0x443   : > { %7297 = vmatmul.msk.f32.gmra.mxu2 %vm773_vm4, %v5638_v47 }
 0x445   : > { %7244 = vmatmul.msk.f32.gmra.mxu0 %vm773_vm4, %v9626_v45  ;;  %v5640_v45 = vld [vmem:[#allocation3 + $0x98] sm:$0xff] }
 0x446   : > { %v10017_v17 = vpop.f32.mrf.mxu2 }
 0x447   : > { %10870 = vst [vmem:[#allocation77_spill] sm:$0xff] %v10017_v17  ;;  %v10019_v4 = vpop.f32.mrf.mxu1 }
 0x448   : > { %10871 = vst [vmem:[#allocation55_spill] sm:$0xff] %v10019_v4  ;;  %v10041_v4 = vpop.f32.mrf.mxu3 }
 0x44a   : > { %v10021_v18 = vpop.f32.mrf.mxu0  ;;  %7264 = vmatmul.msk.f32.gmra.mxu1 %vm773_vm4, %v5637_v36 }
 0x44b   : > { %7298 = vmatmul.msk.f32.gmra.mxu2 %vm773_vm4, %v5639_v27 }
 0x44d   : > { %7245 = vmatmul.msk.f32.gmra.mxu0 %vm773_vm4, %v9642_v22  ;;  %v5641_v22 = vld [vmem:[#allocation3 + $0xa0] sm:$0xff] }
 0x44e   : > { %v10029_v19 = vpop.f32.mrf.mxu2 }
 0x44f   : > { %10872 = vst [vmem:[#allocation61_spill] sm:$0xff] %v10029_v19  ;;  %v10031_v55 = vpop.f32.mrf.mxu1 }
 0x450   : > { %10873 = vst [vmem:[#allocation57_spill] sm:$0xff] %v10031_v55 }
 0x452   : > { %v10033_v17 = vpop.f32.mrf.mxu0  ;;  %7265 = vmatmul.msk.f32.gmra.mxu1 %vm773_vm4, %v5638_v47 }
 0x453   : > { %7299 = vmatmul.msk.f32.gmra.mxu2 %vm773_vm4, %v5640_v45 }
 0x455   : > { %7246 = vmatmul.msk.f32.gmra.mxu0 %vm773_vm4, %v9658_v59  ;;  %v10055_v59 = vpop.f32.mrf.mxu3 }
 0x456   : > { %v10039_v36 = vpop.f32.mrf.mxu2  ;;  %10878 = vst [vmem:[#allocation68_spill] sm:$0xff] %v10055_v59 }
 0x457   : > { %10874 = vst [vmem:[#allocation64_spill] sm:$0xff] %v10039_v36  ;;  %v10043_v16 = vpop.f32.mrf.mxu1  ;;  %v5642_v36 = vld [vmem:[#allocation3 + $0xa8] sm:$0xff] }
 0x458   : > { %10875 = vst [vmem:[#allocation60_spill] sm:$0xff] %v10043_v16 }
 0x45a   : > { %v10045_v19 = vpop.f32.mrf.mxu0  ;;  %7266 = vmatmul.msk.f32.gmra.mxu1 %vm773_vm4, %v5639_v27 }
 0x45b   : > { %7300 = vmatmul.msk.f32.gmra.mxu2 %vm773_vm4, %v5641_v22 }
 0x45d   : > { %7247 = vmatmul.msk.f32.gmra.mxu0 %vm773_vm4, %v9677_v12  ;;  %v5643_v12 = vld [vmem:[#allocation3 + $0xb0] sm:$0xff] }
 0x45e   : > { %v10051_v47 = vpop.f32.mrf.mxu2 }
 0x45f   : > { %10876 = vst [vmem:[#allocation66_spill] sm:$0xff] %v10051_v47  ;;  %v10053_v55 = vpop.f32.mrf.mxu1 }
 0x460   : > { %10877 = vst [vmem:[#allocation62_spill] sm:$0xff] %v10053_v55  ;;  %v10071_v55 = vpop.f32.mrf.mxu3 }
 0x461   : > { %10881 = vst [vmem:[#allocation73_spill] sm:$0xff] %v10071_v55  ;;  %v5648_v55 = vld [vmem:[#allocation3 + $0xd8] sm:$0xff] }
 0x462   : > { %v10057_v20 = vpop.f32.mrf.mxu0  ;;  %7267 = vmatmul.msk.f32.gmra.mxu1 %vm773_vm4, %v5640_v45 }
 0x463   : > { %7301 = vmatmul.msk.f32.gmra.mxu2 %vm773_vm4, %v5642_v36 }
 0x465   : > { %7248 = vmatmul.msk.f32.gmra.mxu0 %vm773_vm4, %v9696_v37  ;;  %v5644_v37 = vld [vmem:[#allocation3 + $0xb8] sm:$0xff] }
 0x466   : > { %v10063_v27 = vpop.f32.mrf.mxu2 }
 0x467   : > { %10879 = vst [vmem:[#allocation70_spill] sm:$0xff] %v10063_v27  ;;  %v10065_v16 = vpop.f32.mrf.mxu1 }
 0x468   : > { %10880 = vst [vmem:[#allocation71_spill] sm:$0xff] %v10065_v16  ;;  %v10083_v16 = vpop.f32.mrf.mxu3 }
 0x469   : > { %10884 = vst [vmem:[#allocation80_spill] sm:$0xff] %v10083_v16 }
 0x46a   : > { %v10067_v47 = vpop.f32.mrf.mxu0  ;;  %7268 = vmatmul.msk.f32.gmra.mxu1 %vm773_vm4, %v5641_v22 }
 0x46b   : > { %7302 = vmatmul.msk.f32.gmra.mxu2 %vm773_vm4, %v5643_v12 }
 0x46d   : > { %7249 = vmatmul.msk.f32.gmra.mxu0 %vm773_vm4, %v9712_v10  ;;  %v5645_v10 = vld [vmem:[#allocation3 + $0xc0] sm:$0xff] }
 0x46e   : > { %v10075_v45 = vpop.f32.mrf.mxu2 }
 0x46f   : > { %10882 = vst [vmem:[#allocation76_spill] sm:$0xff] %v10075_v45  ;;  %v10077_v5 = vpop.f32.mrf.mxu1 }
 0x470   : > { %10883 = vst [vmem:[#allocation79_spill] sm:$0xff] %v10077_v5  ;;  %v10099_v5 = vpop.f32.mrf.mxu3 }
 0x471   : > { %10888 = vst [vmem:[#allocation84_spill] sm:$0xff] %v10099_v5 }
 0x472   : > { %v10079_v27 = vpop.f32.mrf.mxu0  ;;  %7269 = vmatmul.msk.f32.gmra.mxu1 %vm773_vm4, %v5642_v36 }
 0x473   : > { %7303 = vmatmul.msk.f32.gmra.mxu2 %vm773_vm4, %v5644_v37 }
 0x475   : > { %7250 = vmatmul.msk.f32.gmra.mxu0 %vm773_vm4, %v9911_v28 }
 0x476   : > { %v10087_v22 = vpop.f32.mrf.mxu2 }
 0x477   : > { %10885 = vst [vmem:[#allocation81_spill] sm:$0xff] %v10087_v22  ;;  %v10089_v23 = vpop.f32.mrf.mxu1 }
 0x478   : > { %10886 = vst [vmem:[#allocation82_spill] sm:$0xff] %v10089_v23  ;;  %v10113_v11 = vpop.f32.mrf.mxu3 }
 0x479   : > { %10893 = vst [vmem:[#allocation89_spill] sm:$0xff] %v10113_v11 }
 0x47a   : > { %v10091_v45 = vpop.f32.mrf.mxu0  ;;  %7270 = vmatmul.msk.f32.gmra.mxu1 %vm773_vm4, %v5643_v12 }
 0x47b   : > { %7304 = vmatmul.msk.f32.gmra.mxu2 %vm773_vm4, %v5645_v10 }
 0x47d   : > { %7251 = vmatmul.msk.f32.gmra.mxu0 %vm773_vm4, %v9927_v57 }
 0x47e   : > { %v10097_v36 = vpop.f32.mrf.mxu2 }
 0x47f   : > { %10887 = vst [vmem:[#allocation83_spill] sm:$0xff] %v10097_v36  ;;  %v10101_v16 = vpop.f32.mrf.mxu1  ;;  %v5647_v36 = vld [vmem:[#allocation3 + $0xd0] sm:$0xff] }
 0x480   : > { %10889 = vst [vmem:[#allocation85_spill] sm:$0xff] %v10101_v16  ;;  %v10131_v11 = vpop.f32.mrf.mxu3 }
 0x481   : > { %10898 = vst [vmem:[#allocation94_spill] sm:$0xff] %v10131_v11  ;;  %v10148_v11 = vld [vmem:[%s10631_s7] ss:$0 sm:$0xff] }
 0x482   : > { %v10103_v22 = vpop.f32.mrf.mxu0  ;;  %7271 = vmatmul.msk.f32.gmra.mxu1 %vm773_vm4, %v5644_v37 }
 0x483   : > { %10890 = vst [vmem:[#allocation86_spill] sm:$0xff] %v10103_v22  ;;  %7305 = vmatmul.msk.f32.gmra.mxu2 %vm773_vm4, %v5646_v52 }
 0x485   : > { %7252 = vmatmul.msk.f32.gmra.mxu0 %vm773_vm4, %v9959_v35 }
 0x486   : > { %v10109_v12 = vpop.f32.mrf.mxu2 }
 0x487   : > { %10891 = vst [vmem:[#allocation87_spill] sm:$0xff] %v10109_v12  ;;  %v10111_v23 = vpop.f32.mrf.mxu1 }
 0x488   : > { %10892 = vst [vmem:[#allocation88_spill] sm:$0xff] %v10111_v23  ;;  %v10129_v23 = vld [vmem:[#allocation3 + $0x130] sm:$0xff] }
 0x48a   : > { %v10115_v5 = vpop.f32.mrf.mxu0  ;;  %7272 = vmatmul.msk.f32.gmra.mxu1 %vm773_vm4, %v5645_v10 }
 0x48b   : > { %10894 = vst [vmem:[#allocation90_spill] sm:$0xff] %v10115_v5  ;;  %7306 = vmatmul.msk.f32.gmra.mxu2 %vm773_vm4, %v5647_v36 }
 0x48d   : > { %7253 = vmatmul.msk.f32.gmra.mxu0 %vm773_vm4, %v9974_v7 }
 0x48e   : > { %v10121_v37 = vpop.f32.mrf.mxu2 }
 0x48f   : > { %10895 = vst [vmem:[#allocation91_spill] sm:$0xff] %v10121_v37  ;;  %v10123_v16 = vpop.f32.mrf.mxu1  ;;  %v5649_v37 = vld [vmem:[#allocation3 + $0xe0] sm:$0xff] }
 0x490   : > { %10896 = vst [vmem:[#allocation92_spill] sm:$0xff] %v10123_v16  ;;  %v5323_v16 = vadd.f32 %v9957_v6, %v9758_v61 }
 0x492   : > { %v10125_v12 = vpop.f32.mrf.mxu0  ;;  %7273 = vmatmul.msk.f32.gmra.mxu1 %vm773_vm4, %v5646_v52  ;;  %v10143_v52 = vld [vmem:[#allocation3 + $0x138] sm:$0xff] }
 0x493   : > { %10897 = vst [vmem:[#allocation93_spill] sm:$0xff] %v10125_v12  ;;  %7307 = vmatmul.msk.f32.gmra.mxu2 %vm773_vm4, %v5648_v55 }
 0x495   : > { %7254 = vmatmul.msk.f32.gmra.mxu0 %vm773_vm4, %v10129_v23 }
 0x496   : > { %v10135_v10 = vpop.f32.mrf.mxu2 }
 0x497   : > { %10899 = vst [vmem:[#allocation95_spill] sm:$0xff] %v10135_v10  ;;  %v5505_v5 = vpop.f32.mrf.mxu1  ;;  %v10150_v10 = vpop.f32.mrf.mxu3 }
 0x498   : > { %v5601_v12 = vadd.f32 %v5505_v5, %v5323_v16  ;;  %10901 = vst [vmem:[#allocation97_spill] sm:$0xff] %v10150_v10  ;;  %v5324_v16 = vadd.f32 %v9972_v56, %v9773_v9  ;;  %v5651_v56 = vld [vmem:[#allocation3 + $0xf0] sm:$0xff] }
 0x49a   : > { %v10139_v38 = vpop.f32.mrf.mxu0  ;;  %7274 = vmatmul.msk.f32.gmra.mxu1 %vm773_vm4, %v5647_v36 }
 0x49b   : > { %10900 = vst [vmem:[#allocation96_spill] sm:$0xff] %v10139_v38  ;;  %7308 = vmatmul.msk.f32.gmra.mxu2 %vm773_vm4, %v5649_v37 }
 0x49d   : > { %7255 = vmatmul.msk.f32.gmra.mxu0 %vm773_vm4, %v10143_v52 }
 0x49e   : > { %v5783_v61 = vpop.f32.mrf.mxu2 }
 0x49f   : > { %v5879_v6 = vadd.f32 %v5783_v61, %v5601_v12  ;;  %v5508_v38 = vpop.f32.mrf.mxu1  ;;  %v10903_v12 = vmax.f32 %v7640_v54, 0.0  ;;  %v10165_v59 = vpop.f32.mrf.mxu3 }
 0x4a0   : > { %v5602_v10 = vadd.f32 %v5508_v38, %v5324_v16  ;;  %v10904_v38 = vmax.f32 %v7667_v1, 0.0 }
 0x4a1   : > { %v5915_v36 = vadd.f32 %v10148_v11, %v5879_v6 }
 0x4a2   : > { %v10157_v22 = vpop.f32.mrf.mxu0  ;;  %7275 = vmatmul.msk.f32.gmra.mxu1 %vm773_vm4, %v5648_v55  ;;  %v5325_v55 = vadd.f32 %v9987_v49, %v9788_v8  ;;  %v5652_v8 = vld [vmem:[#allocation3 + $0xf8] sm:$0xff] }
 0x4a3   : > { %v5947_v5 = vmax.f32 %v5915_v36, 0.0  ;;  %10902 = vst [vmem:[#allocation98_spill] sm:$0xff] %v10157_v22  ;;  %7309 = vmatmul.msk.f32.gmra.mxu2 %vm773_vm4, %v5650_v2 }
 0x4a5   : > { %7324 = vmatmul.msk.f32.vlgmr.msra.gmra.mxu3 %vm5981_vm5, %v5947_v5  ;;  %7356 = vmatmul.msk.f32.vlgmr.msra.gmra.mxu0 %vm5981_vm5, %v10903_v12 }
 0x4a6   : > { %v5786_v61 = vpop.f32.mrf.mxu2 }
 0x4a7   : > { %v5880_v6 = vadd.f32 %v5786_v61, %v5602_v10  ;;  %v5511_v15 = vpop.f32.mrf.mxu1  ;;  %v10179_v49 = vpop.f32.mrf.mxu3 }
 0x4a8   : > { %v5603_v54 = vadd.f32 %v5511_v15, %v5325_v55  ;;  %v10905_v15 = vld [vmem:[#allocation5_spill] sm:$0xff] }
 0x4a9   : > { %v5916_v9 = vadd.f32 %v10148_v11, %v5880_v6 }
 0x4aa   : > { %v10170_v22 = vpop.f32.mrf.mxu0  ;;  %7276 = vmatmul.msk.f32.gmra.mxu1 %vm773_vm4, %v5649_v37  ;;  %v5326_v37 = vadd.f32 %v9999_v30, %v9801_v58  ;;  %v5653_v58 = vld [vmem:[#allocation3 + $0x100] sm:$0xff]  ;;  %v5327_v30 = vadd.f32 %v10009_v46, %v9814_v3  ;;  %v5654_v46 = vld [vmem:[#allocation3 + $0x108] sm:$0xff] }
 0x4ab   : > { %v5948_v36 = vmax.f32 %v5916_v9, 0.0  ;;  %7310 = vmatmul.msk.f32.gmra.mxu2 %vm773_vm4, %v5651_v56  ;;  %v10906_v9 = vmax.f32 %v10905_v15, 0.0 }
 0x4ad   : > { %7325 = vmatmul.msk.f32.gmra.mxu3 %vm5981_vm5, %v5948_v36  ;;  %7357 = vmatmul.msk.f32.gmra.mxu0 %vm5981_vm5, %v10904_v38 }
 0x4ae   : > { %v5789_v10 = vpop.f32.mrf.mxu2 }
 0x4af   : > { %v5881_v16 = vadd.f32 %v5789_v10, %v5603_v54  ;;  %v5514_v5 = vpop.f32.mrf.mxu1 }
 0x4b0   : > { %v5604_v1 = vadd.f32 %v5514_v5, %v5326_v37 }
 0x4b1   : > { %v5917_v12 = vadd.f32 %v10148_v11, %v5881_v16  ;;  %v10198_v16 = vpop.f32.mrf.mxu3 }
 0x4b2   : > { %v10183_v6 = vpop.f32.mrf.mxu0  ;;  %7277 = vmatmul.msk.f32.gmra.mxu1 %vm773_vm4, %v5650_v2 }
 0x4b3   : > { %v5949_v61 = vmax.f32 %v5917_v12, 0.0  ;;  %7311 = vmatmul.msk.f32.gmra.mxu2 %vm773_vm4, %v5652_v8  ;;  %v10907_v12 = vmax.f32 %v7692_v13, 0.0 }
 0x4b5   : > { %7326 = vmatmul.msk.f32.gmra.mxu3 %vm5981_vm5, %v5949_v61  ;;  %7358 = vmatmul.msk.f32.gmra.mxu0 %vm5981_vm5, %v10906_v9 }
 0x4b6   : > { %v5792_v55 = vpop.f32.mrf.mxu2 }
 0x4b7   : > { %v5882_v36 = vadd.f32 %v5792_v55, %v5604_v1  ;;  %v5517_v54 = vpop.f32.mrf.mxu1 }
 0x4b8   : > { %v5605_v5 = vadd.f32 %v5517_v54, %v5327_v30 }
 0x4b9   : > { %v5918_v38 = vadd.f32 %v10148_v11, %v5882_v36  ;;  %v10212_v13 = vpop.f32.mrf.mxu3  ;;  %v10908_v36 = vmax.f32 %v7709_v21, 0.0  ;;  %v10909_v21 = vmax.f32 %v7760_v40, 0.0  ;;  %v4450_v40 = vadd.f32 %v9816_v63, %v9579_v24 }
 0x4ba   : > { %v10194_v2 = vpop.f32.mrf.mxu0  ;;  %7278 = vmatmul.msk.f32.gmra.mxu1 %vm773_vm4, %v5651_v56  ;;  %v5328_v56 = vadd.f32 %v10021_v18, %v9831_v50  ;;  %v5329_v18 = vadd.f32 %v10033_v17, %v9848_v25 }
 0x4bb   : > { %v5950_v10 = vmax.f32 %v5918_v38, 0.0  ;;  %7312 = vmatmul.msk.f32.gmra.mxu2 %vm773_vm4, %v5653_v58 }
 0x4bd   : > { %7327 = vmatmul.msk.f32.gmra.mxu3 %vm5981_vm5, %v5950_v10  ;;  %7359 = vmatmul.msk.f32.gmra.mxu0 %vm5981_vm5, %v10907_v12 }
 0x4be   : > { %v5795_v37 = vpop.f32.mrf.mxu2 }
 0x4bf   : > { %v5883_v61 = vadd.f32 %v5795_v37, %v5605_v5  ;;  %v5520_v1 = vpop.f32.mrf.mxu1 }
 0x4c0   : > { %v5606_v55 = vadd.f32 %v5520_v1, %v5328_v56 }
 0x4c1   : > { %v5919_v3 = vadd.f32 %v10148_v11, %v5883_v61  ;;  %v10229_v61 = vpop.f32.mrf.mxu3 }
 0x4c2   : > { %v10207_v9 = vpop.f32.mrf.mxu0  ;;  %7279 = vmatmul.msk.f32.gmra.mxu1 %vm773_vm4, %v5652_v8 }
 0x4c3   : > { %v5951_v15 = vmax.f32 %v5919_v3, 0.0  ;;  %7313 = vmatmul.msk.f32.gmra.mxu2 %vm773_vm4, %v5654_v46 }
 0x4c5   : > { %7328 = vmatmul.msk.f32.gmra.mxu3 %vm5981_vm5, %v5951_v15  ;;  %7360 = vmatmul.msk.f32.gmra.mxu0 %vm5981_vm5, %v10908_v36  ;;  %v10910_v15 = vmax.f32 %v7763_v42, 0.0  ;;  %v4453_v42 = vadd.f32 %v9833_v44, %v9596_v14 }
 0x4c6   : > { %v5798_v54 = vpop.f32.mrf.mxu2 }
 0x4c7   : > { %v5884_v38 = vadd.f32 %v5798_v54, %v5606_v55  ;;  %v5523_v30 = vpop.f32.mrf.mxu1 }
 0x4c8   : > { %v5607_v5 = vadd.f32 %v5523_v30, %v5329_v18  ;;  %v4776_v18 = vadd.f32 %v9846_v0, %v4453_v42  ;;  %v4456_v0 = vadd.f32 %v9850_v41, %v9618_v39  ;;  %v4459_v41 = vadd.f32 %v9867_v48, %v9634_v62  ;;  %v10918_v42 = vld [vmem:[#allocation75_spill] sm:$0xff] }
 0x4c9   : > { %v5920_v50 = vadd.f32 %v10148_v11, %v5884_v38  ;;  %v10248_v38 = vpop.f32.mrf.mxu3 }
 0x4ca   : > { %v10220_v10 = vpop.f32.mrf.mxu0  ;;  %7280 = vmatmul.msk.f32.gmra.mxu1 %vm773_vm4, %v5653_v58  ;;  %v5330_v58 = vadd.f32 %v10045_v19, %v9865_v29  ;;  %v4775_v29 = vadd.f32 %v9829_v31, %v4450_v40 }
 0x4cb   : > { %v5952_v8 = vmax.f32 %v5920_v50, 0.0  ;;  %7314 = vmatmul.msk.f32.gmra.mxu2 %vm773_vm4, %v9911_v28 }
 0x4cd   : > { %7329 = vmatmul.msk.f32.gmra.mxu3 %vm5981_vm5, %v5952_v8  ;;  %7361 = vmatmul.msk.f32.gmra.mxu0 %vm5981_vm5, %v10909_v21 }
 0x4ce   : > { %v5801_v12 = vpop.f32.mrf.mxu2 }
 0x4cf   : > { %v5885_v37 = vadd.f32 %v5801_v12, %v5607_v5  ;;  %v5526_v25 = vpop.f32.mrf.mxu1 }
 0x4d0   : > { %v5608_v56 = vadd.f32 %v5526_v25, %v5330_v58  ;;  %v4777_v58 = vadd.f32 %v9863_v51, %v4456_v0 }
 0x4d1   : > { %v5921_v17 = vadd.f32 %v10148_v11, %v5885_v37  ;;  %v10273_v44 = vpop.f32.mrf.mxu3 }
 0x4d2   : > { %v10234_v3 = vpop.f32.mrf.mxu0  ;;  %7281 = vmatmul.msk.f32.gmra.mxu1 %vm773_vm4, %v5654_v46  ;;  %v5053_v46 = vadd.f32 %v9997_v43, %v4775_v29  ;;  %v10911_v43 = vld [vmem:[#allocation10_spill] sm:$0xff]  ;;  %v5055_v40 = vadd.f32 %v10025_v34, %v4777_v58  ;;  %v10915_v29 = vmax.f32 %v7652_v60, 0.0  ;;  %v4462_v60 = vadd.f32 %v9881_v26, %v9650_v53  ;;  %v10925_v58 = vld [vmem:[#allocation63_spill] sm:$0xff] }
 0x4d3   : > { %v5953_v1 = vmax.f32 %v5921_v17, 0.0  ;;  %7315 = vmatmul.msk.f32.gmra.mxu2 %vm773_vm4, %v9927_v57  ;;  %v10912_v50 = vmax.f32 %v10911_v43, 0.0  ;;  %v10920_v53 = vld [vmem:[#allocation86_spill] sm:$0xff] }
 0x4d4   : > { %v5331_v24 = vadd.f32 %v10057_v20, %v5053_v46 }
 0x4d5   : > { %7330 = vmatmul.msk.f32.gmra.mxu3 %vm5981_vm5, %v5953_v1  ;;  %7362 = vmatmul.msk.f32.gmra.mxu0 %vm5981_vm5, %v10910_v15  ;;  %v5333_v15 = vadd.f32 %v10079_v27, %v5055_v40 }
 0x4d6   : > { %v5804_v55 = vpop.f32.mrf.mxu2 }
 0x4d7   : > { %v5886_v19 = vadd.f32 %v5804_v55, %v5608_v56  ;;  %v5529_v36 = vpop.f32.mrf.mxu1 }
 0x4d8   : > { %v5609_v31 = vadd.f32 %v5529_v36, %v5331_v24 }
 0x4d9   : > { %v5922_v54 = vadd.f32 %v10148_v11, %v5886_v19  ;;  %v10294_v34 = vpop.f32.mrf.mxu3  ;;  %v4778_v19 = vadd.f32 %v9879_v32, %v4459_v41 }
 0x4da   : > { %v10251_v30 = vpop.f32.mrf.mxu0  ;;  %7282 = vmatmul.msk.f32.gmra.mxu1 %vm773_vm4, %v9911_v28  ;;  %v5054_v28 = vadd.f32 %v10013_v33, %v4776_v18  ;;  %v10913_v33 = vld [vmem:[#allocation4_spill] sm:$0xff] }
 0x4db   : > { %v5954_v63 = vmax.f32 %v5922_v54, 0.0  ;;  %7316 = vmatmul.msk.f32.gmra.mxu2 %vm773_vm4, %v9959_v35  ;;  %v10914_v17 = vmax.f32 %v10913_v33, 0.0  ;;  %v5056_v46 = vadd.f32 %v10041_v4, %v4778_v19  ;;  %v10916_v4 = vld [vmem:[#allocation6_spill] sm:$0xff]  ;;  %v10919_v18 = vld [vmem:[#allocation68_spill] sm:$0xff] }
 0x4dc   : > { %v5332_v12 = vadd.f32 %v10067_v47, %v5054_v28  ;;  %v10923_v33 = vld [vmem:[#allocation8_spill] sm:$0xff] }
 0x4dd   : > { %7331 = vmatmul.msk.f32.gmra.mxu3 %vm5981_vm5, %v5954_v63  ;;  %7363 = vmatmul.msk.f32.gmra.mxu0 %vm5981_vm5, %v10912_v50  ;;  %v5334_v62 = vadd.f32 %v10091_v45, %v5056_v46  ;;  %v10917_v63 = vmax.f32 %v10916_v4, 0.0 }
 0x4de   : > { %v5807_v20 = vpop.f32.mrf.mxu2 }
 0x4df   : > { %v5887_v8 = vadd.f32 %v5807_v20, %v5609_v31  ;;  %v5532_v5 = vpop.f32.mrf.mxu1  ;;  %v4779_v31 = vadd.f32 %v10918_v42, %v4462_v60  ;;  %v5661_v20 = vld [vmem:[#allocation3 + $0x140] sm:$0xff]  ;;  %v5663_v42 = vld [vmem:[#allocation3 + $0x150] sm:$0xff] }
 0x4e0   : > { %v5610_v25 = vadd.f32 %v5532_v5, %v5332_v12  ;;  %v10921_v12 = vld [vmem:[#allocation29_spill] sm:$0xff] }
 0x4e1   : > { %v5923_v21 = vadd.f32 %v10148_v11, %v5887_v8  ;;  %v10316_v50 = vpop.f32.mrf.mxu3  ;;  %v5057_v8 = vadd.f32 %v10919_v18, %v4779_v31  ;;  %v10933_v31 = vld [vmem:[#allocation80_spill] sm:$0xff] }
 0x4e2   : > { %v10267_v14 = vpop.f32.mrf.mxu0  ;;  %7283 = vmatmul.msk.f32.gmra.mxu1 %vm773_vm4, %v9927_v57 }
 0x4e3   : > { %v5955_v37 = vmax.f32 %v5923_v21, 0.0  ;;  %7317 = vmatmul.msk.f32.gmra.mxu2 %vm773_vm4, %v9974_v7  ;;  %v5335_v26 = vadd.f32 %v10920_v53, %v5057_v8 }
 0x4e5   : > { %7332 = vmatmul.msk.f32.gmra.mxu3 %vm5981_vm5, %v5955_v37  ;;  %7364 = vmatmul.msk.f32.gmra.mxu0 %vm5981_vm5, %v10914_v17  ;;  %v10922_v37 = vld [vmem:[#allocation39_spill] sm:$0xff]  ;;  %v10924_v17 = vmax.f32 %v10923_v33, 0.0 }
 0x4e6   : > { %v5810_v47 = vpop.f32.mrf.mxu2  ;;  %v4465_v0 = vadd.f32 %v10922_v37, %v10921_v12 }
 0x4e7   : > { %v5888_v1 = vadd.f32 %v5810_v47, %v5610_v25  ;;  %v5535_v57 = vpop.f32.mrf.mxu1 }
 0x4e8   : > { %v5611_v51 = vadd.f32 %v5535_v57, %v5333_v15  ;;  %v10926_v15 = vld [vmem:[#allocation73_spill] sm:$0xff] }
 0x4e9   : > { %v5924_v56 = vadd.f32 %v10148_v11, %v5888_v1  ;;  %v4780_v1 = vadd.f32 %v10925_v58, %v4465_v0  ;;  %v10335_v41 = vpop.f32.mrf.mxu3  ;;  %v10937_v0 = vld [vmem:[#allocation9_spill] sm:$0xff] }
 0x4ea   : > { %v10285_v39 = vpop.f32.mrf.mxu0  ;;  %7284 = vmatmul.msk.f32.gmra.mxu1 %vm773_vm4, %v9959_v35 }
 0x4eb   : > { %v5956_v55 = vmax.f32 %v5924_v56, 0.0  ;;  %7318 = vmatmul.msk.f32.gmra.mxu2 %vm773_vm4, %v10129_v23  ;;  %v5662_v56 = vld [vmem:[#allocation3 + $0x148] sm:$0xff] }
 0x4ed   : > { %7333 = vmatmul.msk.f32.gmra.mxu3 %vm5981_vm5, %v5956_v55  ;;  %7365 = vmatmul.msk.f32.gmra.mxu0 %vm5981_vm5, %v10915_v29 }
 0x4ee   : > { %v5813_v27 = vpop.f32.mrf.mxu2 }
 0x4ef   : > { %v5889_v36 = vadd.f32 %v5813_v27, %v5611_v51  ;;  %v5538_v35 = vpop.f32.mrf.mxu1  ;;  %v10927_v51 = vld [vmem:[#allocation90_spill] sm:$0xff] }
 0x4f0   : > { %v5612_v32 = vadd.f32 %v5538_v35, %v5334_v62  ;;  %v10929_v35 = vld [vmem:[#allocation78_spill] sm:$0xff]  ;;  %v10930_v62 = vld [vmem:[#allocation7_spill] sm:$0xff] }
 0x4f1   : > { %v5925_v54 = vadd.f32 %v10148_v11, %v5889_v36  ;;  %v10928_v36 = vld [vmem:[#allocation30_spill] sm:$0xff]  ;;  %v10357_v53 = vpop.f32.mrf.mxu3 }
 0x4f2   : > { %v10303_v24 = vpop.f32.mrf.mxu0  ;;  %7285 = vmatmul.msk.f32.gmra.mxu1 %vm773_vm4, %v9974_v7  ;;  %v4468_v46 = vadd.f32 %v10929_v35, %v10928_v36  ;;  %v10943_v36 = vld [vmem:[#allocation67_spill] sm:$0xff] }
 0x4f3   : > { %v5957_v48 = vmax.f32 %v5925_v54, 0.0  ;;  %7319 = vmatmul.msk.f32.gmra.mxu2 %vm773_vm4, %v10143_v52 }
 0x4f5   : > { %7334 = vmatmul.msk.f32.gmra.mxu3 %vm5981_vm5, %v5957_v48  ;;  %7366 = vmatmul.msk.f32.gmra.mxu0 %vm5981_vm5, %v10917_v63  ;;  %v10931_v48 = vmax.f32 %v10930_v62, 0.0  ;;  %v10944_v62 = vld [vmem:[#allocation11_spill] sm:$0xff] }
 0x4f6   : > { %v5816_v45 = vpop.f32.mrf.mxu2 }
 0x4f7   : > { %v5890_v43 = vadd.f32 %v5816_v45, %v5612_v32  ;;  %v5541_v7 = vpop.f32.mrf.mxu1  ;;  %v10932_v32 = vld [vmem:[#allocation43_spill] sm:$0xff] }
 0x4f8   : > { %v5613_v25 = vadd.f32 %v5541_v7, %v5335_v26  ;;  %v4781_v4 = vadd.f32 %v10932_v32, %v4468_v46  ;;  %v10934_v7 = vld [vmem:[#allocation93_spill] sm:$0xff]  ;;  %v10935_v26 = vld [vmem:[#allocation46_spill] sm:$0xff]  ;;  %v10946_v32 = vld [vmem:[#allocation48_spill] sm:$0xff] }
 0x4f9   : > { %v5926_v5 = vadd.f32 %v10148_v11, %v5890_v43 }
 0x4fa   : > { %v10321_v21 = vpop.f32.mrf.mxu0  ;;  %7286 = vmatmul.msk.f32.gmra.mxu1 %vm773_vm4, %v10129_v23  ;;  %v5058_v23 = vadd.f32 %v10926_v15, %v4780_v1 }
 0x4fb   : > { %v5958_v28 = vmax.f32 %v5926_v5, 0.0  ;;  %7320 = vmatmul.msk.f32.gmra.mxu2 %vm773_vm4, %v5661_v20 }
 0x4fc   : > { %v5336_v29 = vadd.f32 %v10927_v51, %v5058_v23  ;;  %v10941_v23 = vld [vmem:[#allocation96_spill] sm:$0xff] }
 0x4fd   : > { %7335 = vmatmul.msk.f32.gmra.mxu3 %vm5981_vm5, %v5958_v28  ;;  %7367 = vmatmul.msk.f32.gmra.mxu0 %vm5981_vm5, %v10924_v17  ;;  %v10936_v28 = vld [vmem:[#allocation65_spill] sm:$0xff] }
 0x4fe   : > { %v5819_v47 = vpop.f32.mrf.mxu2  ;;  %v4471_v12 = vadd.f32 %v10936_v28, %v10935_v26  ;;  %v10939_v17 = vld [vmem:[#allocation45_spill] sm:$0xff] }
 0x4ff   : > { %v5891_v57 = vadd.f32 %v5819_v47, %v5613_v25  ;;  %v5544_v40 = vpop.f32.mrf.mxu1  ;;  %v10938_v25 = vmax.f32 %v10937_v0, 0.0  ;;  %v10950_v26 = vld [vmem:[#allocation69_spill] sm:$0xff] }
 0x500   : > { %v5614_v54 = vadd.f32 %v5544_v40, %v5336_v29  ;;  %v4782_v47 = vadd.f32 %v10939_v17, %v4471_v12 }
 0x501   : > { %v5927_v55 = vadd.f32 %v10148_v11, %v5891_v57  ;;  %v10940_v57 = vld [vmem:[#allocation84_spill] sm:$0xff] }
 0x502   : > { %v10338_v19 = vpop.f32.mrf.mxu0  ;;  %7287 = vmatmul.msk.f32.gmra.mxu1 %vm773_vm4, %v10143_v52  ;;  %v5059_v52 = vadd.f32 %v10933_v31, %v4781_v4  ;;  %v5060_v40 = vadd.f32 %v10940_v57, %v4782_v47 }
 0x503   : > { %v5959_v27 = vmax.f32 %v5927_v55, 0.0  ;;  %7321 = vmatmul.msk.f32.gmra.mxu2 %vm773_vm4, %v5662_v56 }
 0x504   : > { %v5337_v18 = vadd.f32 %v10934_v7, %v5059_v52  ;;  %v5338_v55 = vadd.f32 %v10941_v23, %v5060_v40  ;;  %v10948_v52 = vld [vmem:[#allocation98_spill] sm:$0xff] }
 0x505   : > { %7336 = vmatmul.msk.f32.gmra.mxu3 %vm5981_vm5, %v5959_v27  ;;  %7368 = vmatmul.msk.f32.gmra.mxu0 %vm5981_vm5, %v10931_v48  ;;  %v10942_v27 = vld [vmem:[#allocation31_spill] sm:$0xff]  ;;  %v10945_v48 = vmax.f32 %v10944_v62, 0.0 }
 0x506   : > { %v5822_v60 = vpop.f32.mrf.mxu2  ;;  %v4474_v35 = vadd.f32 %v10943_v36, %v10942_v27  ;;  %v10956_v27 = vld [vmem:[#allocation51_spill] sm:$0xff] }
 0x507   : > { %v5892_v63 = vadd.f32 %v5822_v60, %v5614_v54  ;;  %v5547_v45 = vpop.f32.mrf.mxu1  ;;  %v10376_v54 = vpop.f32.mrf.mxu3 }
 0x508   : > { %v5615_v37 = vadd.f32 %v5547_v45, %v5337_v18  ;;  %v4783_v4 = vadd.f32 %v10946_v32, %v4474_v35 }
 0x509   : > { %v5928_v43 = vadd.f32 %v10148_v11, %v5892_v63 }
 0x50a   : > { %v10353_v5 = vpop.f32.mrf.mxu0  ;;  %7288 = vmatmul.msk.f32.gmra.mxu1 %vm773_vm4, %v5661_v20  ;;  %v5664_v20 = vld [vmem:[#allocation3 + $0x158] sm:$0xff] }
 0x50b   : > { %v5960_v8 = vmax.f32 %v5928_v43, 0.0  ;;  %7322 = vmatmul.msk.f32.gmra.mxu2 %vm773_vm4, %v5663_v42 }
 0x50d   : > { %7337 = vmatmul.msk.f32.gmra.mxu3 %vm5981_vm5, %v5960_v8  ;;  %7369 = vmatmul.msk.f32.gmra.mxu0 %vm5981_vm5, %v10938_v25  ;;  %v10949_v8 = vld [vmem:[#allocation32_spill] sm:$0xff] }
 0x50e   : > { %v5825_v33 = vpop.f32.mrf.mxu2  ;;  %v4477_v28 = vadd.f32 %v10950_v26, %v10949_v8 }
 0x50f   : > { %v5893_v58 = vadd.f32 %v5825_v33, %v5615_v37  ;;  %v5550_v1 = vpop.f32.mrf.mxu1  ;;  %v10951_v37 = vld [vmem:[#allocation15_spill] sm:$0xff] }
 0x510   : > { %v5616_v46 = vadd.f32 %v5550_v1, %v5338_v55  ;;  %v10952_v0 = vmax.f32 %v10951_v37, 0.0  ;;  %v10953_v33 = vld [vmem:[#allocation47_spill] sm:$0xff] }
 0x511   : > { %v5929_v15 = vadd.f32 %v10148_v11, %v5893_v58  ;;  %v4784_v17 = vadd.f32 %v10953_v33, %v4477_v28  ;;  %v10394_v58 = vpop.f32.mrf.mxu3  ;;  %v10961_v28 = vld [vmem:[#allocation33_spill] sm:$0xff]  ;;  %v10963_v33 = vld [vmem:[#allocation14_spill] sm:$0xff] }
 0x512   : > { %v10369_v29 = vpop.f32.mrf.mxu0  ;;  %7289 = vmatmul.msk.f32.gmra.mxu1 %vm773_vm4, %v5662_v56  ;;  %v10947_v56 = vld [vmem:[#allocation89_spill] sm:$0xff] }
 0x513   : > { %v5961_v51 = vmax.f32 %v5929_v15, 0.0  ;;  %7323 = vmatmul.msk.f32.gmra.mxu2 %vm773_vm4, %v5664_v20  ;;  %v5061_v42 = vadd.f32 %v10947_v56, %v4783_v4  ;;  %v10954_v20 = vld [vmem:[#allocation94_spill] sm:$0xff] }
 0x514   : > { %v5062_v57 = vadd.f32 %v10954_v20, %v4784_v17 }
 0x515   : > { %7338 = vmatmul.msk.f32.gmra.mxu3 %vm5981_vm5, %v5961_v51  ;;  %7370 = vmatmul.msk.f32.gmra.mxu0 %vm5981_vm5, %v10945_v48  ;;  %v5339_v43 = vadd.f32 %v10948_v52, %v5061_v42  ;;  %v10955_v51 = vld [vmem:[#allocation50_spill] sm:$0xff]  ;;  %v6401_v52 = vpop.permute.xlu0 %6400 }
 0x516   : > { %v5828_v60 = vpop.f32.mrf.mxu2  ;;  %v5340_v15 = vadd.f32 %v10170_v22, %v5062_v57  ;;  %v4480_v36 = vadd.f32 %v10956_v27, %v10955_v51  ;;  %v10960_v22 = vld [vmem:[#allocation97_spill] sm:$0xff]  ;;  %v6403_v51 = vpop.permute.xlu1 %6402 }
 0x517   : > { %v5894_v63 = vadd.f32 %v5828_v60, %v5616_v46  ;;  %v5553_v45 = vpop.f32.mrf.mxu1  ;;  %v10957_v46 = vld [vmem:[#allocation12_spill] sm:$0xff] }
 0x518   : > { %v5617_v12 = vadd.f32 %v5553_v45, %v5339_v43  ;;  %v10958_v62 = vmax.f32 %v10957_v46, 0.0  ;;  %v10959_v60 = vld [vmem:[#allocation72_spill] sm:$0xff] }
 0x519   : > { %v5930_v31 = vadd.f32 %v10148_v11, %v5894_v63  ;;  %v4785_v32 = vadd.f32 %v10959_v60, %v4480_v36 }
 0x51a   : > { %v10385_v18 = vpop.f32.mrf.mxu0 }
 0x51b   : > { %v5962_v7 = vmax.f32 %v5930_v31, 0.0  ;;  %v5063_v56 = vadd.f32 %v10960_v22, %v4785_v32  ;;  %v10970_v22 = vld [vmem:[#allocation52_spill] sm:$0xff] }
 0x51d   : > { %7339 = vmatmul.msk.f32.gmra.mxu3 %vm5981_vm5, %v5962_v7  ;;  %7371 = vmatmul.msk.f32.gmra.mxu0 %vm5981_vm5, %v10952_v0  ;;  %v5341_v43 = vadd.f32 %v10183_v6, %v5063_v56  ;;  %v10964_v6 = vmax.f32 %v10963_v33, 0.0 }
 0x51e   : > { %v5831_v25 = vpop.f32.mrf.mxu2 }
 0x51f   : > { %v5895_v47 = vadd.f32 %v5831_v25, %v5617_v12  ;;  %v5556_v1 = vpop.f32.mrf.mxu1  ;;  %v10962_v12 = vld [vmem:[#allocation49_spill] sm:$0xff] }
 0x520   : > { %v5618_v35 = vadd.f32 %v5556_v1, %v5340_v15  ;;  %v4483_v37 = vadd.f32 %v10962_v12, %v10961_v28 }
 0x521   : > { %v5931_v40 = vadd.f32 %v10148_v11, %v5895_v47  ;;  %v10965_v47 = vld [vmem:[#allocation54_spill] sm:$0xff] }
 0x522   : > { %v6272_v55 = vpop.f32.mrf.mxu0  ;;  %v4786_v1 = vadd.f32 %v10965_v47, %v4483_v37  ;;  %v10973_v47 = vld [vmem:[#allocation16_spill] sm:$0xff] }
 0x523   : > { %v5963_v23 = vmax.f32 %v5931_v40, 0.0 }
 0x524   : > { %v5064_v15 = vadd.f32 %v10165_v59, %v4786_v1  ;;  %v10974_v1 = vmax.f32 %v10973_v47, 0.0 }
 0x525   : > { %7340 = vmatmul.msk.f32.gmra.mxu3 %vm5981_vm5, %v5963_v23  ;;  %7372 = vmatmul.msk.f32.gmra.mxu0 %vm5981_vm5, %v10958_v62  ;;  %v10966_v62 = vld [vmem:[#allocation34_spill] sm:$0xff] }
 0x526   : > { %v5834_v48 = vpop.f32.mrf.mxu2  ;;  %v5342_v27 = vadd.f32 %v10194_v2, %v5064_v15 }
 0x527   : > { %v5896_v4 = vadd.f32 %v5834_v48, %v5618_v35  ;;  %v5559_v63 = vpop.f32.mrf.mxu1  ;;  %v10967_v48 = vld [vmem:[#allocation74_spill] sm:$0xff] }
 0x528   : > { %v6095_v45 = vpop.f32.mrf.mxu3  ;;  %v5619_v0 = vadd.f32 %v5559_v63, %v5341_v43  ;;  %v4486_v60 = vadd.f32 %v10967_v48, %v10966_v62  ;;  %v10968_v63 = vld [vmem:[#allocation13_spill] sm:$0xff]  ;;  %v10976_v48 = vld [vmem:[#allocation35_spill] sm:$0xff] }
 0x529   : > { %v5932_v42 = vadd.f32 %v10148_v11, %v5896_v4  ;;  %v6273_v31 = vadd.f32 %v6272_v55, %v6095_v45  ;;  %v10969_v45 = vmax.f32 %v10968_v63, 0.0 }
 0x52a   : > { %v6275_v26 = vpop.f32.mrf.mxu0  ;;  %v4787_v56 = vadd.f32 %v10970_v22, %v4486_v60  ;;  %v10977_v60 = vld [vmem:[#allocation55_spill] sm:$0xff]  ;;  %v10980_v22 = vld [vmem:[#allocation61_spill] sm:$0xff] }
 0x52b   : > { %v5964_v7 = vmax.f32 %v5932_v42, 0.0  ;;  %v6496_v8 = vadd.f32 %v6401_v52, %v6273_v31 }
 0x52c   : > { %v5065_v52 = vadd.f32 %v10179_v49, %v4787_v56 }
 0x52d   : > { %v6528_v25 = vmax.f32 %v6496_v8, 0.0  ;;  %7341 = vmatmul.msk.f32.gmra.mxu3 %vm5981_vm5, %v5964_v7  ;;  %7373 = vmatmul.msk.f32.gmra.mxu0 %vm5981_vm5, %v10964_v6  ;;  %v6405_v8 = vpop.permute.xlu2 %6404 }
 0x52e   : > { %v5837_v17 = vpop.f32.mrf.mxu2 }
 0x52f   : > { %6561 = vst.msk [vmem:[%s10414_s20] sm:$0xff] %vm6560_vm6, %v6528_v25  ;;  %v5897_v20 = vadd.f32 %v5837_v17, %v5619_v0  ;;  %v5562_v57 = vpop.f32.mrf.mxu1  ;;  %v10971_v0 = vld [vmem:[#allocation53_spill] sm:$0xff]  ;;  %v10972_v25 = vld [vmem:[#allocation58_spill] sm:$0xff] }
 0x530   : > { %v6098_v40 = vpop.f32.mrf.mxu3  ;;  %v5620_v32 = vadd.f32 %v5562_v57, %v5342_v27  ;;  %v4489_v33 = vadd.f32 %v10972_v25, %v10971_v0  ;;  %v6407_v27 = vpop.permute.xlu0 %6406  ;;  %v10982_v0 = vld [vmem:[#allocation57_spill] sm:$0xff] }
 0x531   : > { %v5933_v23 = vadd.f32 %v10148_v11, %v5897_v20  ;;  %v6276_v55 = vadd.f32 %v6275_v26, %v6098_v40  ;;  %v5343_v26 = vadd.f32 %v10207_v9, %v5065_v52  ;;  %v10975_v20 = vld [vmem:[#allocation77_spill] sm:$0xff] }
 0x532   : > { %v6278_v46 = vpop.f32.mrf.mxu0  ;;  %v4788_v57 = vadd.f32 %v10975_v20, %v4489_v33 }
 0x533   : > { %v5965_v36 = vmax.f32 %v5933_v23, 0.0  ;;  %v6497_v35 = vadd.f32 %v6403_v51, %v6276_v55 }
 0x534   : > { %v5066_v23 = vadd.f32 %v10198_v16, %v4788_v57 }
 0x535   : > { %v6529_v4 = vmax.f32 %v6497_v35, 0.0  ;;  %7342 = vmatmul.msk.f32.gmra.mxu3 %vm5981_vm5, %v5965_v36  ;;  %7374 = vmatmul.msk.f32.gmra.mxu0 %vm5981_vm5, %v10969_v45  ;;  %v10978_v45 = vld [vmem:[#allocation17_spill] sm:$0xff] }
 0x536   : > { %v5840_v59 = vpop.f32.mrf.mxu2  ;;  %v5344_v36 = vadd.f32 %v10220_v10, %v5066_v23  ;;  %v6411_v23 = vpop.permute.xlu2 %6410 }
 0x537   : > { %6562 = vst.msk [vmem:[%s10414_s20 + $0x8] sm:$0xff] %vm6560_vm6, %v6529_v4  ;;  %v5898_v2 = vadd.f32 %v5840_v59, %v5620_v32  ;;  %v5565_v42 = vpop.f32.mrf.mxu1  ;;  %v4492_v32 = vadd.f32 %v10977_v60, %v10976_v48  ;;  %v10979_v59 = vmax.f32 %v10978_v45, 0.0 }
 0x538   : > { %v6101_v31 = vpop.f32.mrf.mxu3  ;;  %v5621_v6 = vadd.f32 %v5565_v42, %v5343_v26 }
 0x539   : > { %v5934_v43 = vadd.f32 %v10148_v11, %v5898_v2  ;;  %v6279_v7 = vadd.f32 %v6278_v46, %v6101_v31  ;;  %v4789_v56 = vadd.f32 %v10980_v22, %v4492_v32  ;;  %v10988_v32 = vld [vmem:[#allocation19_spill] sm:$0xff] }
 0x53a   : > { %v6281_v37 = vpop.f32.mrf.mxu0 }
 0x53b   : > { %v5966_v28 = vmax.f32 %v5934_v43, 0.0  ;;  %v6498_v12 = vadd.f32 %v6405_v8, %v6279_v7  ;;  %v5067_v31 = vadd.f32 %v10212_v13, %v4789_v56  ;;  %v6409_v7 = vpop.permute.xlu1 %6408 }
 0x53d   : > { %v6530_v17 = vmax.f32 %v6498_v12, 0.0  ;;  %7343 = vmatmul.msk.f32.gmra.mxu3 %vm5981_vm5, %v5966_v28  ;;  %7375 = vmatmul.msk.f32.gmra.mxu0 %vm5981_vm5, %v10974_v1  ;;  %v5345_v8 = vadd.f32 %v10234_v3, %v5067_v31  ;;  %v10985_v1 = vld [vmem:[#allocation64_spill] sm:$0xff] }
 0x53e   : > { %v5843_v49 = vpop.f32.mrf.mxu2 }
 0x53f   : > { %6563 = vst.msk [vmem:[%s10414_s20 + $0x10] sm:$0xff] %vm6560_vm6, %v6530_v17  ;;  %v5899_v9 = vadd.f32 %v5843_v49, %v5621_v6  ;;  %v5568_v40 = vpop.f32.mrf.mxu1  ;;  %v10983_v17 = vld [vmem:[#allocation18_spill] sm:$0xff] }
 0x540   : > { %v6104_v15 = vpop.f32.mrf.mxu3  ;;  %v5622_v4 = vadd.f32 %v5568_v40, %v5344_v36  ;;  %v10984_v47 = vmax.f32 %v10983_v17, 0.0 }
 0x541   : > { %v5935_v55 = vadd.f32 %v10148_v11, %v5899_v9  ;;  %v6282_v51 = vadd.f32 %v6281_v37, %v6104_v15  ;;  %v10981_v37 = vld [vmem:[#allocation36_spill] sm:$0xff] }
 0x542   : > { %v6284_v62 = vpop.f32.mrf.mxu0  ;;  %v4495_v25 = vadd.f32 %v10982_v0, %v10981_v37  ;;  %v10993_v37 = vld [vmem:[#allocation20_spill] sm:$0xff] }
 0x543   : > { %v5967_v35 = vmax.f32 %v5935_v55, 0.0  ;;  %v6499_v46 = vadd.f32 %v6407_v27, %v6282_v51  ;;  %v10994_v0 = vmax.f32 %v10993_v37, 0.0 }
 0x544   : > { %v4790_v49 = vadd.f32 %v10985_v1, %v4495_v25  ;;  %v10995_v25 = vld [vmem:[#allocation70_spill] sm:$0xff] }
 0x545   : > { %v6531_v63 = vmax.f32 %v6499_v46, 0.0  ;;  %7344 = vmatmul.msk.f32.gmra.mxu3 %vm5981_vm5, %v5967_v35  ;;  %7376 = vmatmul.msk.f32.gmra.mxu0 %vm5981_vm5, %v10979_v59  ;;  %v10986_v35 = vld [vmem:[#allocation56_spill] sm:$0xff] }
 0x546   : > { %v5846_v16 = vpop.f32.mrf.mxu2  ;;  %v5068_v9 = vadd.f32 %v10229_v61, %v4790_v49  ;;  %v10987_v46 = vld [vmem:[#allocation60_spill] sm:$0xff]  ;;  %v6415_v49 = vpop.permute.xlu1 %6414 }
 0x547   : > { %6564 = vst.msk [vmem:[%s10414_s20 + $0x18] sm:$0xff] %vm6560_vm6, %v6531_v63  ;;  %v5900_v10 = vadd.f32 %v5846_v16, %v5622_v4  ;;  %v5571_v2 = vpop.f32.mrf.mxu1  ;;  %v10989_v4 = vmax.f32 %v10988_v32, 0.0  ;;  %v10990_v63 = vld [vmem:[#allocation66_spill] sm:$0xff] }
 0x548   : > { %v6107_v42 = vpop.f32.mrf.mxu3  ;;  %v5623_v33 = vadd.f32 %v5571_v2, %v5345_v8  ;;  %v5346_v55 = vadd.f32 %v10251_v30, %v5068_v9  ;;  %v6413_v2 = vpop.permute.xlu0 %6412  ;;  %v10992_v8 = vld [vmem:[#allocation62_spill] sm:$0xff] }
 0x549   : > { %v5936_v52 = vadd.f32 %v10148_v11, %v5900_v10  ;;  %v6285_v43 = vadd.f32 %v6284_v62, %v6107_v42  ;;  %v4498_v62 = vadd.f32 %v10987_v46, %v10986_v35  ;;  %v11000_v35 = vld [vmem:[#allocation76_spill] sm:$0xff] }
 0x54a   : > { %v6287_v12 = vpop.f32.mrf.mxu0 }
 0x54b   : > { %v5968_v26 = vmax.f32 %v5936_v52, 0.0  ;;  %v6500_v28 = vadd.f32 %v6409_v7, %v6285_v43  ;;  %v4791_v45 = vadd.f32 %v10990_v63, %v4498_v62  ;;  %v10991_v7 = vld [vmem:[#allocation37_spill] sm:$0xff] }
 0x54d   : > { %v6532_v6 = vmax.f32 %v6500_v28, 0.0  ;;  %7345 = vmatmul.msk.f32.gmra.mxu3 %vm5981_vm5, %v5968_v26  ;;  %7377 = vmatmul.msk.f32.gmra.mxu0 %vm5981_vm5, %v10984_v47  ;;  %v5069_v22 = vadd.f32 %v10248_v38, %v4791_v45  ;;  %v4501_v26 = vadd.f32 %v10992_v8, %v10991_v7 }
 0x54e   : > { %v5849_v13 = vpop.f32.mrf.mxu2 }
 0x54f   : > { %6565 = vst.msk [vmem:[%s10414_s20 + $0x20] sm:$0xff] %vm6560_vm6, %v6532_v6  ;;  %v5901_v3 = vadd.f32 %v5849_v13, %v5623_v33  ;;  %v5574_v20 = vpop.f32.mrf.mxu1  ;;  %v5347_v42 = vadd.f32 %v10267_v14, %v5069_v22  ;;  %v4792_v33 = vadd.f32 %v10995_v25, %v4501_v26  ;;  %v11002_v22 = vld [vmem:[#allocation79_spill] sm:$0xff] }
 0x550   : > { %v6110_v57 = vpop.f32.mrf.mxu3  ;;  %v5624_v48 = vadd.f32 %v5574_v20, %v5346_v55  ;;  %v6419_v37 = vpop.permute.xlu0 %6418 }
 0x551   : > { %v5937_v40 = vadd.f32 %v10148_v11, %v5901_v3  ;;  %v6288_v15 = vadd.f32 %v6287_v12, %v6110_v57  ;;  %v5070_v47 = vadd.f32 %v10273_v44, %v4792_v33 }
 0x552   : > { %v6290_v36 = vpop.f32.mrf.mxu0 }
 0x553   : > { %v5969_v51 = vmax.f32 %v5937_v40, 0.0  ;;  %v6501_v27 = vadd.f32 %v6411_v23, %v6288_v15  ;;  %v5348_v3 = vadd.f32 %v10285_v39, %v5070_v47  ;;  %v10996_v40 = vld [vmem:[#allocation38_spill] sm:$0xff]  ;;  %v10997_v15 = vld [vmem:[#allocation71_spill] sm:$0xff] }
 0x554   : > { %v4504_v23 = vadd.f32 %v10997_v15, %v10996_v40 }
 0x555   : > { %v6533_v60 = vmax.f32 %v6501_v27, 0.0  ;;  %7346 = vmatmul.msk.f32.gmra.mxu3 %vm5981_vm5, %v5969_v51  ;;  %7378 = vmatmul.msk.f32.gmra.mxu0 %vm5981_vm5, %v10989_v4  ;;  %v10998_v27 = vld [vmem:[#allocation21_spill] sm:$0xff] }
 0x556   : > { %v5852_v61 = vpop.f32.mrf.mxu2  ;;  %v4793_v46 = vadd.f32 %v11000_v35, %v4504_v23  ;;  %v11011_v35 = vld [vmem:[#allocation41_spill] sm:$0xff] }
 0x557   : > { %6566 = vst.msk [vmem:[%s10414_s20 + $0x28] sm:$0xff] %vm6560_vm6, %v6533_v60  ;;  %v5902_v30 = vadd.f32 %v5852_v61, %v5624_v48  ;;  %v5577_v59 = vpop.f32.mrf.mxu1  ;;  %v6417_v61 = vpop.permute.xlu2 %6416 }
 0x558   : > { %v6113_v16 = vpop.f32.mrf.mxu3  ;;  %v5625_v28 = vadd.f32 %v5577_v59, %v5347_v42  ;;  %v5071_v60 = vadd.f32 %v10294_v34, %v4793_v46  ;;  %v11003_v42 = vld [vmem:[#allocation22_spill] sm:$0xff]  ;;  %v11012_v46 = vld [vmem:[#allocation85_spill] sm:$0xff] }
 0x559   : > { %v5938_v56 = vadd.f32 %v10148_v11, %v5902_v30  ;;  %v6291_v10 = vadd.f32 %v6290_v36, %v6113_v16  ;;  %v10999_v36 = vmax.f32 %v10998_v27, 0.0  ;;  %v11001_v16 = vld [vmem:[#allocation59_spill] sm:$0xff] }
 0x55a   : > { %v6293_v43 = vpop.f32.mrf.mxu0  ;;  %v5349_v63 = vadd.f32 %v10303_v24, %v5071_v60  ;;  %v11013_v60 = vld [vmem:[#allocation24_spill] sm:$0xff] }
 0x55b   : > { %v5970_v31 = vmax.f32 %v5938_v56, 0.0  ;;  %v6502_v52 = vadd.f32 %v6413_v2, %v6291_v10  ;;  %v4507_v56 = vadd.f32 %v11002_v22, %v11001_v16 }
 0x55d   : > { %v6534_v12 = vmax.f32 %v6502_v52, 0.0  ;;  %7347 = vmatmul.msk.f32.gmra.mxu3 %vm5981_vm5, %v5970_v31  ;;  %7379 = vmatmul.msk.f32.gmra.mxu0 %vm5981_vm5, %v10994_v0  ;;  %v11004_v31 = vmax.f32 %v11003_v42, 0.0  ;;  %v11005_v52 = vld [vmem:[#allocation81_spill] sm:$0xff] }
 0x55e   : > { %v5855_v38 = vpop.f32.mrf.mxu2 }
 0x55f   : > { %6567 = vst.msk [vmem:[%s10414_s20 + $0x30] sm:$0xff] %vm6560_vm6, %v6534_v12  ;;  %v5903_v14 = vadd.f32 %v5855_v38, %v5625_v28  ;;  %v5580_v6 = vpop.f32.mrf.mxu1  ;;  %v6423_v22 = vpop.permute.xlu2 %6422 }
 0x560   : > { %v6116_v17 = vpop.f32.mrf.mxu3  ;;  %v5626_v55 = vadd.f32 %v5580_v6, %v5348_v3  ;;  %v11007_v6 = vld [vmem:[#allocation82_spill] sm:$0xff]  ;;  %v11010_v3 = vld [vmem:[#allocation83_spill] sm:$0xff] }
 0x561   : > { %v5939_v13 = vadd.f32 %v10148_v11, %v5903_v14  ;;  %v6294_v1 = vadd.f32 %v6293_v43, %v6116_v17  ;;  %v4794_v43 = vadd.f32 %v11005_v52, %v4507_v56  ;;  %v11006_v14 = vld [vmem:[#allocation40_spill] sm:$0xff] }
 0x562   : > { %v6296_v9 = vpop.f32.mrf.mxu0  ;;  %v4510_v17 = vadd.f32 %v11007_v6, %v11006_v14 }
 0x563   : > { %v5971_v20 = vmax.f32 %v5939_v13, 0.0  ;;  %v6503_v57 = vadd.f32 %v6415_v49, %v6294_v1  ;;  %v5072_v26 = vadd.f32 %v10316_v50, %v4794_v43  ;;  %v11008_v1 = vld [vmem:[#allocation23_spill] sm:$0xff] }
 0x564   : > { %v11009_v49 = vmax.f32 %v11008_v1, 0.0  ;;  %v11022_v1 = vld [vmem:[#allocation92_spill] sm:$0xff] }
 0x565   : > { %v6535_v51 = vmax.f32 %v6503_v57, 0.0  ;;  %7348 = vmatmul.msk.f32.gmra.mxu3 %vm5981_vm5, %v5971_v20  ;;  %7380 = vmatmul.msk.f32.gmra.mxu0 %vm5981_vm5, %v10999_v36  ;;  %v5350_v0 = vadd.f32 %v10321_v21, %v5072_v26  ;;  %v4795_v20 = vadd.f32 %v11010_v3, %v4510_v17  ;;  %v11020_v26 = vld [vmem:[#allocation91_spill] sm:$0xff] }
 0x566   : > { %v5858_v44 = vpop.f32.mrf.mxu2 }
 0x567   : > { %6568 = vst.msk [vmem:[%s10414_s20 + $0x38] sm:$0xff] %vm6560_vm6, %v6535_v51  ;;  %v5904_v39 = vadd.f32 %v5858_v44, %v5626_v55  ;;  %v5583_v62 = vpop.f32.mrf.mxu1  ;;  %v5073_v40 = vadd.f32 %v10335_v41, %v4795_v20  ;;  %v6421_v55 = vpop.permute.xlu1 %6420  ;;  %v11023_v20 = vld [vmem:[#allocation26_spill] sm:$0xff] }
 0x568   : > { %v6119_v48 = vpop.f32.mrf.mxu3  ;;  %v5627_v10 = vadd.f32 %v5583_v62, %v5349_v63 }
 0x569   : > { %v5940_v32 = vadd.f32 %v10148_v11, %v5904_v39  ;;  %v6297_v4 = vadd.f32 %v6296_v9, %v6119_v48  ;;  %v5351_v51 = vadd.f32 %v10338_v19, %v5073_v40  ;;  %v4513_v39 = vadd.f32 %v11012_v46, %v11011_v35 }
 0x56a   : > { %v6299_v59 = vpop.f32.mrf.mxu0 }
 0x56b   : > { %v5972_v45 = vmax.f32 %v5940_v32, 0.0  ;;  %v6504_v30 = vadd.f32 %v6417_v61, %v6297_v4  ;;  %v11014_v32 = vmax.f32 %v11013_v60, 0.0  ;;  %v11015_v4 = vld [vmem:[#allocation87_spill] sm:$0xff] }
 0x56c   : > { %v4796_v61 = vadd.f32 %v11015_v4, %v4513_v39 }
 0x56d   : > { %v6536_v2 = vmax.f32 %v6504_v30, 0.0  ;;  %7349 = vmatmul.msk.f32.gmra.mxu3 %vm5981_vm5, %v5972_v45  ;;  %7381 = vmatmul.msk.f32.gmra.mxu0 %vm5981_vm5, %v11004_v31  ;;  %v11016_v31 = vld [vmem:[#allocation42_spill] sm:$0xff] }
 0x56e   : > { %v5861_v34 = vpop.f32.mrf.mxu2  ;;  %v5074_v30 = vadd.f32 %v10357_v53, %v4796_v61  ;;  %v6429_v61 = vpop.permute.xlu2 %6428 }
 0x56f   : > { %6569 = vst.msk [vmem:[%s10414_s20 + $0x40] sm:$0xff] %vm6560_vm6, %v6536_v2  ;;  %v5905_v24 = vadd.f32 %v5861_v34, %v5627_v10  ;;  %v5586_v7 = vpop.f32.mrf.mxu1  ;;  %v11017_v34 = vld [vmem:[#allocation88_spill] sm:$0xff] }
 0x570   : > { %v6122_v8 = vpop.f32.mrf.mxu3  ;;  %v5628_v47 = vadd.f32 %v5586_v7, %v5350_v0  ;;  %v5352_v56 = vadd.f32 %v10353_v5, %v5074_v30  ;;  %v4516_v52 = vadd.f32 %v11017_v34, %v11016_v31  ;;  %v11018_v7 = vld [vmem:[#allocation25_spill] sm:$0xff] }
 0x571   : > { %v5941_v28 = vadd.f32 %v10148_v11, %v5905_v24  ;;  %v6300_v12 = vadd.f32 %v6299_v59, %v6122_v8  ;;  %v11019_v8 = vmax.f32 %v11018_v7, 0.0 }
 0x572   : > { %v6302_v33 = vpop.f32.mrf.mxu0 }
 0x573   : > { %v5973_v38 = vmax.f32 %v5941_v28, 0.0  ;;  %v6505_v25 = vadd.f32 %v6419_v37, %v6300_v12  ;;  %v4797_v28 = vadd.f32 %v11020_v26, %v4516_v52 }
 0x575   : > { %v6537_v13 = vmax.f32 %v6505_v25, 0.0  ;;  %7350 = vmatmul.msk.f32.gmra.mxu3 %vm5981_vm5, %v5973_v38  ;;  %7382 = vmatmul.msk.f32.gmra.mxu0 %vm5981_vm5, %v11009_v49  ;;  %v5075_v0 = vadd.f32 %v10376_v54, %v4797_v28 }
 0x576   : > { %v5864_v50 = vpop.f32.mrf.mxu2  ;;  %v6435_v28 = vpop.permute.xlu2 %6434 }
 0x577   : > { %6570 = vst.msk [vmem:[%s10414_s20 + $0x48] sm:$0xff] %vm6560_vm6, %v6537_v13  ;;  %v5906_v21 = vadd.f32 %v5864_v50, %v5628_v47  ;;  %v5589_v57 = vpop.f32.mrf.mxu1  ;;  %v5353_v14 = vadd.f32 %v10369_v29, %v5075_v0  ;;  %v11021_v13 = vld [vmem:[#allocation44_spill] sm:$0xff] }
 0x578   : > { %v6125_v9 = vpop.f32.mrf.mxu3  ;;  %v5629_v62 = vadd.f32 %v5589_v57, %v5351_v51  ;;  %v4519_v49 = vadd.f32 %v11022_v1, %v11021_v13  ;;  %v11025_v57 = vld [vmem:[#allocation95_spill] sm:$0xff]  ;;  %v6427_v51 = vpop.permute.xlu1 %6426 }
 0x579   : > { %v5942_v15 = vadd.f32 %v10148_v11, %v5906_v21  ;;  %v6303_v23 = vadd.f32 %v6302_v33, %v6125_v9  ;;  %v6425_v33 = vpop.permute.xlu0 %6424  ;;  %v11024_v21 = vmax.f32 %v11023_v20, 0.0 }
 0x57a   : > { %v6305_v44 = vpop.f32.mrf.mxu0  ;;  %v4798_v9 = vadd.f32 %v11025_v57, %v4519_v49 }
 0x57b   : > { %v5974_v27 = vmax.f32 %v5942_v15, 0.0  ;;  %v6506_v36 = vadd.f32 %v6421_v55, %v6303_v23 }
 0x57c   : > { %v5076_v15 = vadd.f32 %v10394_v58, %v4798_v9 }
 0x57d   : > { %v6538_v48 = vmax.f32 %v6506_v36, 0.0  ;;  %7351 = vmatmul.msk.f32.gmra.mxu3 %vm5981_vm5, %v5974_v27  ;;  %7383 = vmatmul.msk.f32.gmra.mxu0 %vm5981_vm5, %v11014_v32 }
 0x57e   : > { %v5867_v41 = vpop.f32.mrf.mxu2  ;;  %v5354_v36 = vadd.f32 %v10385_v18, %v5076_v15  ;;  %v7417_v18 = vld [vmem:[%s10631_s7] ss:$0 sm:$0xff] }
 0x57f   : > { %6571 = vst.msk [vmem:[%s10414_s20 + $0x50] sm:$0xff] %vm6560_vm6, %v6538_v48  ;;  %v5907_v19 = vadd.f32 %v5867_v41, %v5629_v62  ;;  %v5592_v63 = vpop.f32.mrf.mxu1  ;;  %v11026_v48 = vld [vmem:[#allocation27_spill] sm:$0xff] }
 0x580   : > { %v6128_v45 = vpop.f32.mrf.mxu3  ;;  %v5630_v43 = vadd.f32 %v5592_v63, %v5352_v56  ;;  %v11027_v60 = vmax.f32 %v11026_v48, 0.0 }
 0x581   : > { %v5943_v59 = vadd.f32 %v10148_v11, %v5907_v19  ;;  %v6306_v16 = vadd.f32 %v6305_v44, %v6128_v45 }
 0x582   : > { %v6308_v42 = vpop.f32.mrf.mxu0 }
 0x583   : > { %v5975_v10 = vmax.f32 %v5943_v59, 0.0  ;;  %v6507_v2 = vadd.f32 %v6423_v22, %v6306_v16  ;;  %v11028_v59 = vld [vmem:[#allocation28_spill] sm:$0xff] }
 0x584   : > { %v11029_v16 = vmax.f32 %v11028_v59, 0.0 }
 0x585   : > { %v6539_v24 = vmax.f32 %v6507_v2, 0.0  ;;  %7352 = vmatmul.msk.f32.gmra.mxu3 %vm5981_vm5, %v5975_v10  ;;  %7384 = vmatmul.msk.f32.gmra.mxu0 %vm5981_vm5, %v11019_v8  ;;  %v6431_v10 = vpop.permute.xlu0 %6430 }
 0x586   : > { %v5870_v53 = vpop.f32.mrf.mxu2 }
 0x587   : > { %6572 = vst.msk [vmem:[%s10414_s20 + $0x58] sm:$0xff] %vm6560_vm6, %v6539_v24  ;;  %v5908_v5 = vadd.f32 %v5870_v53, %v5630_v43  ;;  %v5595_v12 = vpop.f32.mrf.mxu1  ;;  %v6433_v43 = vpop.permute.xlu1 %6432 }
 0x588   : > { %v6131_v37 = vpop.f32.mrf.mxu3  ;;  %v5631_v50 = vadd.f32 %v5595_v12, %v5353_v14 }
 0x589   : > { %v5944_v38 = vadd.f32 %v10148_v11, %v5908_v5  ;;  %v6309_v25 = vadd.f32 %v6308_v42, %v6131_v37 }
 0x58a   : > { %v6311_v47 = vpop.f32.mrf.mxu0 }
 0x58b   : > { %v5976_v6 = vmax.f32 %v5944_v38, 0.0  ;;  %v6508_v17 = vadd.f32 %v6425_v33, %v6309_v25 }
 0x58d   : > { %v6540_v3 = vmax.f32 %v6508_v17, 0.0  ;;  %7353 = vmatmul.msk.f32.gmra.mxu3 %vm5981_vm5, %v5976_v6  ;;  %7385 = vmatmul.msk.f32.gmra.mxu0 %vm5981_vm5, %v11024_v21  ;;  %v6437_v25 = vpop.permute.xlu0 %6436  ;;  %v6441_v21 = vpop.permute.xlu2 %6440 }
 0x58e   : > { %v5873_v54 = vpop.f32.mrf.mxu2 }
 0x58f   : > { %6573 = vst.msk [vmem:[%s10414_s20 + $0x60] sm:$0xff] %vm6560_vm6, %v6540_v3  ;;  %v5909_v29 = vadd.f32 %v5873_v54, %v5631_v50  ;;  %v5598_v27 = vpop.f32.mrf.mxu1  ;;  %v6439_v13 = vpop.permute.xlu1 %6438 }
 0x590   : > { %v6134_v40 = vpop.f32.mrf.mxu3  ;;  %v5632_v39 = vadd.f32 %v5598_v27, %v5354_v36 }
 0x591   : > { %v5945_v23 = vadd.f32 %v10148_v11, %v5909_v29  ;;  %v6312_v55 = vadd.f32 %v6311_v47, %v6134_v40 }
 0x592   : > { %v6314_v46 = vpop.f32.mrf.mxu0 }
 0x593   : > { %v5977_v44 = vmax.f32 %v5945_v23, 0.0  ;;  %v6509_v35 = vadd.f32 %v6427_v51, %v6312_v55 }
 0x595   : > { %v6541_v62 = vmax.f32 %v6509_v35, 0.0  ;;  %7354 = vmatmul.msk.f32.gmra.mxu3 %vm5981_vm5, %v5977_v44  ;;  %7386 = vmatmul.msk.f32.gmra.mxu0 %vm5981_vm5, %v11027_v60  ;;  %v6443_v15 = vpop.permute.xlu0 %6442  ;;  %v6447_v60 = vpop.permute.xlu2 %6446 }
 0x596   : > { %v5876_v58 = vpop.f32.mrf.mxu2 }
 0x597   : > { %6574 = vst.msk [vmem:[%s10414_s20 + $0x68] sm:$0xff] %vm6560_vm6, %v6541_v62  ;;  %v5910_v11 = vadd.f32 %v5876_v58, %v5632_v39  ;;  %v6445_v44 = vpop.permute.xlu1 %6444 }
 0x598   : > { %v6137_v32 = vpop.f32.mrf.mxu3 }
 0x599   : > { %v5946_v41 = vadd.f32 %v7417_v18, %v5910_v11  ;;  %v6315_v4 = vadd.f32 %v6314_v46, %v6137_v32 }
 0x59a   : > { %v6317_v45 = vpop.f32.mrf.mxu0 }
 0x59b   : > { %v5978_v19 = vmax.f32 %v5946_v41, 0.0  ;;  %v6510_v63 = vadd.f32 %v6429_v61, %v6315_v4 }
 0x59d   : > { %v6542_v30 = vmax.f32 %v6510_v63, 0.0  ;;  %7355 = vmatmul.msk.f32.gmra.mxu3 %vm5981_vm5, %v5978_v19  ;;  %7387 = vmatmul.msk.f32.gmra.mxu0 %vm5981_vm5, %v11029_v16  ;;  %v6449_v4 = vpop.permute.xlu0 %6448 }
 0x59f   : > { %6575 = vst.msk [vmem:[%s10414_s20 + $0x70] sm:$0xff] %vm6560_vm6, %v6542_v30  ;;  %v6451_v59 = vpop.permute.xlu1 %6450 }
 0x5a0   : > { %v6140_v22 = vpop.f32.mrf.mxu3 }
 0x5a1   : > { %v6318_v56 = vadd.f32 %v6317_v45, %v6140_v22 }
 0x5a2   : > { %v6320_v42 = vpop.f32.mrf.mxu0 }
 0x5a3   : > { %v6511_v2 = vadd.f32 %v6431_v10, %v6318_v56 }
 0x5a5   : > { %v6543_v31 = vmax.f32 %v6511_v2, 0.0 }
 0x5a7   : > { %6576 = vst.msk [vmem:[%s10414_s20 + $0x78] sm:$0xff] %vm6560_vm6, %v6543_v31 }
 0x5a8   : > { %v6143_v34 = vpop.f32.mrf.mxu3 }
 0x5a9   : > { %v6321_v52 = vadd.f32 %v6320_v42, %v6143_v34  ;;  %v6453_v42 = vpop.permute.xlu2 %6452 }
 0x5aa   : > { %v6323_v7 = vpop.f32.mrf.mxu0 }
 0x5ab   : > { %v6512_v24 = vadd.f32 %v6433_v43, %v6321_v52 }
 0x5ad   : > { %v6544_v8 = vmax.f32 %v6512_v24, 0.0 }
 0x5af   : > { %6577 = vst.msk [vmem:[%s10414_s20 + $0x80] sm:$0xff] %vm6560_vm6, %v6544_v8 }
 0x5b0   : > { %v6146_v53 = vpop.f32.mrf.mxu3 }
 0x5b1   : > { %v6324_v26 = vadd.f32 %v6323_v7, %v6146_v53  ;;  %v6455_v7 = vpop.permute.xlu0 %6454 }
 0x5b2   : > { %v6326_v12 = vpop.f32.mrf.mxu0 }
 0x5b3   : > { %v6513_v5 = vadd.f32 %v6435_v28, %v6324_v26 }
 0x5b5   : > { %v6545_v37 = vmax.f32 %v6513_v5, 0.0 }
 0x5b7   : > { %6578 = vst.msk [vmem:[%s10414_s20 + $0x88] sm:$0xff] %vm6560_vm6, %v6545_v37 }
 0x5b8   : > { %v6149_v0 = vpop.f32.mrf.mxu3 }
 0x5b9   : > { %v6327_v38 = vadd.f32 %v6326_v12, %v6149_v0  ;;  %v6457_v12 = vpop.permute.xlu1 %6456 }
 0x5ba   : > { %v6329_v14 = vpop.f32.mrf.mxu0 }
 0x5bb   : > { %v6514_v33 = vadd.f32 %v6437_v25, %v6327_v38 }
 0x5bd   : > { %v6546_v6 = vmax.f32 %v6514_v33, 0.0 }
 0x5bf   : > { %6579 = vst.msk [vmem:[%s10414_s20 + $0x90] sm:$0xff] %vm6560_vm6, %v6546_v6 }
 0x5c0   : > { %v6152_v17 = vpop.f32.mrf.mxu3 }
 0x5c1   : > { %v6330_v47 = vadd.f32 %v6329_v14, %v6152_v17  ;;  %v6459_v14 = vpop.permute.xlu2 %6458 }
 0x5c2   : > { %v6332_v49 = vpop.f32.mrf.mxu0 }
 0x5c3   : > { %v6515_v1 = vadd.f32 %v6439_v13, %v6330_v47 }
 0x5c5   : > { %v6547_v50 = vmax.f32 %v6515_v1, 0.0 }
 0x5c7   : > { %6580 = vst.msk [vmem:[%s10414_s20 + $0x98] sm:$0xff] %vm6560_vm6, %v6547_v50 }
 0x5c8   : > { %v6155_v3 = vpop.f32.mrf.mxu3 }
 0x5c9   : > { %v6333_v20 = vadd.f32 %v6332_v49, %v6155_v3  ;;  %v6461_v49 = vpop.permute.xlu0 %6460 }
 0x5ca   : > { %v6335_v57 = vpop.f32.mrf.mxu0 }
 0x5cb   : > { %v6516_v54 = vadd.f32 %v6441_v21, %v6333_v20 }
 0x5cd   : > { %v6548_v9 = vmax.f32 %v6516_v54, 0.0 }
 0x5cf   : > { %6581 = vst.msk [vmem:[%s10414_s20 + $0xa0] sm:$0xff] %vm6560_vm6, %v6548_v9 }
 0x5d0   : > { %v6158_v29 = vpop.f32.mrf.mxu3 }
 0x5d1   : > { %v6336_v40 = vadd.f32 %v6335_v57, %v6158_v29  ;;  %v6463_v57 = vpop.permute.xlu1 %6462 }
 0x5d2   : > { %v6338_v55 = vpop.f32.mrf.mxu0 }
 0x5d3   : > { %v6517_v23 = vadd.f32 %v6443_v15, %v6336_v40 }
 0x5d5   : > { %v6549_v51 = vmax.f32 %v6517_v23, 0.0 }
 0x5d7   : > { %6582 = vst.msk [vmem:[%s10414_s20 + $0xa8] sm:$0xff] %vm6560_vm6, %v6549_v51 }
 0x5d8   : > { %v6161_v27 = vpop.f32.mrf.mxu3 }
 0x5d9   : > { %v6339_v36 = vadd.f32 %v6338_v55, %v6161_v27 }
 0x5da   : > { %v6341_v46 = vpop.f32.mrf.mxu0 }
 0x5db   : > { %v6518_v35 = vadd.f32 %v6445_v44, %v6339_v36 }
 0x5dd   : > { %v6550_v39 = vmax.f32 %v6518_v35, 0.0 }
 0x5df   : > { %6583 = vst.msk [vmem:[%s10414_s20 + $0xb0] sm:$0xff] %vm6560_vm6, %v6550_v39 }
 0x5e0   : > { %v6164_v62 = vpop.f32.mrf.mxu3 }
 0x5e1   : > { %v6342_v48 = vadd.f32 %v6341_v46, %v6164_v62 }
 0x5e2   : > { %v6344_v11 = vpop.f32.mrf.mxu0 }
 0x5e3   : > { %v6519_v58 = vadd.f32 %v6447_v60, %v6342_v48 }
 0x5e5   : > { %v6551_v32 = vmax.f32 %v6519_v58, 0.0 }
 0x5e7   : > { %6584 = vst.msk [vmem:[%s10414_s20 + $0xb8] sm:$0xff] %vm6560_vm6, %v6551_v32 }
 0x5e8   : > { %v6167_v18 = vpop.f32.mrf.mxu3 }
 0x5e9   : > { %v6345_v41 = vadd.f32 %v6344_v11, %v6167_v18 }
 0x5ea   : > { %v6347_v19 = vpop.f32.mrf.mxu0 }
 0x5eb   : > { %v6520_v61 = vadd.f32 %v6449_v4, %v6345_v41 }
 0x5ed   : > { %v6552_v63 = vmax.f32 %v6520_v61, 0.0 }
 0x5ef   : > { %6585 = vst.msk [vmem:[%s10414_s20 + $0xc0] sm:$0xff] %vm6560_vm6, %v6552_v63 }
 0x5f0   : > { %v6170_v45 = vpop.f32.mrf.mxu3 }
 0x5f1   : > { %v6348_v30 = vadd.f32 %v6347_v19, %v6170_v45 }
 0x5f2   : > { %v6350_v22 = vpop.f32.mrf.mxu0 }
 0x5f3   : > { %v6521_v16 = vadd.f32 %v6451_v59, %v6348_v30 }
 0x5f5   : > { %v6553_v56 = vmax.f32 %v6521_v16, 0.0 }
 0x5f7   : > { %6586 = vst.msk [vmem:[%s10414_s20 + $0xc8] sm:$0xff] %vm6560_vm6, %v6553_v56 }
 0x5f8   : > { %v6173_v10 = vpop.f32.mrf.mxu3 }
 0x5f9   : > { %v6351_v2 = vadd.f32 %v6350_v22, %v6173_v10 }
 0x5fa   : > { %v6353_v34 = vpop.f32.mrf.mxu0 }
 0x5fb   : > { %v6522_v31 = vadd.f32 %v6453_v42, %v6351_v2 }
 0x5fd   : > { %v6554_v52 = vmax.f32 %v6522_v31, 0.0 }
 0x5ff   : > { %6587 = vst.msk [vmem:[%s10414_s20 + $0xd0] sm:$0xff] %vm6560_vm6, %v6554_v52 }
 0x600   : > { %v6176_v43 = vpop.f32.mrf.mxu3 }
 0x601   : > { %v6354_v24 = vadd.f32 %v6353_v34, %v6176_v43 }
 0x602   : > { %v6356_v53 = vpop.f32.mrf.mxu0 }
 0x603   : > { %v6523_v8 = vadd.f32 %v6455_v7, %v6354_v24 }
 0x605   : > { %v6555_v26 = vmax.f32 %v6523_v8, 0.0 }
 0x607   : > { %6588 = vst.msk [vmem:[%s10414_s20 + $0xd8] sm:$0xff] %vm6560_vm6, %v6555_v26 }
 0x608   : > { %v6179_v28 = vpop.f32.mrf.mxu3 }
 0x609   : > { %v6357_v5 = vadd.f32 %v6356_v53, %v6179_v28 }
 0x60a   : > { %v6359_v0 = vpop.f32.mrf.mxu0 }
 0x60b   : > { %v6524_v37 = vadd.f32 %v6457_v12, %v6357_v5 }
 0x60d   : > { %v6556_v38 = vmax.f32 %v6524_v37, 0.0 }
 0x60f   : > { %6589 = vst.msk [vmem:[%s10414_s20 + $0xe0] sm:$0xff] %vm6560_vm6, %v6556_v38 }
 0x610   : > { %v6182_v25 = vpop.f32.mrf.mxu3 }
 0x611   : > { %v6360_v33 = vadd.f32 %v6359_v0, %v6182_v25 }
 0x612   : > { %v6362_v47 = vpop.f32.mrf.mxu0 }
 0x613   : > { %v6525_v6 = vadd.f32 %v6459_v14, %v6360_v33 }
 0x615   : > { %v6557_v17 = vmax.f32 %v6525_v6, 0.0 }
 0x617   : > { %6590 = vst.msk [vmem:[%s10414_s20 + $0xe8] sm:$0xff] %vm6560_vm6, %v6557_v17 }
 0x618   : > { %v6185_v13 = vpop.f32.mrf.mxu3 }
 0x619   : > { %v6363_v1 = vadd.f32 %v6362_v47, %v6185_v13 }
 0x61a   : > { %v6365_v20 = vpop.f32.mrf.mxu0 }
 0x61b   : > { %v6526_v50 = vadd.f32 %v6461_v49, %v6363_v1 }
 0x61d   : > { %v6558_v3 = vmax.f32 %v6526_v50, 0.0 }
 0x61f   : > { %6591 = vst.msk [vmem:[%s10414_s20 + $0xf0] sm:$0xff] %vm6560_vm6, %v6558_v3 }
 0x620   : > { %v6188_v21 = vpop.f32.mrf.mxu3 }
 0x621   : > { %v6366_v54 = vadd.f32 %v6365_v20, %v6188_v21 }
 0x623   : > { %v6527_v9 = vadd.f32 %v6463_v57, %v6366_v54 }
 0x625   : > { %v6559_v29 = vmax.f32 %v6527_v9, 0.0 }
 0x627   : > { %6592 = vst.msk [vmem:[%s10414_s20 + $0xf8] sm:$0xff] %vm6560_vm6, %v6559_v29 }
 0x628 PF: > { %s20_s13 = sadd.s32 1, %s7424_s13  }
 0x629   : > { %p17_p4 = scmp.ge.s32.totalorder %s20_s13, 4  }
 0x62b   :  { %19 = sbr.rel (!%p17_p4) target bundleno = 1 (0x1), region = 107 }

</bundles_post_ra>
